<compile_context>
chip_gen: v6e
topology: v6e:2x2x1
jax: 0.10.0
libtpu: 0.0.40
codegen_flags: <defaults>
</compile_context>

<pallas_src>
import math

import jax
import jax.numpy as jnp
from jax.experimental import pallas as pl
from jax.experimental.pallas import tpu as pltpu

# -------------------- sizes --------------------
N_MODELS = 5
B = 2          # batch
S = 8          # sequence length
H = 32         # hidden size
F = 64         # FFN intermediate size
V = 64         # vocab size
NTT = 2        # token-type vocab
NPOS = S       # position-embedding table size
L = 2          # num_labels
ENSEMBLE_WEIGHTS = (0.25, 0.125, 0.15, 0.3, 0.4)
LN_EPS = 1e-12

LANE = 128
N_WCHUNK = 6                 # wqkv | wo | w1 | w2 | wp | wc
W_SLAB_W = N_WCHUNK * LANE   # 768 lanes
SLAB_ROWS = max(H, F)        # 64 sublanes (w2 is (F, H), stored natively)
N_VEC = 12                   # rows in the vector slab


# -------------------- Pallas kernel --------------------
def _layernorm(z, g, b):
    mu = jnp.mean(z, axis=-1, keepdims=True)
    var = jnp.mean((z - mu) ** 2, axis=-1, keepdims=True)
    return (z - mu) * jax.lax.rsqrt(var + LN_EPS) * g + b


def ensemble_kernel(x_ref, bias_ref, w_ref, v_ref, out_ref):
    """Single invocation: all 5 mini-BERTs unrolled, params VMEM-resident.

    x_ref    : VMEM (5, B, S, H) f32   embedded inputs per model
    bias_ref : VMEM (5, B, S)    f32   additive attention bias (1-mask)*(-1e4)
    w_ref    : VMEM (5, 64, 768) bf16  packed weight slab
    v_ref    : VMEM (5, 12, 128) f32   packed bias / LayerNorm slab
    out_ref  : VMEM (B, L)       f32   ensemble logits
    """
    inv_sqrt_h = 1.0 / math.sqrt(H)
    total = jnp.zeros((B, L), jnp.float32)

    w_all = w_ref[...]          # (5, 64, 768) bf16 (pre-cast in the wrapper)
    v_all = v_ref[...]          # (5, 12, 128) f32

    for m in range(N_MODELS):   # statically unrolled
        x = x_ref[m]            # (B, S, H)
        bias = bias_ref[m]      # (B, S)

        # ---- static slices into the packed weight slab (lane-aligned) ----
        wqkv = w_all[m, :H, 0 * LANE:0 * LANE + 3 * H]   # (H, 3H)
        wo   = w_all[m, :H, 1 * LANE:1 * LANE + H]       # (H, H)
        w1   = w_all[m, :H, 2 * LANE:2 * LANE + F]       # (H, F)
        w2   = w_all[m, :F, 3 * LANE:3 * LANE + H]       # (F, H)
        wp   = w_all[m, :H, 4 * LANE:4 * LANE + H]       # (H, H)
        wc   = w_all[m, :H, 5 * LANE:5 * LANE + L]       # (H, L)

        # ---- static slices into the packed vector slab ----
        eln_g = v_all[m, 0:1, :H]
        eln_b = v_all[m, 1:2, :H]
        bqkv  = v_all[m, 2:3, :3 * H]
        bo    = v_all[m, 3:4, :H]
        ln1_g = v_all[m, 4:5, :H]
        ln1_b = v_all[m, 5:6, :H]
        b1    = v_all[m, 6:7, :F]
        b2    = v_all[m, 7:8, :H]
        ln2_g = v_all[m, 8:9, :H]
        ln2_b = v_all[m, 9:10, :H]
        bp    = v_all[m, 10:11, :H]
        bc    = v_all[m, 11:12, :L]

        # embedding LayerNorm on flattened tokens (B*S, H)
        x2 = _layernorm(x.reshape(B * S, H), eln_g, eln_b)

        # fused QKV projection: one MXU pass instead of three
        qkv = jnp.dot(x2.astype(jnp.bfloat16), wqkv,
                      preferred_element_type=jnp.float32) + bqkv   # (B*S, 3H)
        qkv = qkv.reshape(B, S, 3 * H)
        q = qkv[:, :, 0:H]
        k = qkv[:, :, H:2 * H]
        v = qkv[:, :, 2 * H:3 * H]

        scores = jnp.einsum('bqh,bkh->bqk', q, k,
                            preferred_element_type=jnp.float32) * inv_sqrt_h
        scores = scores + bias[:, None, :]

        smax = jnp.max(scores, axis=-1, keepdims=True)
        p = jnp.exp(scores - smax)
        attn = p * pl.reciprocal(jnp.sum(p, axis=-1, keepdims=True),
                                 approx=True)

        ctx = jnp.einsum('bqk,bkh->bqh', attn, v,
                         preferred_element_type=jnp.float32)       # (B, S, H)
        ctx2 = ctx.reshape(B * S, H)

        attn_out = jnp.dot(ctx2.astype(jnp.bfloat16), wo,
                           preferred_element_type=jnp.float32) + bo
        h1 = _layernorm(x2 + attn_out, ln1_g, ln1_b)

        # FFN
        ff = jnp.dot(h1.astype(jnp.bfloat16), w1,
                     preferred_element_type=jnp.float32) + b1
        ff = jax.nn.gelu(ff, approximate=True)
        ff = jnp.dot(ff.astype(jnp.bfloat16), w2,
                     preferred_element_type=jnp.float32) + b2
        h2 = _layernorm(h1 + ff, ln2_g, ln2_b)

        # pooler on [CLS] token + classifier head
        cls = h2.reshape(B, S, H)[:, 0, :]                         # (B, H)
        pooled = jnp.tanh(jnp.dot(cls.astype(jnp.bfloat16), wp,
                                  preferred_element_type=jnp.float32) + bp)
        logits = jnp.dot(pooled.astype(jnp.bfloat16), wc,
                         preferred_element_type=jnp.float32) + bc  # (B, L)

        total = total + ENSEMBLE_WEIGHTS[m] * logits

    out_ref[...] = total


def ensemble_forward_pallas(x_emb, attn_bias, w_slab, v_slab):
    """x_emb: (5,B,S,H) f32; attn_bias: (5,B,S) f32;
    w_slab: (5,64,768) bf16; v_slab: (5,12,128) f32."""
    vmem = pltpu.MemorySpace.VMEM
    return pl.pallas_call(
        ensemble_kernel,
        out_shape=jax.ShapeDtypeStruct((B, L), jnp.float32),
        in_specs=[pl.BlockSpec(memory_space=vmem),   # x_emb
                  pl.BlockSpec(memory_space=vmem),   # attn_bias
                  pl.BlockSpec(memory_space=vmem),   # weight slab
                  pl.BlockSpec(memory_space=vmem)],  # vector slab
        out_specs=pl.BlockSpec(memory_space=vmem),
    )(x_emb, attn_bias, w_slab, v_slab)


# -------------------- parameter init (deterministic, synthetic) ------------
def init_one_model(key):
    ks = jax.random.split(key, 20)
    n = lambda k, shape, s=0.02: (s * jax.random.normal(k, shape)).astype(jnp.float32)
    return {
        'word_emb': n(ks[0], (V, H)),
        'tok_emb': n(ks[1], (NTT, H)),
        'pos_emb': n(ks[2], (NPOS, H)),
        'eln_g': jnp.ones((1, H), jnp.float32),
        'eln_b': jnp.zeros((1, H), jnp.float32),
        'wq': n(ks[3], (H, H)), 'bq': jnp.zeros((1, H), jnp.float32),
        'wk': n(ks[4], (H, H)), 'bk': jnp.zeros((1, H), jnp.float32),
        'wv': n(ks[5], (H, H)), 'bv': jnp.zeros((1, H), jnp.float32),
        'wo': n(ks[6], (H, H)), 'bo': jnp.zeros((1, H), jnp.float32),
        'ln1_g': jnp.ones((1, H), jnp.float32),
        'ln1_b': jnp.zeros((1, H), jnp.float32),
        'w1': n(ks[7], (H, F)), 'b1': jnp.zeros((1, F), jnp.float32),
        'w2': n(ks[8], (F, H)), 'b2': jnp.zeros((1, H), jnp.float32),
        'ln2_g': jnp.ones((1, H), jnp.float32),
        'ln2_b': jnp.zeros((1, H), jnp.float32),
        'wp': n(ks[9], (H, H)), 'bp': jnp.zeros((1, H), jnp.float32),
        'wc': n(ks[10], (H, L)), 'bc': jnp.zeros((1, L), jnp.float32),
    }


def stack_models(key):
    per = [init_one_model(k) for k in jax.random.split(key, N_MODELS)]
    return {name: jnp.stack([p[name] for p in per]) for name in per[0]}


def pack_params(sp):
    """Pack per-model params into 2 contiguous slabs (lane-aligned chunks)."""
    # weight slab: (5, 64, 6*128), bf16
    w_slab = jnp.zeros((N_MODELS, SLAB_ROWS, W_SLAB_W), jnp.float32)
    wqkv = jnp.concatenate([sp['wq'], sp['wk'], sp['wv']], axis=-1)    # (5,H,3H)
    w_slab = w_slab.at[:, :H, 0 * LANE:0 * LANE + 3 * H].set(wqkv)
    w_slab = w_slab.at[:, :H, 1 * LANE:1 * LANE + H].set(sp['wo'])
    w_slab = w_slab.at[:, :H, 2 * LANE:2 * LANE + F].set(sp['w1'])
    w_slab = w_slab.at[:, :F, 3 * LANE:3 * LANE + H].set(sp['w2'])     # (F,H) native
    w_slab = w_slab.at[:, :H, 4 * LANE:4 * LANE + H].set(sp['wp'])
    w_slab = w_slab.at[:, :H, 5 * LANE:5 * LANE + L].set(sp['wc'])
    w_slab = w_slab.astype(jnp.bfloat16)

    # vector slab: (5, 12, 128) f32 — one padded row per bias / LN vector
    v_slab = jnp.zeros((N_MODELS, N_VEC, LANE), jnp.float32)

    def put(vs, row, x, width):
        return vs.at[:, row, :width].set(x.reshape(N_MODELS, width))

    bqkv = jnp.concatenate([sp['bq'], sp['bk'], sp['bv']], axis=-1)    # (5,1,3H)
    v_slab = put(v_slab, 0, sp['eln_g'], H)
    v_slab = put(v_slab, 1, sp['eln_b'], H)
    v_slab = put(v_slab, 2, bqkv, 3 * H)
    v_slab = put(v_slab, 3, sp['bo'], H)
    v_slab = put(v_slab, 4, sp['ln1_g'], H)
    v_slab = put(v_slab, 5, sp['ln1_b'], H)
    v_slab = put(v_slab, 6, sp['b1'], F)
    v_slab = put(v_slab, 7, sp['b2'], H)
    v_slab = put(v_slab, 8, sp['ln2_g'], H)
    v_slab = put(v_slab, 9, sp['ln2_b'], H)
    v_slab = put(v_slab, 10, sp['bp'], H)
    v_slab = put(v_slab, 11, sp['bc'], L)
    return w_slab, v_slab


def embed(sp, m, input_ids, token_type_ids, position_ids):
    """Plain-JAX glue: embedding gathers for model m."""
    we = sp['word_emb'][m][input_ids]          # (B, S, H)
    te = sp['tok_emb'][m][token_type_ids]
    pe = sp['pos_emb'][m][position_ids]
    return we + te + pe


# -------------------- pure-JAX reference --------------------
def reference_forward(sp, x_emb, mask, weights):
    total = jnp.zeros((B, L), jnp.float32)
    for m in range(N_MODELS):
        x = x_emb[m]
        msk = mask[m]
        ln = lambda z, g, b: (z - jnp.mean(z, -1, keepdims=True)) \
            * jax.lax.rsqrt(jnp.var(z, -1, keepdims=True) + LN_EPS) * g + b
        x = ln(x, sp['eln_g'][m], sp['eln_b'][m])
        q = x @ sp['wq'][m] + sp['bq'][m]
        k = x @ sp['wk'][m] + sp['bk'][m]
        v = x @ sp['wv'][m] + sp['bv'][m]
        sc = jnp.einsum('bqh,bkh->bqk', q, k) / math.sqrt(H)
        sc = sc + (1.0 - msk)[:, None, :] * (-1e4)
        attn = jax.nn.softmax(sc, axis=-1)
        ctx = jnp.einsum('bqk,bkh->bqh', attn, v)
        h1 = ln(x + (ctx @ sp['wo'][m] + sp['bo'][m]), sp['ln1_g'][m], sp['ln1_b'][m])
        ff = jax.nn.gelu(h1 @ sp['w1'][m] + sp['b1'][m], approximate=True)
        ff = ff @ sp['w2'][m] + sp['b2'][m]
        h2 = ln(h1 + ff, sp['ln2_g'][m], sp['ln2_b'][m])
        pooled = jnp.tanh(h2[:, 0, :] @ sp['wp'][m] + sp['bp'][m])
        logits = pooled @ sp['wc'][m] + sp['bc'][m]
        total = total + weights[m] * logits
    return total


# -------------------- main --------------------
if __name__ == "__main__":
    key = jax.random.PRNGKey(0)
    kp, kd = jax.random.split(key)
    sp = stack_models(kp)
    w_slab, v_slab = pack_params(sp)

    # deterministic synthetic inputs for the 5 models
    dks = jax.random.split(kd, 20)
    ids = [jax.random.randint(dks[i], (B, S), 0, V) for i in range(5)]
    lens = [jax.random.randint(dks[5 + i], (B,), 3, S + 1) for i in range(5)]
    ams = [(jnp.arange(S)[None, :] < ln_[:, None]).astype(jnp.int32) for ln_ in lens]
    tts = [jax.random.randint(dks[10 + i], (B, S), 0, NTT) for i in range(5)]
    tgt = [jax.random.randint(dks[15 + i], (B, S), 0, 2) for i in range(5)]
    default_pos = jnp.broadcast_to(jnp.arange(S)[None, :], (B, S))

    # reproduce the PyTorch forward's argument wiring exactly:
    #   model1: ids1, am1, tt1,     pos = target_mask1
    #   model2: ids2, am2, tt1(!),  pos = target_mask2
    #   model3: ids3, am3, tt1(!),  pos = target_mask3
    #   model4: ids4, am4, tt4,     pos = default position ids
    #   model5: ids5, am5, tt5,     pos = target_mask2(!)
    wiring = [
        (ids[0], ams[0], tts[0], tgt[0]),
        (ids[1], ams[1], tts[0], tgt[1]),
        (ids[2], ams[2], tts[0], tgt[2]),
        (ids[3], ams[3], tts[3], default_pos),
        (ids[4], ams[4], tts[4], tgt[1]),
    ]

    # TODO(synk): embedding gathers stay in plain-JAX glue (data-dependent
    # gather off the hot path); everything downstream runs in the kernel.
    x_emb = jnp.stack([embed(sp, m, w[0], w[2], w[3])
                       for m, w in enumerate(wiring)])            # (5,B,S,H)
    mask = jnp.stack([w[1] for w in wiring]).astype(jnp.float32)  # (5,B,S)
    attn_bias = (1.0 - mask) * (-1e4)                             # (5,B,S)

    out = ensemble_forward_pallas(x_emb, attn_bias, w_slab, v_slab)
    out = jax.block_until_ready(out)

    ref = reference_forward(sp, x_emb, mask, list(ENSEMBLE_WEIGHTS))
    assert out.shape == (B, L)
    assert jnp.allclose(out, ref, rtol=2e-3, atol=2e-3), (out, ref)

    print("KERNEL_OK")
</pallas_src>

<mosaic_0001>
module attributes {stable_mosaic.version = 11 : i64} {
  func.func @ensemble_kernel(%arg0: memref<5x2x8x32xf32, #tpu.memory_space<vmem>>, %arg1: memref<5x2x8xf32, #tpu.memory_space<vmem>>, %arg2: memref<5x64x768xbf16, #tpu.memory_space<vmem>>, %arg3: memref<5x12x128xf32, #tpu.memory_space<vmem>>, %arg4: memref<2x2xf32, #tpu.memory_space<vmem>>) attributes {dimension_semantics = [], scalar_prefetch = 0 : i64, scratch_operands = 0 : i64, tpu.core_type = #tpu.core_type<tc>} {
    %cst = arith.constant 0.000000e+00 : f32
    %0 = vector.broadcast %cst : f32 to vector<2x2xf32>
    %c0 = arith.constant 0 : index
    %c0_0 = arith.constant 0 : index
    %c0_1 = arith.constant 0 : index
    %1 = vector.load %arg2[%c0, %c0_0, %c0_1] : memref<5x64x768xbf16, #tpu.memory_space<vmem>>, vector<5x64x768xbf16>
    %c0_2 = arith.constant 0 : index
    %c0_3 = arith.constant 0 : index
    %c0_4 = arith.constant 0 : index
    %2 = vector.load %arg3[%c0_2, %c0_3, %c0_4] : memref<5x12x128xf32, #tpu.memory_space<vmem>>, vector<5x12x128xf32>
    %c0_5 = arith.constant 0 : index
    %c0_6 = arith.constant 0 : index
    %c0_7 = arith.constant 0 : index
    %c0_8 = arith.constant 0 : index
    %3 = vector.load %arg0[%c0_5, %c0_6, %c0_7, %c0_8] : memref<5x2x8x32xf32, #tpu.memory_space<vmem>>, vector<1x2x8x32xf32>
    %4 = vector.shape_cast %3 : vector<1x2x8x32xf32> to vector<2x8x32xf32>
    %c0_9 = arith.constant 0 : index
    %c0_10 = arith.constant 0 : index
    %c0_11 = arith.constant 0 : index
    %5 = vector.load %arg1[%c0_9, %c0_10, %c0_11] : memref<5x2x8xf32, #tpu.memory_space<vmem>>, vector<1x2x8xf32>
    %6 = vector.shape_cast %5 : vector<1x2x8xf32> to vector<2x8xf32>
    %7 = vector.extract_strided_slice %1 {offsets = [0, 0, 0], sizes = [1, 32, 96], strides = [1, 1, 1]} : vector<5x64x768xbf16> to vector<1x32x96xbf16>
    %8 = vector.shape_cast %7 : vector<1x32x96xbf16> to vector<32x96xbf16>
    %9 = vector.extract_strided_slice %1 {offsets = [0, 0, 128], sizes = [1, 32, 32], strides = [1, 1, 1]} : vector<5x64x768xbf16> to vector<1x32x32xbf16>
    %10 = vector.shape_cast %9 : vector<1x32x32xbf16> to vector<32x32xbf16>
    %11 = vector.extract_strided_slice %1 {offsets = [0, 0, 256], sizes = [1, 32, 64], strides = [1, 1, 1]} : vector<5x64x768xbf16> to vector<1x32x64xbf16>
    %12 = vector.shape_cast %11 : vector<1x32x64xbf16> to vector<32x64xbf16>
    %13 = vector.extract_strided_slice %1 {offsets = [0, 0, 384], sizes = [1, 64, 32], strides = [1, 1, 1]} : vector<5x64x768xbf16> to vector<1x64x32xbf16>
    %14 = vector.shape_cast %13 : vector<1x64x32xbf16> to vector<64x32xbf16>
    %15 = vector.extract_strided_slice %1 {offsets = [0, 0, 512], sizes = [1, 32, 32], strides = [1, 1, 1]} : vector<5x64x768xbf16> to vector<1x32x32xbf16>
    %16 = vector.shape_cast %15 : vector<1x32x32xbf16> to vector<32x32xbf16>
    %17 = vector.extract_strided_slice %1 {offsets = [0, 0, 640], sizes = [1, 32, 2], strides = [1, 1, 1]} : vector<5x64x768xbf16> to vector<1x32x2xbf16>
    %18 = vector.shape_cast %17 : vector<1x32x2xbf16> to vector<32x2xbf16>
    %19 = vector.extract_strided_slice %2 {offsets = [0, 0, 0], sizes = [1, 1, 32], strides = [1, 1, 1]} : vector<5x12x128xf32> to vector<1x1x32xf32>
    %20 = vector.shape_cast %19 : vector<1x1x32xf32> to vector<1x32xf32>
    %21 = vector.extract_strided_slice %2 {offsets = [0, 1, 0], sizes = [1, 1, 32], strides = [1, 1, 1]} : vector<5x12x128xf32> to vector<1x1x32xf32>
    %22 = vector.shape_cast %21 : vector<1x1x32xf32> to vector<1x32xf32>
    %23 = vector.extract_strided_slice %2 {offsets = [0, 2, 0], sizes = [1, 1, 96], strides = [1, 1, 1]} : vector<5x12x128xf32> to vector<1x1x96xf32>
    %24 = vector.shape_cast %23 : vector<1x1x96xf32> to vector<1x96xf32>
    %25 = vector.extract_strided_slice %2 {offsets = [0, 3, 0], sizes = [1, 1, 32], strides = [1, 1, 1]} : vector<5x12x128xf32> to vector<1x1x32xf32>
    %26 = vector.shape_cast %25 : vector<1x1x32xf32> to vector<1x32xf32>
    %27 = vector.extract_strided_slice %2 {offsets = [0, 4, 0], sizes = [1, 1, 32], strides = [1, 1, 1]} : vector<5x12x128xf32> to vector<1x1x32xf32>
    %28 = vector.shape_cast %27 : vector<1x1x32xf32> to vector<1x32xf32>
    %29 = vector.extract_strided_slice %2 {offsets = [0, 5, 0], sizes = [1, 1, 32], strides = [1, 1, 1]} : vector<5x12x128xf32> to vector<1x1x32xf32>
    %30 = vector.shape_cast %29 : vector<1x1x32xf32> to vector<1x32xf32>
    %31 = vector.extract_strided_slice %2 {offsets = [0, 6, 0], sizes = [1, 1, 64], strides = [1, 1, 1]} : vector<5x12x128xf32> to vector<1x1x64xf32>
    %32 = vector.shape_cast %31 : vector<1x1x64xf32> to vector<1x64xf32>
    %33 = vector.extract_strided_slice %2 {offsets = [0, 7, 0], sizes = [1, 1, 32], strides = [1, 1, 1]} : vector<5x12x128xf32> to vector<1x1x32xf32>
    %34 = vector.shape_cast %33 : vector<1x1x32xf32> to vector<1x32xf32>
    %35 = vector.extract_strided_slice %2 {offsets = [0, 8, 0], sizes = [1, 1, 32], strides = [1, 1, 1]} : vector<5x12x128xf32> to vector<1x1x32xf32>
    %36 = vector.shape_cast %35 : vector<1x1x32xf32> to vector<1x32xf32>
    %37 = vector.extract_strided_slice %2 {offsets = [0, 9, 0], sizes = [1, 1, 32], strides = [1, 1, 1]} : vector<5x12x128xf32> to vector<1x1x32xf32>
    %38 = vector.shape_cast %37 : vector<1x1x32xf32> to vector<1x32xf32>
    %39 = vector.extract_strided_slice %2 {offsets = [0, 10, 0], sizes = [1, 1, 32], strides = [1, 1, 1]} : vector<5x12x128xf32> to vector<1x1x32xf32>
    %40 = vector.shape_cast %39 : vector<1x1x32xf32> to vector<1x32xf32>
    %41 = vector.extract_strided_slice %2 {offsets = [0, 11, 0], sizes = [1, 1, 2], strides = [1, 1, 1]} : vector<5x12x128xf32> to vector<1x1x2xf32>
    %42 = vector.shape_cast %41 : vector<1x1x2xf32> to vector<1x2xf32>
    %43 = vector.shape_cast %4 : vector<2x8x32xf32> to vector<16x32xf32>
    %cst_12 = arith.constant dense<0.000000e+00> : vector<16xf32>
    %44 = vector.multi_reduction <add>, %43, %cst_12 [1] : vector<16x32xf32> to vector<16xf32>
    %45 = vector.shape_cast %44 : vector<16xf32> to vector<16x1xf32>
    %cst_13 = arith.constant 3.200000e+01 : f32
    %46 = vector.broadcast %cst_13 : f32 to vector<16x1xf32>
    %47 = arith.divf %45, %46 : vector<16x1xf32>
    %48 = vector.broadcast %47 : vector<16x1xf32> to vector<16x32xf32>
    %49 = arith.subf %43, %48 : vector<16x32xf32>
    %50 = arith.mulf %49, %49 : vector<16x32xf32>
    %cst_14 = arith.constant dense<0.000000e+00> : vector<16xf32>
    %51 = vector.multi_reduction <add>, %50, %cst_14 [1] : vector<16x32xf32> to vector<16xf32>
    %52 = vector.shape_cast %51 : vector<16xf32> to vector<16x1xf32>
    %cst_15 = arith.constant 3.200000e+01 : f32
    %53 = vector.broadcast %cst_15 : f32 to vector<16x1xf32>
    %54 = arith.divf %52, %53 : vector<16x1xf32>
    %55 = vector.broadcast %47 : vector<16x1xf32> to vector<16x32xf32>
    %56 = arith.subf %43, %55 : vector<16x32xf32>
    %cst_16 = arith.constant 9.99999996E-13 : f32
    %57 = vector.broadcast %cst_16 : f32 to vector<16x1xf32>
    %58 = arith.addf %54, %57 : vector<16x1xf32>
    %59 = math.rsqrt %58 : vector<16x1xf32>
    %60 = vector.broadcast %59 : vector<16x1xf32> to vector<16x32xf32>
    %61 = arith.mulf %56, %60 : vector<16x32xf32>
    %62 = vector.broadcast %20 : vector<1x32xf32> to vector<16x32xf32>
    %63 = arith.mulf %61, %62 : vector<16x32xf32>
    %64 = vector.broadcast %22 : vector<1x32xf32> to vector<16x32xf32>
    %65 = arith.addf %63, %64 : vector<16x32xf32>
    %66 = arith.truncf %65 : vector<16x32xf32> to vector<16x32xbf16>
    %cst_17 = arith.constant dense<0.000000e+00> : vector<16x96xf32>
    %67 = tpu.matmul %66, %8, %cst_17 {dimension_numbers = #tpu.dot_dimension_numbers<[1], [0], [0], [1], [0, 0, 1, 1], [], []>} : vector<16x32xbf16>, vector<32x96xbf16>, vector<16x96xf32> -> vector<16x96xf32>
    %68 = vector.broadcast %24 : vector<1x96xf32> to vector<16x96xf32>
    %69 = arith.addf %67, %68 : vector<16x96xf32>
    %70 = vector.shape_cast %69 : vector<16x96xf32> to vector<2x8x96xf32>
    %71 = vector.extract_strided_slice %70 {offsets = [0, 0, 0], sizes = [2, 8, 32], strides = [1, 1, 1]} : vector<2x8x96xf32> to vector<2x8x32xf32>
    %72 = vector.extract_strided_slice %70 {offsets = [0, 0, 32], sizes = [2, 8, 32], strides = [1, 1, 1]} : vector<2x8x96xf32> to vector<2x8x32xf32>
    %73 = vector.extract_strided_slice %70 {offsets = [0, 0, 64], sizes = [2, 8, 32], strides = [1, 1, 1]} : vector<2x8x96xf32> to vector<2x8x32xf32>
    "tpu.trace_start"() <{level = 10 : i32, message = "bqh,bkh->bqk"}> : () -> ()
    %cst_18 = arith.constant dense<0.000000e+00> : vector<2x8x8xf32>
    %74 = tpu.matmul %71, %72, %cst_18 {dimension_numbers = #tpu.dot_dimension_numbers<[2], [2], [1], [1], [0, 0, 0, 1, 1, 1], [0], [0]>} : vector<2x8x32xf32>, vector<2x8x32xf32>, vector<2x8x8xf32> -> vector<2x8x8xf32>
    "tpu.trace_stop"() : () -> ()
    %cst_19 = arith.constant 0.176776692 : f32
    %75 = vector.broadcast %cst_19 : f32 to vector<2x8x8xf32>
    %76 = arith.mulf %74, %75 : vector<2x8x8xf32>
    %77 = vector.shape_cast %6 : vector<2x8xf32> to vector<2x1x8xf32>
    %78 = vector.broadcast %77 : vector<2x1x8xf32> to vector<2x8x8xf32>
    %79 = arith.addf %76, %78 : vector<2x8x8xf32>
    %cst_20 = arith.constant dense<0xFF800000> : vector<2x8xf32>
    %80 = vector.multi_reduction <maximumf>, %79, %cst_20 [2] : vector<2x8x8xf32> to vector<2x8xf32>
    %81 = vector.shape_cast %80 : vector<2x8xf32> to vector<2x8x1xf32>
    %82 = vector.broadcast %81 : vector<2x8x1xf32> to vector<2x8x8xf32>
    %83 = arith.subf %79, %82 : vector<2x8x8xf32>
    %84 = math.exp %83 : vector<2x8x8xf32>
    %cst_21 = arith.constant dense<0.000000e+00> : vector<2x8xf32>
    %85 = vector.multi_reduction <add>, %84, %cst_21 [2] : vector<2x8x8xf32> to vector<2x8xf32>
    %86 = vector.shape_cast %85 : vector<2x8xf32> to vector<2x8x1xf32>
    %87 = tpu.reciprocal %86 {approx = true} : vector<2x8x1xf32> -> vector<2x8x1xf32>
    %88 = vector.broadcast %87 : vector<2x8x1xf32> to vector<2x8x8xf32>
    %89 = arith.mulf %84, %88 : vector<2x8x8xf32>
    "tpu.trace_start"() <{level = 10 : i32, message = "bqk,bkh->bqh"}> : () -> ()
    %cst_22 = arith.constant dense<0.000000e+00> : vector<2x8x32xf32>
    %90 = tpu.matmul %89, %73, %cst_22 {dimension_numbers = #tpu.dot_dimension_numbers<[2], [1], [1], [2], [0, 0, 0, 1, 1, 2], [0], [0]>} : vector<2x8x8xf32>, vector<2x8x32xf32>, vector<2x8x32xf32> -> vector<2x8x32xf32>
    "tpu.trace_stop"() : () -> ()
    %91 = vector.shape_cast %90 : vector<2x8x32xf32> to vector<16x32xf32>
    %92 = arith.truncf %91 : vector<16x32xf32> to vector<16x32xbf16>
    %cst_23 = arith.constant dense<0.000000e+00> : vector<16x32xf32>
    %93 = tpu.matmul %92, %10, %cst_23 {dimension_numbers = #tpu.dot_dimension_numbers<[1], [0], [0], [1], [0, 0, 1, 1], [], []>} : vector<16x32xbf16>, vector<32x32xbf16>, vector<16x32xf32> -> vector<16x32xf32>
    %94 = vector.broadcast %26 : vector<1x32xf32> to vector<16x32xf32>
    %95 = arith.addf %93, %94 : vector<16x32xf32>
    %96 = arith.addf %65, %95 : vector<16x32xf32>
    %cst_24 = arith.constant dense<0.000000e+00> : vector<16xf32>
    %97 = vector.multi_reduction <add>, %96, %cst_24 [1] : vector<16x32xf32> to vector<16xf32>
    %98 = vector.shape_cast %97 : vector<16xf32> to vector<16x1xf32>
    %cst_25 = arith.constant 3.200000e+01 : f32
    %99 = vector.broadcast %cst_25 : f32 to vector<16x1xf32>
    %100 = arith.divf %98, %99 : vector<16x1xf32>
    %101 = vector.broadcast %100 : vector<16x1xf32> to vector<16x32xf32>
    %102 = arith.subf %96, %101 : vector<16x32xf32>
    %103 = arith.mulf %102, %102 : vector<16x32xf32>
    %cst_26 = arith.constant dense<0.000000e+00> : vector<16xf32>
    %104 = vector.multi_reduction <add>, %103, %cst_26 [1] : vector<16x32xf32> to vector<16xf32>
    %105 = vector.shape_cast %104 : vector<16xf32> to vector<16x1xf32>
    %cst_27 = arith.constant 3.200000e+01 : f32
    %106 = vector.broadcast %cst_27 : f32 to vector<16x1xf32>
    %107 = arith.divf %105, %106 : vector<16x1xf32>
    %108 = vector.broadcast %100 : vector<16x1xf32> to vector<16x32xf32>
    %109 = arith.subf %96, %108 : vector<16x32xf32>
    %cst_28 = arith.constant 9.99999996E-13 : f32
    %110 = vector.broadcast %cst_28 : f32 to vector<16x1xf32>
    %111 = arith.addf %107, %110 : vector<16x1xf32>
    %112 = math.rsqrt %111 : vector<16x1xf32>
    %113 = vector.broadcast %112 : vector<16x1xf32> to vector<16x32xf32>
    %114 = arith.mulf %109, %113 : vector<16x32xf32>
    %115 = vector.broadcast %28 : vector<1x32xf32> to vector<16x32xf32>
    %116 = arith.mulf %114, %115 : vector<16x32xf32>
    %117 = vector.broadcast %30 : vector<1x32xf32> to vector<16x32xf32>
    %118 = arith.addf %116, %117 : vector<16x32xf32>
    %119 = arith.truncf %118 : vector<16x32xf32> to vector<16x32xbf16>
    %cst_29 = arith.constant dense<0.000000e+00> : vector<16x64xf32>
    %120 = tpu.matmul %119, %12, %cst_29 {dimension_numbers = #tpu.dot_dimension_numbers<[1], [0], [0], [1], [0, 0, 1, 1], [], []>} : vector<16x32xbf16>, vector<32x64xbf16>, vector<16x64xf32> -> vector<16x64xf32>
    %121 = vector.broadcast %32 : vector<1x64xf32> to vector<16x64xf32>
    %122 = arith.addf %120, %121 : vector<16x64xf32>
    %123 = arith.mulf %122, %122 : vector<16x64xf32>
    %124 = arith.mulf %122, %123 : vector<16x64xf32>
    %cst_30 = arith.constant 4.471500e-02 : f32
    %125 = vector.broadcast %cst_30 : f32 to vector<16x64xf32>
    %126 = arith.mulf %125, %124 : vector<16x64xf32>
    %127 = arith.addf %122, %126 : vector<16x64xf32>
    %cst_31 = arith.constant 0.797884583 : f32
    %128 = vector.broadcast %cst_31 : f32 to vector<16x64xf32>
    %129 = arith.mulf %128, %127 : vector<16x64xf32>
    %130 = math.tanh %129 : vector<16x64xf32>
    %cst_32 = arith.constant 1.000000e+00 : f32
    %131 = vector.broadcast %cst_32 : f32 to vector<16x64xf32>
    %132 = arith.addf %131, %130 : vector<16x64xf32>
    %cst_33 = arith.constant 5.000000e-01 : f32
    %133 = vector.broadcast %cst_33 : f32 to vector<16x64xf32>
    %134 = arith.mulf %133, %132 : vector<16x64xf32>
    %135 = arith.mulf %122, %134 : vector<16x64xf32>
    %136 = arith.truncf %135 : vector<16x64xf32> to vector<16x64xbf16>
    %cst_34 = arith.constant dense<0.000000e+00> : vector<16x32xf32>
    %137 = tpu.matmul %136, %14, %cst_34 {dimension_numbers = #tpu.dot_dimension_numbers<[1], [0], [0], [1], [0, 0, 1, 1], [], []>} : vector<16x64xbf16>, vector<64x32xbf16>, vector<16x32xf32> -> vector<16x32xf32>
    %138 = vector.broadcast %34 : vector<1x32xf32> to vector<16x32xf32>
    %139 = arith.addf %137, %138 : vector<16x32xf32>
    %140 = arith.addf %118, %139 : vector<16x32xf32>
    %cst_35 = arith.constant dense<0.000000e+00> : vector<16xf32>
    %141 = vector.multi_reduction <add>, %140, %cst_35 [1] : vector<16x32xf32> to vector<16xf32>
    %142 = vector.shape_cast %141 : vector<16xf32> to vector<16x1xf32>
    %cst_36 = arith.constant 3.200000e+01 : f32
    %143 = vector.broadcast %cst_36 : f32 to vector<16x1xf32>
    %144 = arith.divf %142, %143 : vector<16x1xf32>
    %145 = vector.broadcast %144 : vector<16x1xf32> to vector<16x32xf32>
    %146 = arith.subf %140, %145 : vector<16x32xf32>
    %147 = arith.mulf %146, %146 : vector<16x32xf32>
    %cst_37 = arith.constant dense<0.000000e+00> : vector<16xf32>
    %148 = vector.multi_reduction <add>, %147, %cst_37 [1] : vector<16x32xf32> to vector<16xf32>
    %149 = vector.shape_cast %148 : vector<16xf32> to vector<16x1xf32>
    %cst_38 = arith.constant 3.200000e+01 : f32
    %150 = vector.broadcast %cst_38 : f32 to vector<16x1xf32>
    %151 = arith.divf %149, %150 : vector<16x1xf32>
    %152 = vector.broadcast %144 : vector<16x1xf32> to vector<16x32xf32>
    %153 = arith.subf %140, %152 : vector<16x32xf32>
    %cst_39 = arith.constant 9.99999996E-13 : f32
    %154 = vector.broadcast %cst_39 : f32 to vector<16x1xf32>
    %155 = arith.addf %151, %154 : vector<16x1xf32>
    %156 = math.rsqrt %155 : vector<16x1xf32>
    %157 = vector.broadcast %156 : vector<16x1xf32> to vector<16x32xf32>
    %158 = arith.mulf %153, %157 : vector<16x32xf32>
    %159 = vector.broadcast %36 : vector<1x32xf32> to vector<16x32xf32>
    %160 = arith.mulf %158, %159 : vector<16x32xf32>
    %161 = vector.broadcast %38 : vector<1x32xf32> to vector<16x32xf32>
    %162 = arith.addf %160, %161 : vector<16x32xf32>
    %163 = vector.shape_cast %162 : vector<16x32xf32> to vector<2x8x32xf32>
    %164 = vector.extract_strided_slice %163 {offsets = [0, 0, 0], sizes = [2, 1, 32], strides = [1, 1, 1]} : vector<2x8x32xf32> to vector<2x1x32xf32>
    %165 = vector.shape_cast %164 : vector<2x1x32xf32> to vector<2x32xf32>
    %166 = arith.truncf %165 : vector<2x32xf32> to vector<2x32xbf16>
    %cst_40 = arith.constant dense<0.000000e+00> : vector<2x32xf32>
    %167 = tpu.matmul %166, %16, %cst_40 {dimension_numbers = #tpu.dot_dimension_numbers<[1], [0], [0], [1], [0, 0, 1, 1], [], []>} : vector<2x32xbf16>, vector<32x32xbf16>, vector<2x32xf32> -> vector<2x32xf32>
    %168 = vector.broadcast %40 : vector<1x32xf32> to vector<2x32xf32>
    %169 = arith.addf %167, %168 : vector<2x32xf32>
    %170 = math.tanh %169 : vector<2x32xf32>
    %171 = arith.truncf %170 : vector<2x32xf32> to vector<2x32xbf16>
    %cst_41 = arith.constant dense<0.000000e+00> : vector<2x2xf32>
    %172 = tpu.matmul %171, %18, %cst_41 {dimension_numbers = #tpu.dot_dimension_numbers<[1], [0], [0], [1], [0, 0, 1, 1], [], []>} : vector<2x32xbf16>, vector<32x2xbf16>, vector<2x2xf32> -> vector<2x2xf32>
    %173 = vector.broadcast %42 : vector<1x2xf32> to vector<2x2xf32>
    %174 = arith.addf %172, %173 : vector<2x2xf32>
    %cst_42 = arith.constant 2.500000e-01 : f32
    %175 = vector.broadcast %cst_42 : f32 to vector<2x2xf32>
    %176 = arith.mulf %175, %174 : vector<2x2xf32>
    %177 = arith.addf %0, %176 : vector<2x2xf32>
    %c1 = arith.constant 1 : index
    %c0_43 = arith.constant 0 : index
    %c0_44 = arith.constant 0 : index
    %c0_45 = arith.constant 0 : index
    %178 = vector.load %arg0[%c1, %c0_43, %c0_44, %c0_45] : memref<5x2x8x32xf32, #tpu.memory_space<vmem>>, vector<1x2x8x32xf32>
    %179 = vector.shape_cast %178 : vector<1x2x8x32xf32> to vector<2x8x32xf32>
    %c1_46 = arith.constant 1 : index
    %c0_47 = arith.constant 0 : index
    %c0_48 = arith.constant 0 : index
    %180 = vector.load %arg1[%c1_46, %c0_47, %c0_48] : memref<5x2x8xf32, #tpu.memory_space<vmem>>, vector<1x2x8xf32>
    %181 = vector.shape_cast %180 : vector<1x2x8xf32> to vector<2x8xf32>
    %182 = vector.extract_strided_slice %1 {offsets = [1, 0, 0], sizes = [1, 32, 96], strides = [1, 1, 1]} : vector<5x64x768xbf16> to vector<1x32x96xbf16>
    %183 = vector.shape_cast %182 : vector<1x32x96xbf16> to vector<32x96xbf16>
    %184 = vector.extract_strided_slice %1 {offsets = [1, 0, 128], sizes = [1, 32, 32], strides = [1, 1, 1]} : vector<5x64x768xbf16> to vector<1x32x32xbf16>
    %185 = vector.shape_cast %184 : vector<1x32x32xbf16> to vector<32x32xbf16>
    %186 = vector.extract_strided_slice %1 {offsets = [1, 0, 256], sizes = [1, 32, 64], strides = [1, 1, 1]} : vector<5x64x768xbf16> to vector<1x32x64xbf16>
    %187 = vector.shape_cast %186 : vector<1x32x64xbf16> to vector<32x64xbf16>
    %188 = vector.extract_strided_slice %1 {offsets = [1, 0, 384], sizes = [1, 64, 32], strides = [1, 1, 1]} : vector<5x64x768xbf16> to vector<1x64x32xbf16>
    %189 = vector.shape_cast %188 : vector<1x64x32xbf16> to vector<64x32xbf16>
    %190 = vector.extract_strided_slice %1 {offsets = [1, 0, 512], sizes = [1, 32, 32], strides = [1, 1, 1]} : vector<5x64x768xbf16> to vector<1x32x32xbf16>
    %191 = vector.shape_cast %190 : vector<1x32x32xbf16> to vector<32x32xbf16>
    %192 = vector.extract_strided_slice %1 {offsets = [1, 0, 640], sizes = [1, 32, 2], strides = [1, 1, 1]} : vector<5x64x768xbf16> to vector<1x32x2xbf16>
    %193 = vector.shape_cast %192 : vector<1x32x2xbf16> to vector<32x2xbf16>
    %194 = vector.extract_strided_slice %2 {offsets = [1, 0, 0], sizes = [1, 1, 32], strides = [1, 1, 1]} : vector<5x12x128xf32> to vector<1x1x32xf32>
    %195 = vector.shape_cast %194 : vector<1x1x32xf32> to vector<1x32xf32>
    %196 = vector.extract_strided_slice %2 {offsets = [1, 1, 0], sizes = [1, 1, 32], strides = [1, 1, 1]} : vector<5x12x128xf32> to vector<1x1x32xf32>
    %197 = vector.shape_cast %196 : vector<1x1x32xf32> to vector<1x32xf32>
    %198 = vector.extract_strided_slice %2 {offsets = [1, 2, 0], sizes = [1, 1, 96], strides = [1, 1, 1]} : vector<5x12x128xf32> to vector<1x1x96xf32>
    %199 = vector.shape_cast %198 : vector<1x1x96xf32> to vector<1x96xf32>
    %200 = vector.extract_strided_slice %2 {offsets = [1, 3, 0], sizes = [1, 1, 32], strides = [1, 1, 1]} : vector<5x12x128xf32> to vector<1x1x32xf32>
    %201 = vector.shape_cast %200 : vector<1x1x32xf32> to vector<1x32xf32>
    %202 = vector.extract_strided_slice %2 {offsets = [1, 4, 0], sizes = [1, 1, 32], strides = [1, 1, 1]} : vector<5x12x128xf32> to vector<1x1x32xf32>
    %203 = vector.shape_cast %202 : vector<1x1x32xf32> to vector<1x32xf32>
    %204 = vector.extract_strided_slice %2 {offsets = [1, 5, 0], sizes = [1, 1, 32], strides = [1, 1, 1]} : vector<5x12x128xf32> to vector<1x1x32xf32>
    %205 = vector.shape_cast %204 : vector<1x1x32xf32> to vector<1x32xf32>
    %206 = vector.extract_strided_slice %2 {offsets = [1, 6, 0], sizes = [1, 1, 64], strides = [1, 1, 1]} : vector<5x12x128xf32> to vector<1x1x64xf32>
    %207 = vector.shape_cast %206 : vector<1x1x64xf32> to vector<1x64xf32>
    %208 = vector.extract_strided_slice %2 {offsets = [1, 7, 0], sizes = [1, 1, 32], strides = [1, 1, 1]} : vector<5x12x128xf32> to vector<1x1x32xf32>
    %209 = vector.shape_cast %208 : vector<1x1x32xf32> to vector<1x32xf32>
    %210 = vector.extract_strided_slice %2 {offsets = [1, 8, 0], sizes = [1, 1, 32], strides = [1, 1, 1]} : vector<5x12x128xf32> to vector<1x1x32xf32>
    %211 = vector.shape_cast %210 : vector<1x1x32xf32> to vector<1x32xf32>
    %212 = vector.extract_strided_slice %2 {offsets = [1, 9, 0], sizes = [1, 1, 32], strides = [1, 1, 1]} : vector<5x12x128xf32> to vector<1x1x32xf32>
    %213 = vector.shape_cast %212 : vector<1x1x32xf32> to vector<1x32xf32>
    %214 = vector.extract_strided_slice %2 {offsets = [1, 10, 0], sizes = [1, 1, 32], strides = [1, 1, 1]} : vector<5x12x128xf32> to vector<1x1x32xf32>
    %215 = vector.shape_cast %214 : vector<1x1x32xf32> to vector<1x32xf32>
    %216 = vector.extract_strided_slice %2 {offsets = [1, 11, 0], sizes = [1, 1, 2], strides = [1, 1, 1]} : vector<5x12x128xf32> to vector<1x1x2xf32>
    %217 = vector.shape_cast %216 : vector<1x1x2xf32> to vector<1x2xf32>
    %218 = vector.shape_cast %179 : vector<2x8x32xf32> to vector<16x32xf32>
    %cst_49 = arith.constant dense<0.000000e+00> : vector<16xf32>
    %219 = vector.multi_reduction <add>, %218, %cst_49 [1] : vector<16x32xf32> to vector<16xf32>
    %220 = vector.shape_cast %219 : vector<16xf32> to vector<16x1xf32>
    %cst_50 = arith.constant 3.200000e+01 : f32
    %221 = vector.broadcast %cst_50 : f32 to vector<16x1xf32>
    %222 = arith.divf %220, %221 : vector<16x1xf32>
    %223 = vector.broadcast %222 : vector<16x1xf32> to vector<16x32xf32>
    %224 = arith.subf %218, %223 : vector<16x32xf32>
    %225 = arith.mulf %224, %224 : vector<16x32xf32>
    %cst_51 = arith.constant dense<0.000000e+00> : vector<16xf32>
    %226 = vector.multi_reduction <add>, %225, %cst_51 [1] : vector<16x32xf32> to vector<16xf32>
    %227 = vector.shape_cast %226 : vector<16xf32> to vector<16x1xf32>
    %cst_52 = arith.constant 3.200000e+01 : f32
    %228 = vector.broadcast %cst_52 : f32 to vector<16x1xf32>
    %229 = arith.divf %227, %228 : vector<16x1xf32>
    %230 = vector.broadcast %222 : vector<16x1xf32> to vector<16x32xf32>
    %231 = arith.subf %218, %230 : vector<16x32xf32>
    %cst_53 = arith.constant 9.99999996E-13 : f32
    %232 = vector.broadcast %cst_53 : f32 to vector<16x1xf32>
    %233 = arith.addf %229, %232 : vector<16x1xf32>
    %234 = math.rsqrt %233 : vector<16x1xf32>
    %235 = vector.broadcast %234 : vector<16x1xf32> to vector<16x32xf32>
    %236 = arith.mulf %231, %235 : vector<16x32xf32>
    %237 = vector.broadcast %195 : vector<1x32xf32> to vector<16x32xf32>
    %238 = arith.mulf %236, %237 : vector<16x32xf32>
    %239 = vector.broadcast %197 : vector<1x32xf32> to vector<16x32xf32>
    %240 = arith.addf %238, %239 : vector<16x32xf32>
    %241 = arith.truncf %240 : vector<16x32xf32> to vector<16x32xbf16>
    %cst_54 = arith.constant dense<0.000000e+00> : vector<16x96xf32>
    %242 = tpu.matmul %241, %183, %cst_54 {dimension_numbers = #tpu.dot_dimension_numbers<[1], [0], [0], [1], [0, 0, 1, 1], [], []>} : vector<16x32xbf16>, vector<32x96xbf16>, vector<16x96xf32> -> vector<16x96xf32>
    %243 = vector.broadcast %199 : vector<1x96xf32> to vector<16x96xf32>
    %244 = arith.addf %242, %243 : vector<16x96xf32>
    %245 = vector.shape_cast %244 : vector<16x96xf32> to vector<2x8x96xf32>
    %246 = vector.extract_strided_slice %245 {offsets = [0, 0, 0], sizes = [2, 8, 32], strides = [1, 1, 1]} : vector<2x8x96xf32> to vector<2x8x32xf32>
    %247 = vector.extract_strided_slice %245 {offsets = [0, 0, 32], sizes = [2, 8, 32], strides = [1, 1, 1]} : vector<2x8x96xf32> to vector<2x8x32xf32>
    %248 = vector.extract_strided_slice %245 {offsets = [0, 0, 64], sizes = [2, 8, 32], strides = [1, 1, 1]} : vector<2x8x96xf32> to vector<2x8x32xf32>
    "tpu.trace_start"() <{level = 10 : i32, message = "bqh,bkh->bqk"}> : () -> ()
    %cst_55 = arith.constant dense<0.000000e+00> : vector<2x8x8xf32>
    %249 = tpu.matmul %246, %247, %cst_55 {dimension_numbers = #tpu.dot_dimension_numbers<[2], [2], [1], [1], [0, 0, 0, 1, 1, 1], [0], [0]>} : vector<2x8x32xf32>, vector<2x8x32xf32>, vector<2x8x8xf32> -> vector<2x8x8xf32>
    "tpu.trace_stop"() : () -> ()
    %cst_56 = arith.constant 0.176776692 : f32
    %250 = vector.broadcast %cst_56 : f32 to vector<2x8x8xf32>
    %251 = arith.mulf %249, %250 : vector<2x8x8xf32>
    %252 = vector.shape_cast %181 : vector<2x8xf32> to vector<2x1x8xf32>
    %253 = vector.broadcast %252 : vector<2x1x8xf32> to vector<2x8x8xf32>
    %254 = arith.addf %251, %253 : vector<2x8x8xf32>
    %cst_57 = arith.constant dense<0xFF800000> : vector<2x8xf32>
    %255 = vector.multi_reduction <maximumf>, %254, %cst_57 [2] : vector<2x8x8xf32> to vector<2x8xf32>
    %256 = vector.shape_cast %255 : vector<2x8xf32> to vector<2x8x1xf32>
    %257 = vector.broadcast %256 : vector<2x8x1xf32> to vector<2x8x8xf32>
    %258 = arith.subf %254, %257 : vector<2x8x8xf32>
    %259 = math.exp %258 : vector<2x8x8xf32>
    %cst_58 = arith.constant dense<0.000000e+00> : vector<2x8xf32>
    %260 = vector.multi_reduction <add>, %259, %cst_58 [2] : vector<2x8x8xf32> to vector<2x8xf32>
    %261 = vector.shape_cast %260 : vector<2x8xf32> to vector<2x8x1xf32>
    %262 = tpu.reciprocal %261 {approx = true} : vector<2x8x1xf32> -> vector<2x8x1xf32>
    %263 = vector.broadcast %262 : vector<2x8x1xf32> to vector<2x8x8xf32>
    %264 = arith.mulf %259, %263 : vector<2x8x8xf32>
    "tpu.trace_start"() <{level = 10 : i32, message = "bqk,bkh->bqh"}> : () -> ()
    %cst_59 = arith.constant dense<0.000000e+00> : vector<2x8x32xf32>
    %265 = tpu.matmul %264, %248, %cst_59 {dimension_numbers = #tpu.dot_dimension_numbers<[2], [1], [1], [2], [0, 0, 0, 1, 1, 2], [0], [0]>} : vector<2x8x8xf32>, vector<2x8x32xf32>, vector<2x8x32xf32> -> vector<2x8x32xf32>
    "tpu.trace_stop"() : () -> ()
    %266 = vector.shape_cast %265 : vector<2x8x32xf32> to vector<16x32xf32>
    %267 = arith.truncf %266 : vector<16x32xf32> to vector<16x32xbf16>
    %cst_60 = arith.constant dense<0.000000e+00> : vector<16x32xf32>
    %268 = tpu.matmul %267, %185, %cst_60 {dimension_numbers = #tpu.dot_dimension_numbers<[1], [0], [0], [1], [0, 0, 1, 1], [], []>} : vector<16x32xbf16>, vector<32x32xbf16>, vector<16x32xf32> -> vector<16x32xf32>
    %269 = vector.broadcast %201 : vector<1x32xf32> to vector<16x32xf32>
    %270 = arith.addf %268, %269 : vector<16x32xf32>
    %271 = arith.addf %240, %270 : vector<16x32xf32>
    %cst_61 = arith.constant dense<0.000000e+00> : vector<16xf32>
    %272 = vector.multi_reduction <add>, %271, %cst_61 [1] : vector<16x32xf32> to vector<16xf32>
    %273 = vector.shape_cast %272 : vector<16xf32> to vector<16x1xf32>
    %cst_62 = arith.constant 3.200000e+01 : f32
    %274 = vector.broadcast %cst_62 : f32 to vector<16x1xf32>
    %275 = arith.divf %273, %274 : vector<16x1xf32>
    %276 = vector.broadcast %275 : vector<16x1xf32> to vector<16x32xf32>
    %277 = arith.subf %271, %276 : vector<16x32xf32>
    %278 = arith.mulf %277, %277 : vector<16x32xf32>
    %cst_63 = arith.constant dense<0.000000e+00> : vector<16xf32>
    %279 = vector.multi_reduction <add>, %278, %cst_63 [1] : vector<16x32xf32> to vector<16xf32>
    %280 = vector.shape_cast %279 : vector<16xf32> to vector<16x1xf32>
    %cst_64 = arith.constant 3.200000e+01 : f32
    %281 = vector.broadcast %cst_64 : f32 to vector<16x1xf32>
    %282 = arith.divf %280, %281 : vector<16x1xf32>
    %283 = vector.broadcast %275 : vector<16x1xf32> to vector<16x32xf32>
    %284 = arith.subf %271, %283 : vector<16x32xf32>
    %cst_65 = arith.constant 9.99999996E-13 : f32
    %285 = vector.broadcast %cst_65 : f32 to vector<16x1xf32>
    %286 = arith.addf %282, %285 : vector<16x1xf32>
    %287 = math.rsqrt %286 : vector<16x1xf32>
    %288 = vector.broadcast %287 : vector<16x1xf32> to vector<16x32xf32>
    %289 = arith.mulf %284, %288 : vector<16x32xf32>
    %290 = vector.broadcast %203 : vector<1x32xf32> to vector<16x32xf32>
    %291 = arith.mulf %289, %290 : vector<16x32xf32>
    %292 = vector.broadcast %205 : vector<1x32xf32> to vector<16x32xf32>
    %293 = arith.addf %291, %292 : vector<16x32xf32>
    %294 = arith.truncf %293 : vector<16x32xf32> to vector<16x32xbf16>
    %cst_66 = arith.constant dense<0.000000e+00> : vector<16x64xf32>
    %295 = tpu.matmul %294, %187, %cst_66 {dimension_numbers = #tpu.dot_dimension_numbers<[1], [0], [0], [1], [0, 0, 1, 1], [], []>} : vector<16x32xbf16>, vector<32x64xbf16>, vector<16x64xf32> -> vector<16x64xf32>
    %296 = vector.broadcast %207 : vector<1x64xf32> to vector<16x64xf32>
    %297 = arith.addf %295, %296 : vector<16x64xf32>
    %298 = arith.mulf %297, %297 : vector<16x64xf32>
    %299 = arith.mulf %297, %298 : vector<16x64xf32>
    %cst_67 = arith.constant 4.471500e-02 : f32
    %300 = vector.broadcast %cst_67 : f32 to vector<16x64xf32>
    %301 = arith.mulf %300, %299 : vector<16x64xf32>
    %302 = arith.addf %297, %301 : vector<16x64xf32>
    %cst_68 = arith.constant 0.797884583 : f32
    %303 = vector.broadcast %cst_68 : f32 to vector<16x64xf32>
    %304 = arith.mulf %303, %302 : vector<16x64xf32>
    %305 = math.tanh %304 : vector<16x64xf32>
    %cst_69 = arith.constant 1.000000e+00 : f32
    %306 = vector.broadcast %cst_69 : f32 to vector<16x64xf32>
    %307 = arith.addf %306, %305 : vector<16x64xf32>
    %cst_70 = arith.constant 5.000000e-01 : f32
    %308 = vector.broadcast %cst_70 : f32 to vector<16x64xf32>
    %309 = arith.mulf %308, %307 : vector<16x64xf32>
    %310 = arith.mulf %297, %309 : vector<16x64xf32>
    %311 = arith.truncf %310 : vector<16x64xf32> to vector<16x64xbf16>
    %cst_71 = arith.constant dense<0.000000e+00> : vector<16x32xf32>
    %312 = tpu.matmul %311, %189, %cst_71 {dimension_numbers = #tpu.dot_dimension_numbers<[1], [0], [0], [1], [0, 0, 1, 1], [], []>} : vector<16x64xbf16>, vector<64x32xbf16>, vector<16x32xf32> -> vector<16x32xf32>
    %313 = vector.broadcast %209 : vector<1x32xf32> to vector<16x32xf32>
    %314 = arith.addf %312, %313 : vector<16x32xf32>
    %315 = arith.addf %293, %314 : vector<16x32xf32>
    %cst_72 = arith.constant dense<0.000000e+00> : vector<16xf32>
    %316 = vector.multi_reduction <add>, %315, %cst_72 [1] : vector<16x32xf32> to vector<16xf32>
    %317 = vector.shape_cast %316 : vector<16xf32> to vector<16x1xf32>
    %cst_73 = arith.constant 3.200000e+01 : f32
    %318 = vector.broadcast %cst_73 : f32 to vector<16x1xf32>
    %319 = arith.divf %317, %318 : vector<16x1xf32>
    %320 = vector.broadcast %319 : vector<16x1xf32> to vector<16x32xf32>
    %321 = arith.subf %315, %320 : vector<16x32xf32>
    %322 = arith.mulf %321, %321 : vector<16x32xf32>
    %cst_74 = arith.constant dense<0.000000e+00> : vector<16xf32>
    %323 = vector.multi_reduction <add>, %322, %cst_74 [1] : vector<16x32xf32> to vector<16xf32>
    %324 = vector.shape_cast %323 : vector<16xf32> to vector<16x1xf32>
    %cst_75 = arith.constant 3.200000e+01 : f32
    %325 = vector.broadcast %cst_75 : f32 to vector<16x1xf32>
    %326 = arith.divf %324, %325 : vector<16x1xf32>
    %327 = vector.broadcast %319 : vector<16x1xf32> to vector<16x32xf32>
    %328 = arith.subf %315, %327 : vector<16x32xf32>
    %cst_76 = arith.constant 9.99999996E-13 : f32
    %329 = vector.broadcast %cst_76 : f32 to vector<16x1xf32>
    %330 = arith.addf %326, %329 : vector<16x1xf32>
    %331 = math.rsqrt %330 : vector<16x1xf32>
    %332 = vector.broadcast %331 : vector<16x1xf32> to vector<16x32xf32>
    %333 = arith.mulf %328, %332 : vector<16x32xf32>
    %334 = vector.broadcast %211 : vector<1x32xf32> to vector<16x32xf32>
    %335 = arith.mulf %333, %334 : vector<16x32xf32>
    %336 = vector.broadcast %213 : vector<1x32xf32> to vector<16x32xf32>
    %337 = arith.addf %335, %336 : vector<16x32xf32>
    %338 = vector.shape_cast %337 : vector<16x32xf32> to vector<2x8x32xf32>
    %339 = vector.extract_strided_slice %338 {offsets = [0, 0, 0], sizes = [2, 1, 32], strides = [1, 1, 1]} : vector<2x8x32xf32> to vector<2x1x32xf32>
    %340 = vector.shape_cast %339 : vector<2x1x32xf32> to vector<2x32xf32>
    %341 = arith.truncf %340 : vector<2x32xf32> to vector<2x32xbf16>
    %cst_77 = arith.constant dense<0.000000e+00> : vector<2x32xf32>
    %342 = tpu.matmul %341, %191, %cst_77 {dimension_numbers = #tpu.dot_dimension_numbers<[1], [0], [0], [1], [0, 0, 1, 1], [], []>} : vector<2x32xbf16>, vector<32x32xbf16>, vector<2x32xf32> -> vector<2x32xf32>
    %343 = vector.broadcast %215 : vector<1x32xf32> to vector<2x32xf32>
    %344 = arith.addf %342, %343 : vector<2x32xf32>
    %345 = math.tanh %344 : vector<2x32xf32>
    %346 = arith.truncf %345 : vector<2x32xf32> to vector<2x32xbf16>
    %cst_78 = arith.constant dense<0.000000e+00> : vector<2x2xf32>
    %347 = tpu.matmul %346, %193, %cst_78 {dimension_numbers = #tpu.dot_dimension_numbers<[1], [0], [0], [1], [0, 0, 1, 1], [], []>} : vector<2x32xbf16>, vector<32x2xbf16>, vector<2x2xf32> -> vector<2x2xf32>
    %348 = vector.broadcast %217 : vector<1x2xf32> to vector<2x2xf32>
    %349 = arith.addf %347, %348 : vector<2x2xf32>
    %cst_79 = arith.constant 1.250000e-01 : f32
    %350 = vector.broadcast %cst_79 : f32 to vector<2x2xf32>
    %351 = arith.mulf %350, %349 : vector<2x2xf32>
    %352 = arith.addf %177, %351 : vector<2x2xf32>
    %c2 = arith.constant 2 : index
    %c0_80 = arith.constant 0 : index
    %c0_81 = arith.constant 0 : index
    %c0_82 = arith.constant 0 : index
    %353 = vector.load %arg0[%c2, %c0_80, %c0_81, %c0_82] : memref<5x2x8x32xf32, #tpu.memory_space<vmem>>, vector<1x2x8x32xf32>
    %354 = vector.shape_cast %353 : vector<1x2x8x32xf32> to vector<2x8x32xf32>
    %c2_83 = arith.constant 2 : index
    %c0_84 = arith.constant 0 : index
    %c0_85 = arith.constant 0 : index
    %355 = vector.load %arg1[%c2_83, %c0_84, %c0_85] : memref<5x2x8xf32, #tpu.memory_space<vmem>>, vector<1x2x8xf32>
    %356 = vector.shape_cast %355 : vector<1x2x8xf32> to vector<2x8xf32>
    %357 = vector.extract_strided_slice %1 {offsets = [2, 0, 0], sizes = [1, 32, 96], strides = [1, 1, 1]} : vector<5x64x768xbf16> to vector<1x32x96xbf16>
    %358 = vector.shape_cast %357 : vector<1x32x96xbf16> to vector<32x96xbf16>
    %359 = vector.extract_strided_slice %1 {offsets = [2, 0, 128], sizes = [1, 32, 32], strides = [1, 1, 1]} : vector<5x64x768xbf16> to vector<1x32x32xbf16>
    %360 = vector.shape_cast %359 : vector<1x32x32xbf16> to vector<32x32xbf16>
    %361 = vector.extract_strided_slice %1 {offsets = [2, 0, 256], sizes = [1, 32, 64], strides = [1, 1, 1]} : vector<5x64x768xbf16> to vector<1x32x64xbf16>
    %362 = vector.shape_cast %361 : vector<1x32x64xbf16> to vector<32x64xbf16>
    %363 = vector.extract_strided_slice %1 {offsets = [2, 0, 384], sizes = [1, 64, 32], strides = [1, 1, 1]} : vector<5x64x768xbf16> to vector<1x64x32xbf16>
    %364 = vector.shape_cast %363 : vector<1x64x32xbf16> to vector<64x32xbf16>
    %365 = vector.extract_strided_slice %1 {offsets = [2, 0, 512], sizes = [1, 32, 32], strides = [1, 1, 1]} : vector<5x64x768xbf16> to vector<1x32x32xbf16>
    %366 = vector.shape_cast %365 : vector<1x32x32xbf16> to vector<32x32xbf16>
    %367 = vector.extract_strided_slice %1 {offsets = [2, 0, 640], sizes = [1, 32, 2], strides = [1, 1, 1]} : vector<5x64x768xbf16> to vector<1x32x2xbf16>
    %368 = vector.shape_cast %367 : vector<1x32x2xbf16> to vector<32x2xbf16>
    %369 = vector.extract_strided_slice %2 {offsets = [2, 0, 0], sizes = [1, 1, 32], strides = [1, 1, 1]} : vector<5x12x128xf32> to vector<1x1x32xf32>
    %370 = vector.shape_cast %369 : vector<1x1x32xf32> to vector<1x32xf32>
    %371 = vector.extract_strided_slice %2 {offsets = [2, 1, 0], sizes = [1, 1, 32], strides = [1, 1, 1]} : vector<5x12x128xf32> to vector<1x1x32xf32>
    %372 = vector.shape_cast %371 : vector<1x1x32xf32> to vector<1x32xf32>
    %373 = vector.extract_strided_slice %2 {offsets = [2, 2, 0], sizes = [1, 1, 96], strides = [1, 1, 1]} : vector<5x12x128xf32> to vector<1x1x96xf32>
    %374 = vector.shape_cast %373 : vector<1x1x96xf32> to vector<1x96xf32>
    %375 = vector.extract_strided_slice %2 {offsets = [2, 3, 0], sizes = [1, 1, 32], strides = [1, 1, 1]} : vector<5x12x128xf32> to vector<1x1x32xf32>
    %376 = vector.shape_cast %375 : vector<1x1x32xf32> to vector<1x32xf32>
    %377 = vector.extract_strided_slice %2 {offsets = [2, 4, 0], sizes = [1, 1, 32], strides = [1, 1, 1]} : vector<5x12x128xf32> to vector<1x1x32xf32>
    %378 = vector.shape_cast %377 : vector<1x1x32xf32> to vector<1x32xf32>
    %379 = vector.extract_strided_slice %2 {offsets = [2, 5, 0], sizes = [1, 1, 32], strides = [1, 1, 1]} : vector<5x12x128xf32> to vector<1x1x32xf32>
    %380 = vector.shape_cast %379 : vector<1x1x32xf32> to vector<1x32xf32>
    %381 = vector.extract_strided_slice %2 {offsets = [2, 6, 0], sizes = [1, 1, 64], strides = [1, 1, 1]} : vector<5x12x128xf32> to vector<1x1x64xf32>
    %382 = vector.shape_cast %381 : vector<1x1x64xf32> to vector<1x64xf32>
    %383 = vector.extract_strided_slice %2 {offsets = [2, 7, 0], sizes = [1, 1, 32], strides = [1, 1, 1]} : vector<5x12x128xf32> to vector<1x1x32xf32>
    %384 = vector.shape_cast %383 : vector<1x1x32xf32> to vector<1x32xf32>
    %385 = vector.extract_strided_slice %2 {offsets = [2, 8, 0], sizes = [1, 1, 32], strides = [1, 1, 1]} : vector<5x12x128xf32> to vector<1x1x32xf32>
    %386 = vector.shape_cast %385 : vector<1x1x32xf32> to vector<1x32xf32>
    %387 = vector.extract_strided_slice %2 {offsets = [2, 9, 0], sizes = [1, 1, 32], strides = [1, 1, 1]} : vector<5x12x128xf32> to vector<1x1x32xf32>
    %388 = vector.shape_cast %387 : vector<1x1x32xf32> to vector<1x32xf32>
    %389 = vector.extract_strided_slice %2 {offsets = [2, 10, 0], sizes = [1, 1, 32], strides = [1, 1, 1]} : vector<5x12x128xf32> to vector<1x1x32xf32>
    %390 = vector.shape_cast %389 : vector<1x1x32xf32> to vector<1x32xf32>
    %391 = vector.extract_strided_slice %2 {offsets = [2, 11, 0], sizes = [1, 1, 2], strides = [1, 1, 1]} : vector<5x12x128xf32> to vector<1x1x2xf32>
    %392 = vector.shape_cast %391 : vector<1x1x2xf32> to vector<1x2xf32>
    %393 = vector.shape_cast %354 : vector<2x8x32xf32> to vector<16x32xf32>
    %cst_86 = arith.constant dense<0.000000e+00> : vector<16xf32>
    %394 = vector.multi_reduction <add>, %393, %cst_86 [1] : vector<16x32xf32> to vector<16xf32>
    %395 = vector.shape_cast %394 : vector<16xf32> to vector<16x1xf32>
    %cst_87 = arith.constant 3.200000e+01 : f32
    %396 = vector.broadcast %cst_87 : f32 to vector<16x1xf32>
    %397 = arith.divf %395, %396 : vector<16x1xf32>
    %398 = vector.broadcast %397 : vector<16x1xf32> to vector<16x32xf32>
    %399 = arith.subf %393, %398 : vector<16x32xf32>
    %400 = arith.mulf %399, %399 : vector<16x32xf32>
    %cst_88 = arith.constant dense<0.000000e+00> : vector<16xf32>
    %401 = vector.multi_reduction <add>, %400, %cst_88 [1] : vector<16x32xf32> to vector<16xf32>
    %402 = vector.shape_cast %401 : vector<16xf32> to vector<16x1xf32>
    %cst_89 = arith.constant 3.200000e+01 : f32
    %403 = vector.broadcast %cst_89 : f32 to vector<16x1xf32>
    %404 = arith.divf %402, %403 : vector<16x1xf32>
    %405 = vector.broadcast %397 : vector<16x1xf32> to vector<16x32xf32>
    %406 = arith.subf %393, %405 : vector<16x32xf32>
    %cst_90 = arith.constant 9.99999996E-13 : f32
    %407 = vector.broadcast %cst_90 : f32 to vector<16x1xf32>
    %408 = arith.addf %404, %407 : vector<16x1xf32>
    %409 = math.rsqrt %408 : vector<16x1xf32>
    %410 = vector.broadcast %409 : vector<16x1xf32> to vector<16x32xf32>
    %411 = arith.mulf %406, %410 : vector<16x32xf32>
    %412 = vector.broadcast %370 : vector<1x32xf32> to vector<16x32xf32>
    %413 = arith.mulf %411, %412 : vector<16x32xf32>
    %414 = vector.broadcast %372 : vector<1x32xf32> to vector<16x32xf32>
    %415 = arith.addf %413, %414 : vector<16x32xf32>
    %416 = arith.truncf %415 : vector<16x32xf32> to vector<16x32xbf16>
    %cst_91 = arith.constant dense<0.000000e+00> : vector<16x96xf32>
    %417 = tpu.matmul %416, %358, %cst_91 {dimension_numbers = #tpu.dot_dimension_numbers<[1], [0], [0], [1], [0, 0, 1, 1], [], []>} : vector<16x32xbf16>, vector<32x96xbf16>, vector<16x96xf32> -> vector<16x96xf32>
    %418 = vector.broadcast %374 : vector<1x96xf32> to vector<16x96xf32>
    %419 = arith.addf %417, %418 : vector<16x96xf32>
    %420 = vector.shape_cast %419 : vector<16x96xf32> to vector<2x8x96xf32>
    %421 = vector.extract_strided_slice %420 {offsets = [0, 0, 0], sizes = [2, 8, 32], strides = [1, 1, 1]} : vector<2x8x96xf32> to vector<2x8x32xf32>
    %422 = vector.extract_strided_slice %420 {offsets = [0, 0, 32], sizes = [2, 8, 32], strides = [1, 1, 1]} : vector<2x8x96xf32> to vector<2x8x32xf32>
    %423 = vector.extract_strided_slice %420 {offsets = [0, 0, 64], sizes = [2, 8, 32], strides = [1, 1, 1]} : vector<2x8x96xf32> to vector<2x8x32xf32>
    "tpu.trace_start"() <{level = 10 : i32, message = "bqh,bkh->bqk"}> : () -> ()
    %cst_92 = arith.constant dense<0.000000e+00> : vector<2x8x8xf32>
    %424 = tpu.matmul %421, %422, %cst_92 {dimension_numbers = #tpu.dot_dimension_numbers<[2], [2], [1], [1], [0, 0, 0, 1, 1, 1], [0], [0]>} : vector<2x8x32xf32>, vector<2x8x32xf32>, vector<2x8x8xf32> -> vector<2x8x8xf32>
    "tpu.trace_stop"() : () -> ()
    %cst_93 = arith.constant 0.176776692 : f32
    %425 = vector.broadcast %cst_93 : f32 to vector<2x8x8xf32>
    %426 = arith.mulf %424, %425 : vector<2x8x8xf32>
    %427 = vector.shape_cast %356 : vector<2x8xf32> to vector<2x1x8xf32>
    %428 = vector.broadcast %427 : vector<2x1x8xf32> to vector<2x8x8xf32>
    %429 = arith.addf %426, %428 : vector<2x8x8xf32>
    %cst_94 = arith.constant dense<0xFF800000> : vector<2x8xf32>
    %430 = vector.multi_reduction <maximumf>, %429, %cst_94 [2] : vector<2x8x8xf32> to vector<2x8xf32>
    %431 = vector.shape_cast %430 : vector<2x8xf32> to vector<2x8x1xf32>
    %432 = vector.broadcast %431 : vector<2x8x1xf32> to vector<2x8x8xf32>
    %433 = arith.subf %429, %432 : vector<2x8x8xf32>
    %434 = math.exp %433 : vector<2x8x8xf32>
    %cst_95 = arith.constant dense<0.000000e+00> : vector<2x8xf32>
    %435 = vector.multi_reduction <add>, %434, %cst_95 [2] : vector<2x8x8xf32> to vector<2x8xf32>
    %436 = vector.shape_cast %435 : vector<2x8xf32> to vector<2x8x1xf32>
    %437 = tpu.reciprocal %436 {approx = true} : vector<2x8x1xf32> -> vector<2x8x1xf32>
    %438 = vector.broadcast %437 : vector<2x8x1xf32> to vector<2x8x8xf32>
    %439 = arith.mulf %434, %438 : vector<2x8x8xf32>
    "tpu.trace_start"() <{level = 10 : i32, message = "bqk,bkh->bqh"}> : () -> ()
    %cst_96 = arith.constant dense<0.000000e+00> : vector<2x8x32xf32>
    %440 = tpu.matmul %439, %423, %cst_96 {dimension_numbers = #tpu.dot_dimension_numbers<[2], [1], [1], [2], [0, 0, 0, 1, 1, 2], [0], [0]>} : vector<2x8x8xf32>, vector<2x8x32xf32>, vector<2x8x32xf32> -> vector<2x8x32xf32>
    "tpu.trace_stop"() : () -> ()
    %441 = vector.shape_cast %440 : vector<2x8x32xf32> to vector<16x32xf32>
    %442 = arith.truncf %441 : vector<16x32xf32> to vector<16x32xbf16>
    %cst_97 = arith.constant dense<0.000000e+00> : vector<16x32xf32>
    %443 = tpu.matmul %442, %360, %cst_97 {dimension_numbers = #tpu.dot_dimension_numbers<[1], [0], [0], [1], [0, 0, 1, 1], [], []>} : vector<16x32xbf16>, vector<32x32xbf16>, vector<16x32xf32> -> vector<16x32xf32>
    %444 = vector.broadcast %376 : vector<1x32xf32> to vector<16x32xf32>
    %445 = arith.addf %443, %444 : vector<16x32xf32>
    %446 = arith.addf %415, %445 : vector<16x32xf32>
    %cst_98 = arith.constant dense<0.000000e+00> : vector<16xf32>
    %447 = vector.multi_reduction <add>, %446, %cst_98 [1] : vector<16x32xf32> to vector<16xf32>
    %448 = vector.shape_cast %447 : vector<16xf32> to vector<16x1xf32>
    %cst_99 = arith.constant 3.200000e+01 : f32
    %449 = vector.broadcast %cst_99 : f32 to vector<16x1xf32>
    %450 = arith.divf %448, %449 : vector<16x1xf32>
    %451 = vector.broadcast %450 : vector<16x1xf32> to vector<16x32xf32>
    %452 = arith.subf %446, %451 : vector<16x32xf32>
    %453 = arith.mulf %452, %452 : vector<16x32xf32>
    %cst_100 = arith.constant dense<0.000000e+00> : vector<16xf32>
    %454 = vector.multi_reduction <add>, %453, %cst_100 [1] : vector<16x32xf32> to vector<16xf32>
    %455 = vector.shape_cast %454 : vector<16xf32> to vector<16x1xf32>
    %cst_101 = arith.constant 3.200000e+01 : f32
    %456 = vector.broadcast %cst_101 : f32 to vector<16x1xf32>
    %457 = arith.divf %455, %456 : vector<16x1xf32>
    %458 = vector.broadcast %450 : vector<16x1xf32> to vector<16x32xf32>
    %459 = arith.subf %446, %458 : vector<16x32xf32>
    %cst_102 = arith.constant 9.99999996E-13 : f32
    %460 = vector.broadcast %cst_102 : f32 to vector<16x1xf32>
    %461 = arith.addf %457, %460 : vector<16x1xf32>
    %462 = math.rsqrt %461 : vector<16x1xf32>
    %463 = vector.broadcast %462 : vector<16x1xf32> to vector<16x32xf32>
    %464 = arith.mulf %459, %463 : vector<16x32xf32>
    %465 = vector.broadcast %378 : vector<1x32xf32> to vector<16x32xf32>
    %466 = arith.mulf %464, %465 : vector<16x32xf32>
    %467 = vector.broadcast %380 : vector<1x32xf32> to vector<16x32xf32>
    %468 = arith.addf %466, %467 : vector<16x32xf32>
    %469 = arith.truncf %468 : vector<16x32xf32> to vector<16x32xbf16>
    %cst_103 = arith.constant dense<0.000000e+00> : vector<16x64xf32>
    %470 = tpu.matmul %469, %362, %cst_103 {dimension_numbers = #tpu.dot_dimension_numbers<[1], [0], [0], [1], [0, 0, 1, 1], [], []>} : vector<16x32xbf16>, vector<32x64xbf16>, vector<16x64xf32> -> vector<16x64xf32>
    %471 = vector.broadcast %382 : vector<1x64xf32> to vector<16x64xf32>
    %472 = arith.addf %470, %471 : vector<16x64xf32>
    %473 = arith.mulf %472, %472 : vector<16x64xf32>
    %474 = arith.mulf %472, %473 : vector<16x64xf32>
    %cst_104 = arith.constant 4.471500e-02 : f32
    %475 = vector.broadcast %cst_104 : f32 to vector<16x64xf32>
    %476 = arith.mulf %475, %474 : vector<16x64xf32>
    %477 = arith.addf %472, %476 : vector<16x64xf32>
    %cst_105 = arith.constant 0.797884583 : f32
    %478 = vector.broadcast %cst_105 : f32 to vector<16x64xf32>
    %479 = arith.mulf %478, %477 : vector<16x64xf32>
    %480 = math.tanh %479 : vector<16x64xf32>
    %cst_106 = arith.constant 1.000000e+00 : f32
    %481 = vector.broadcast %cst_106 : f32 to vector<16x64xf32>
    %482 = arith.addf %481, %480 : vector<16x64xf32>
    %cst_107 = arith.constant 5.000000e-01 : f32
    %483 = vector.broadcast %cst_107 : f32 to vector<16x64xf32>
    %484 = arith.mulf %483, %482 : vector<16x64xf32>
    %485 = arith.mulf %472, %484 : vector<16x64xf32>
    %486 = arith.truncf %485 : vector<16x64xf32> to vector<16x64xbf16>
    %cst_108 = arith.constant dense<0.000000e+00> : vector<16x32xf32>
    %487 = tpu.matmul %486, %364, %cst_108 {dimension_numbers = #tpu.dot_dimension_numbers<[1], [0], [0], [1], [0, 0, 1, 1], [], []>} : vector<16x64xbf16>, vector<64x32xbf16>, vector<16x32xf32> -> vector<16x32xf32>
    %488 = vector.broadcast %384 : vector<1x32xf32> to vector<16x32xf32>
    %489 = arith.addf %487, %488 : vector<16x32xf32>
    %490 = arith.addf %468, %489 : vector<16x32xf32>
    %cst_109 = arith.constant dense<0.000000e+00> : vector<16xf32>
    %491 = vector.multi_reduction <add>, %490, %cst_109 [1] : vector<16x32xf32> to vector<16xf32>
    %492 = vector.shape_cast %491 : vector<16xf32> to vector<16x1xf32>
    %cst_110 = arith.constant 3.200000e+01 : f32
    %493 = vector.broadcast %cst_110 : f32 to vector<16x1xf32>
    %494 = arith.divf %492, %493 : vector<16x1xf32>
    %495 = vector.broadcast %494 : vector<16x1xf32> to vector<16x32xf32>
    %496 = arith.subf %490, %495 : vector<16x32xf32>
    %497 = arith.mulf %496, %496 : vector<16x32xf32>
    %cst_111 = arith.constant dense<0.000000e+00> : vector<16xf32>
    %498 = vector.multi_reduction <add>, %497, %cst_111 [1] : vector<16x32xf32> to vector<16xf32>
    %499 = vector.shape_cast %498 : vector<16xf32> to vector<16x1xf32>
    %cst_112 = arith.constant 3.200000e+01 : f32
    %500 = vector.broadcast %cst_112 : f32 to vector<16x1xf32>
    %501 = arith.divf %499, %500 : vector<16x1xf32>
    %502 = vector.broadcast %494 : vector<16x1xf32> to vector<16x32xf32>
    %503 = arith.subf %490, %502 : vector<16x32xf32>
    %cst_113 = arith.constant 9.99999996E-13 : f32
    %504 = vector.broadcast %cst_113 : f32 to vector<16x1xf32>
    %505 = arith.addf %501, %504 : vector<16x1xf32>
    %506 = math.rsqrt %505 : vector<16x1xf32>
    %507 = vector.broadcast %506 : vector<16x1xf32> to vector<16x32xf32>
    %508 = arith.mulf %503, %507 : vector<16x32xf32>
    %509 = vector.broadcast %386 : vector<1x32xf32> to vector<16x32xf32>
    %510 = arith.mulf %508, %509 : vector<16x32xf32>
    %511 = vector.broadcast %388 : vector<1x32xf32> to vector<16x32xf32>
    %512 = arith.addf %510, %511 : vector<16x32xf32>
    %513 = vector.shape_cast %512 : vector<16x32xf32> to vector<2x8x32xf32>
    %514 = vector.extract_strided_slice %513 {offsets = [0, 0, 0], sizes = [2, 1, 32], strides = [1, 1, 1]} : vector<2x8x32xf32> to vector<2x1x32xf32>
    %515 = vector.shape_cast %514 : vector<2x1x32xf32> to vector<2x32xf32>
    %516 = arith.truncf %515 : vector<2x32xf32> to vector<2x32xbf16>
    %cst_114 = arith.constant dense<0.000000e+00> : vector<2x32xf32>
    %517 = tpu.matmul %516, %366, %cst_114 {dimension_numbers = #tpu.dot_dimension_numbers<[1], [0], [0], [1], [0, 0, 1, 1], [], []>} : vector<2x32xbf16>, vector<32x32xbf16>, vector<2x32xf32> -> vector<2x32xf32>
    %518 = vector.broadcast %390 : vector<1x32xf32> to vector<2x32xf32>
    %519 = arith.addf %517, %518 : vector<2x32xf32>
    %520 = math.tanh %519 : vector<2x32xf32>
    %521 = arith.truncf %520 : vector<2x32xf32> to vector<2x32xbf16>
    %cst_115 = arith.constant dense<0.000000e+00> : vector<2x2xf32>
    %522 = tpu.matmul %521, %368, %cst_115 {dimension_numbers = #tpu.dot_dimension_numbers<[1], [0], [0], [1], [0, 0, 1, 1], [], []>} : vector<2x32xbf16>, vector<32x2xbf16>, vector<2x2xf32> -> vector<2x2xf32>
    %523 = vector.broadcast %392 : vector<1x2xf32> to vector<2x2xf32>
    %524 = arith.addf %522, %523 : vector<2x2xf32>
    %cst_116 = arith.constant 1.500000e-01 : f32
    %525 = vector.broadcast %cst_116 : f32 to vector<2x2xf32>
    %526 = arith.mulf %525, %524 : vector<2x2xf32>
    %527 = arith.addf %352, %526 : vector<2x2xf32>
    %c3 = arith.constant 3 : index
    %c0_117 = arith.constant 0 : index
    %c0_118 = arith.constant 0 : index
    %c0_119 = arith.constant 0 : index
    %528 = vector.load %arg0[%c3, %c0_117, %c0_118, %c0_119] : memref<5x2x8x32xf32, #tpu.memory_space<vmem>>, vector<1x2x8x32xf32>
    %529 = vector.shape_cast %528 : vector<1x2x8x32xf32> to vector<2x8x32xf32>
    %c3_120 = arith.constant 3 : index
    %c0_121 = arith.constant 0 : index
    %c0_122 = arith.constant 0 : index
    %530 = vector.load %arg1[%c3_120, %c0_121, %c0_122] : memref<5x2x8xf32, #tpu.memory_space<vmem>>, vector<1x2x8xf32>
    %531 = vector.shape_cast %530 : vector<1x2x8xf32> to vector<2x8xf32>
    %532 = vector.extract_strided_slice %1 {offsets = [3, 0, 0], sizes = [1, 32, 96], strides = [1, 1, 1]} : vector<5x64x768xbf16> to vector<1x32x96xbf16>
    %533 = vector.shape_cast %532 : vector<1x32x96xbf16> to vector<32x96xbf16>
    %534 = vector.extract_strided_slice %1 {offsets = [3, 0, 128], sizes = [1, 32, 32], strides = [1, 1, 1]} : vector<5x64x768xbf16> to vector<1x32x32xbf16>
    %535 = vector.shape_cast %534 : vector<1x32x32xbf16> to vector<32x32xbf16>
    %536 = vector.extract_strided_slice %1 {offsets = [3, 0, 256], sizes = [1, 32, 64], strides = [1, 1, 1]} : vector<5x64x768xbf16> to vector<1x32x64xbf16>
    %537 = vector.shape_cast %536 : vector<1x32x64xbf16> to vector<32x64xbf16>
    %538 = vector.extract_strided_slice %1 {offsets = [3, 0, 384], sizes = [1, 64, 32], strides = [1, 1, 1]} : vector<5x64x768xbf16> to vector<1x64x32xbf16>
    %539 = vector.shape_cast %538 : vector<1x64x32xbf16> to vector<64x32xbf16>
    %540 = vector.extract_strided_slice %1 {offsets = [3, 0, 512], sizes = [1, 32, 32], strides = [1, 1, 1]} : vector<5x64x768xbf16> to vector<1x32x32xbf16>
    %541 = vector.shape_cast %540 : vector<1x32x32xbf16> to vector<32x32xbf16>
    %542 = vector.extract_strided_slice %1 {offsets = [3, 0, 640], sizes = [1, 32, 2], strides = [1, 1, 1]} : vector<5x64x768xbf16> to vector<1x32x2xbf16>
    %543 = vector.shape_cast %542 : vector<1x32x2xbf16> to vector<32x2xbf16>
    %544 = vector.extract_strided_slice %2 {offsets = [3, 0, 0], sizes = [1, 1, 32], strides = [1, 1, 1]} : vector<5x12x128xf32> to vector<1x1x32xf32>
    %545 = vector.shape_cast %544 : vector<1x1x32xf32> to vector<1x32xf32>
    %546 = vector.extract_strided_slice %2 {offsets = [3, 1, 0], sizes = [1, 1, 32], strides = [1, 1, 1]} : vector<5x12x128xf32> to vector<1x1x32xf32>
    %547 = vector.shape_cast %546 : vector<1x1x32xf32> to vector<1x32xf32>
    %548 = vector.extract_strided_slice %2 {offsets = [3, 2, 0], sizes = [1, 1, 96], strides = [1, 1, 1]} : vector<5x12x128xf32> to vector<1x1x96xf32>
    %549 = vector.shape_cast %548 : vector<1x1x96xf32> to vector<1x96xf32>
    %550 = vector.extract_strided_slice %2 {offsets = [3, 3, 0], sizes = [1, 1, 32], strides = [1, 1, 1]} : vector<5x12x128xf32> to vector<1x1x32xf32>
    %551 = vector.shape_cast %550 : vector<1x1x32xf32> to vector<1x32xf32>
    %552 = vector.extract_strided_slice %2 {offsets = [3, 4, 0], sizes = [1, 1, 32], strides = [1, 1, 1]} : vector<5x12x128xf32> to vector<1x1x32xf32>
    %553 = vector.shape_cast %552 : vector<1x1x32xf32> to vector<1x32xf32>
    %554 = vector.extract_strided_slice %2 {offsets = [3, 5, 0], sizes = [1, 1, 32], strides = [1, 1, 1]} : vector<5x12x128xf32> to vector<1x1x32xf32>
    %555 = vector.shape_cast %554 : vector<1x1x32xf32> to vector<1x32xf32>
    %556 = vector.extract_strided_slice %2 {offsets = [3, 6, 0], sizes = [1, 1, 64], strides = [1, 1, 1]} : vector<5x12x128xf32> to vector<1x1x64xf32>
    %557 = vector.shape_cast %556 : vector<1x1x64xf32> to vector<1x64xf32>
    %558 = vector.extract_strided_slice %2 {offsets = [3, 7, 0], sizes = [1, 1, 32], strides = [1, 1, 1]} : vector<5x12x128xf32> to vector<1x1x32xf32>
    %559 = vector.shape_cast %558 : vector<1x1x32xf32> to vector<1x32xf32>
    %560 = vector.extract_strided_slice %2 {offsets = [3, 8, 0], sizes = [1, 1, 32], strides = [1, 1, 1]} : vector<5x12x128xf32> to vector<1x1x32xf32>
    %561 = vector.shape_cast %560 : vector<1x1x32xf32> to vector<1x32xf32>
    %562 = vector.extract_strided_slice %2 {offsets = [3, 9, 0], sizes = [1, 1, 32], strides = [1, 1, 1]} : vector<5x12x128xf32> to vector<1x1x32xf32>
    %563 = vector.shape_cast %562 : vector<1x1x32xf32> to vector<1x32xf32>
    %564 = vector.extract_strided_slice %2 {offsets = [3, 10, 0], sizes = [1, 1, 32], strides = [1, 1, 1]} : vector<5x12x128xf32> to vector<1x1x32xf32>
    %565 = vector.shape_cast %564 : vector<1x1x32xf32> to vector<1x32xf32>
    %566 = vector.extract_strided_slice %2 {offsets = [3, 11, 0], sizes = [1, 1, 2], strides = [1, 1, 1]} : vector<5x12x128xf32> to vector<1x1x2xf32>
    %567 = vector.shape_cast %566 : vector<1x1x2xf32> to vector<1x2xf32>
    %568 = vector.shape_cast %529 : vector<2x8x32xf32> to vector<16x32xf32>
    %cst_123 = arith.constant dense<0.000000e+00> : vector<16xf32>
    %569 = vector.multi_reduction <add>, %568, %cst_123 [1] : vector<16x32xf32> to vector<16xf32>
    %570 = vector.shape_cast %569 : vector<16xf32> to vector<16x1xf32>
    %cst_124 = arith.constant 3.200000e+01 : f32
    %571 = vector.broadcast %cst_124 : f32 to vector<16x1xf32>
    %572 = arith.divf %570, %571 : vector<16x1xf32>
    %573 = vector.broadcast %572 : vector<16x1xf32> to vector<16x32xf32>
    %574 = arith.subf %568, %573 : vector<16x32xf32>
    %575 = arith.mulf %574, %574 : vector<16x32xf32>
    %cst_125 = arith.constant dense<0.000000e+00> : vector<16xf32>
    %576 = vector.multi_reduction <add>, %575, %cst_125 [1] : vector<16x32xf32> to vector<16xf32>
    %577 = vector.shape_cast %576 : vector<16xf32> to vector<16x1xf32>
    %cst_126 = arith.constant 3.200000e+01 : f32
    %578 = vector.broadcast %cst_126 : f32 to vector<16x1xf32>
    %579 = arith.divf %577, %578 : vector<16x1xf32>
    %580 = vector.broadcast %572 : vector<16x1xf32> to vector<16x32xf32>
    %581 = arith.subf %568, %580 : vector<16x32xf32>
    %cst_127 = arith.constant 9.99999996E-13 : f32
    %582 = vector.broadcast %cst_127 : f32 to vector<16x1xf32>
    %583 = arith.addf %579, %582 : vector<16x1xf32>
    %584 = math.rsqrt %583 : vector<16x1xf32>
    %585 = vector.broadcast %584 : vector<16x1xf32> to vector<16x32xf32>
    %586 = arith.mulf %581, %585 : vector<16x32xf32>
    %587 = vector.broadcast %545 : vector<1x32xf32> to vector<16x32xf32>
    %588 = arith.mulf %586, %587 : vector<16x32xf32>
    %589 = vector.broadcast %547 : vector<1x32xf32> to vector<16x32xf32>
    %590 = arith.addf %588, %589 : vector<16x32xf32>
    %591 = arith.truncf %590 : vector<16x32xf32> to vector<16x32xbf16>
    %cst_128 = arith.constant dense<0.000000e+00> : vector<16x96xf32>
    %592 = tpu.matmul %591, %533, %cst_128 {dimension_numbers = #tpu.dot_dimension_numbers<[1], [0], [0], [1], [0, 0, 1, 1], [], []>} : vector<16x32xbf16>, vector<32x96xbf16>, vector<16x96xf32> -> vector<16x96xf32>
    %593 = vector.broadcast %549 : vector<1x96xf32> to vector<16x96xf32>
    %594 = arith.addf %592, %593 : vector<16x96xf32>
    %595 = vector.shape_cast %594 : vector<16x96xf32> to vector<2x8x96xf32>
    %596 = vector.extract_strided_slice %595 {offsets = [0, 0, 0], sizes = [2, 8, 32], strides = [1, 1, 1]} : vector<2x8x96xf32> to vector<2x8x32xf32>
    %597 = vector.extract_strided_slice %595 {offsets = [0, 0, 32], sizes = [2, 8, 32], strides = [1, 1, 1]} : vector<2x8x96xf32> to vector<2x8x32xf32>
    %598 = vector.extract_strided_slice %595 {offsets = [0, 0, 64], sizes = [2, 8, 32], strides = [1, 1, 1]} : vector<2x8x96xf32> to vector<2x8x32xf32>
    "tpu.trace_start"() <{level = 10 : i32, message = "bqh,bkh->bqk"}> : () -> ()
    %cst_129 = arith.constant dense<0.000000e+00> : vector<2x8x8xf32>
    %599 = tpu.matmul %596, %597, %cst_129 {dimension_numbers = #tpu.dot_dimension_numbers<[2], [2], [1], [1], [0, 0, 0, 1, 1, 1], [0], [0]>} : vector<2x8x32xf32>, vector<2x8x32xf32>, vector<2x8x8xf32> -> vector<2x8x8xf32>
    "tpu.trace_stop"() : () -> ()
    %cst_130 = arith.constant 0.176776692 : f32
    %600 = vector.broadcast %cst_130 : f32 to vector<2x8x8xf32>
    %601 = arith.mulf %599, %600 : vector<2x8x8xf32>
    %602 = vector.shape_cast %531 : vector<2x8xf32> to vector<2x1x8xf32>
    %603 = vector.broadcast %602 : vector<2x1x8xf32> to vector<2x8x8xf32>
    %604 = arith.addf %601, %603 : vector<2x8x8xf32>
    %cst_131 = arith.constant dense<0xFF800000> : vector<2x8xf32>
    %605 = vector.multi_reduction <maximumf>, %604, %cst_131 [2] : vector<2x8x8xf32> to vector<2x8xf32>
    %606 = vector.shape_cast %605 : vector<2x8xf32> to vector<2x8x1xf32>
    %607 = vector.broadcast %606 : vector<2x8x1xf32> to vector<2x8x8xf32>
    %608 = arith.subf %604, %607 : vector<2x8x8xf32>
    %609 = math.exp %608 : vector<2x8x8xf32>
    %cst_132 = arith.constant dense<0.000000e+00> : vector<2x8xf32>
    %610 = vector.multi_reduction <add>, %609, %cst_132 [2] : vector<2x8x8xf32> to vector<2x8xf32>
    %611 = vector.shape_cast %610 : vector<2x8xf32> to vector<2x8x1xf32>
    %612 = tpu.reciprocal %611 {approx = true} : vector<2x8x1xf32> -> vector<2x8x1xf32>
    %613 = vector.broadcast %612 : vector<2x8x1xf32> to vector<2x8x8xf32>
    %614 = arith.mulf %609, %613 : vector<2x8x8xf32>
    "tpu.trace_start"() <{level = 10 : i32, message = "bqk,bkh->bqh"}> : () -> ()
    %cst_133 = arith.constant dense<0.000000e+00> : vector<2x8x32xf32>
    %615 = tpu.matmul %614, %598, %cst_133 {dimension_numbers = #tpu.dot_dimension_numbers<[2], [1], [1], [2], [0, 0, 0, 1, 1, 2], [0], [0]>} : vector<2x8x8xf32>, vector<2x8x32xf32>, vector<2x8x32xf32> -> vector<2x8x32xf32>
    "tpu.trace_stop"() : () -> ()
    %616 = vector.shape_cast %615 : vector<2x8x32xf32> to vector<16x32xf32>
    %617 = arith.truncf %616 : vector<16x32xf32> to vector<16x32xbf16>
    %cst_134 = arith.constant dense<0.000000e+00> : vector<16x32xf32>
    %618 = tpu.matmul %617, %535, %cst_134 {dimension_numbers = #tpu.dot_dimension_numbers<[1], [0], [0], [1], [0, 0, 1, 1], [], []>} : vector<16x32xbf16>, vector<32x32xbf16>, vector<16x32xf32> -> vector<16x32xf32>
    %619 = vector.broadcast %551 : vector<1x32xf32> to vector<16x32xf32>
    %620 = arith.addf %618, %619 : vector<16x32xf32>
    %621 = arith.addf %590, %620 : vector<16x32xf32>
    %cst_135 = arith.constant dense<0.000000e+00> : vector<16xf32>
    %622 = vector.multi_reduction <add>, %621, %cst_135 [1] : vector<16x32xf32> to vector<16xf32>
    %623 = vector.shape_cast %622 : vector<16xf32> to vector<16x1xf32>
    %cst_136 = arith.constant 3.200000e+01 : f32
    %624 = vector.broadcast %cst_136 : f32 to vector<16x1xf32>
    %625 = arith.divf %623, %624 : vector<16x1xf32>
    %626 = vector.broadcast %625 : vector<16x1xf32> to vector<16x32xf32>
    %627 = arith.subf %621, %626 : vector<16x32xf32>
    %628 = arith.mulf %627, %627 : vector<16x32xf32>
    %cst_137 = arith.constant dense<0.000000e+00> : vector<16xf32>
    %629 = vector.multi_reduction <add>, %628, %cst_137 [1] : vector<16x32xf32> to vector<16xf32>
    %630 = vector.shape_cast %629 : vector<16xf32> to vector<16x1xf32>
    %cst_138 = arith.constant 3.200000e+01 : f32
    %631 = vector.broadcast %cst_138 : f32 to vector<16x1xf32>
    %632 = arith.divf %630, %631 : vector<16x1xf32>
    %633 = vector.broadcast %625 : vector<16x1xf32> to vector<16x32xf32>
    %634 = arith.subf %621, %633 : vector<16x32xf32>
    %cst_139 = arith.constant 9.99999996E-13 : f32
    %635 = vector.broadcast %cst_139 : f32 to vector<16x1xf32>
    %636 = arith.addf %632, %635 : vector<16x1xf32>
    %637 = math.rsqrt %636 : vector<16x1xf32>
    %638 = vector.broadcast %637 : vector<16x1xf32> to vector<16x32xf32>
    %639 = arith.mulf %634, %638 : vector<16x32xf32>
    %640 = vector.broadcast %553 : vector<1x32xf32> to vector<16x32xf32>
    %641 = arith.mulf %639, %640 : vector<16x32xf32>
    %642 = vector.broadcast %555 : vector<1x32xf32> to vector<16x32xf32>
    %643 = arith.addf %641, %642 : vector<16x32xf32>
    %644 = arith.truncf %643 : vector<16x32xf32> to vector<16x32xbf16>
    %cst_140 = arith.constant dense<0.000000e+00> : vector<16x64xf32>
    %645 = tpu.matmul %644, %537, %cst_140 {dimension_numbers = #tpu.dot_dimension_numbers<[1], [0], [0], [1], [0, 0, 1, 1], [], []>} : vector<16x32xbf16>, vector<32x64xbf16>, vector<16x64xf32> -> vector<16x64xf32>
    %646 = vector.broadcast %557 : vector<1x64xf32> to vector<16x64xf32>
    %647 = arith.addf %645, %646 : vector<16x64xf32>
    %648 = arith.mulf %647, %647 : vector<16x64xf32>
    %649 = arith.mulf %647, %648 : vector<16x64xf32>
    %cst_141 = arith.constant 4.471500e-02 : f32
    %650 = vector.broadcast %cst_141 : f32 to vector<16x64xf32>
    %651 = arith.mulf %650, %649 : vector<16x64xf32>
    %652 = arith.addf %647, %651 : vector<16x64xf32>
    %cst_142 = arith.constant 0.797884583 : f32
    %653 = vector.broadcast %cst_142 : f32 to vector<16x64xf32>
    %654 = arith.mulf %653, %652 : vector<16x64xf32>
    %655 = math.tanh %654 : vector<16x64xf32>
    %cst_143 = arith.constant 1.000000e+00 : f32
    %656 = vector.broadcast %cst_143 : f32 to vector<16x64xf32>
    %657 = arith.addf %656, %655 : vector<16x64xf32>
    %cst_144 = arith.constant 5.000000e-01 : f32
    %658 = vector.broadcast %cst_144 : f32 to vector<16x64xf32>
    %659 = arith.mulf %658, %657 : vector<16x64xf32>
    %660 = arith.mulf %647, %659 : vector<16x64xf32>
    %661 = arith.truncf %660 : vector<16x64xf32> to vector<16x64xbf16>
    %cst_145 = arith.constant dense<0.000000e+00> : vector<16x32xf32>
    %662 = tpu.matmul %661, %539, %cst_145 {dimension_numbers = #tpu.dot_dimension_numbers<[1], [0], [0], [1], [0, 0, 1, 1], [], []>} : vector<16x64xbf16>, vector<64x32xbf16>, vector<16x32xf32> -> vector<16x32xf32>
    %663 = vector.broadcast %559 : vector<1x32xf32> to vector<16x32xf32>
    %664 = arith.addf %662, %663 : vector<16x32xf32>
    %665 = arith.addf %643, %664 : vector<16x32xf32>
    %cst_146 = arith.constant dense<0.000000e+00> : vector<16xf32>
    %666 = vector.multi_reduction <add>, %665, %cst_146 [1] : vector<16x32xf32> to vector<16xf32>
    %667 = vector.shape_cast %666 : vector<16xf32> to vector<16x1xf32>
    %cst_147 = arith.constant 3.200000e+01 : f32
    %668 = vector.broadcast %cst_147 : f32 to vector<16x1xf32>
    %669 = arith.divf %667, %668 : vector<16x1xf32>
    %670 = vector.broadcast %669 : vector<16x1xf32> to vector<16x32xf32>
    %671 = arith.subf %665, %670 : vector<16x32xf32>
    %672 = arith.mulf %671, %671 : vector<16x32xf32>
    %cst_148 = arith.constant dense<0.000000e+00> : vector<16xf32>
    %673 = vector.multi_reduction <add>, %672, %cst_148 [1] : vector<16x32xf32> to vector<16xf32>
    %674 = vector.shape_cast %673 : vector<16xf32> to vector<16x1xf32>
    %cst_149 = arith.constant 3.200000e+01 : f32
    %675 = vector.broadcast %cst_149 : f32 to vector<16x1xf32>
    %676 = arith.divf %674, %675 : vector<16x1xf32>
    %677 = vector.broadcast %669 : vector<16x1xf32> to vector<16x32xf32>
    %678 = arith.subf %665, %677 : vector<16x32xf32>
    %cst_150 = arith.constant 9.99999996E-13 : f32
    %679 = vector.broadcast %cst_150 : f32 to vector<16x1xf32>
    %680 = arith.addf %676, %679 : vector<16x1xf32>
    %681 = math.rsqrt %680 : vector<16x1xf32>
    %682 = vector.broadcast %681 : vector<16x1xf32> to vector<16x32xf32>
    %683 = arith.mulf %678, %682 : vector<16x32xf32>
    %684 = vector.broadcast %561 : vector<1x32xf32> to vector<16x32xf32>
    %685 = arith.mulf %683, %684 : vector<16x32xf32>
    %686 = vector.broadcast %563 : vector<1x32xf32> to vector<16x32xf32>
    %687 = arith.addf %685, %686 : vector<16x32xf32>
    %688 = vector.shape_cast %687 : vector<16x32xf32> to vector<2x8x32xf32>
    %689 = vector.extract_strided_slice %688 {offsets = [0, 0, 0], sizes = [2, 1, 32], strides = [1, 1, 1]} : vector<2x8x32xf32> to vector<2x1x32xf32>
    %690 = vector.shape_cast %689 : vector<2x1x32xf32> to vector<2x32xf32>
    %691 = arith.truncf %690 : vector<2x32xf32> to vector<2x32xbf16>
    %cst_151 = arith.constant dense<0.000000e+00> : vector<2x32xf32>
    %692 = tpu.matmul %691, %541, %cst_151 {dimension_numbers = #tpu.dot_dimension_numbers<[1], [0], [0], [1], [0, 0, 1, 1], [], []>} : vector<2x32xbf16>, vector<32x32xbf16>, vector<2x32xf32> -> vector<2x32xf32>
    %693 = vector.broadcast %565 : vector<1x32xf32> to vector<2x32xf32>
    %694 = arith.addf %692, %693 : vector<2x32xf32>
    %695 = math.tanh %694 : vector<2x32xf32>
    %696 = arith.truncf %695 : vector<2x32xf32> to vector<2x32xbf16>
    %cst_152 = arith.constant dense<0.000000e+00> : vector<2x2xf32>
    %697 = tpu.matmul %696, %543, %cst_152 {dimension_numbers = #tpu.dot_dimension_numbers<[1], [0], [0], [1], [0, 0, 1, 1], [], []>} : vector<2x32xbf16>, vector<32x2xbf16>, vector<2x2xf32> -> vector<2x2xf32>
    %698 = vector.broadcast %567 : vector<1x2xf32> to vector<2x2xf32>
    %699 = arith.addf %697, %698 : vector<2x2xf32>
    %cst_153 = arith.constant 3.000000e-01 : f32
    %700 = vector.broadcast %cst_153 : f32 to vector<2x2xf32>
    %701 = arith.mulf %700, %699 : vector<2x2xf32>
    %702 = arith.addf %527, %701 : vector<2x2xf32>
    %c4 = arith.constant 4 : index
    %c0_154 = arith.constant 0 : index
    %c0_155 = arith.constant 0 : index
    %c0_156 = arith.constant 0 : index
    %703 = vector.load %arg0[%c4, %c0_154, %c0_155, %c0_156] : memref<5x2x8x32xf32, #tpu.memory_space<vmem>>, vector<1x2x8x32xf32>
    %704 = vector.shape_cast %703 : vector<1x2x8x32xf32> to vector<2x8x32xf32>
    %c4_157 = arith.constant 4 : index
    %c0_158 = arith.constant 0 : index
    %c0_159 = arith.constant 0 : index
    %705 = vector.load %arg1[%c4_157, %c0_158, %c0_159] : memref<5x2x8xf32, #tpu.memory_space<vmem>>, vector<1x2x8xf32>
    %706 = vector.shape_cast %705 : vector<1x2x8xf32> to vector<2x8xf32>
    %707 = vector.extract_strided_slice %1 {offsets = [4, 0, 0], sizes = [1, 32, 96], strides = [1, 1, 1]} : vector<5x64x768xbf16> to vector<1x32x96xbf16>
    %708 = vector.shape_cast %707 : vector<1x32x96xbf16> to vector<32x96xbf16>
    %709 = vector.extract_strided_slice %1 {offsets = [4, 0, 128], sizes = [1, 32, 32], strides = [1, 1, 1]} : vector<5x64x768xbf16> to vector<1x32x32xbf16>
    %710 = vector.shape_cast %709 : vector<1x32x32xbf16> to vector<32x32xbf16>
    %711 = vector.extract_strided_slice %1 {offsets = [4, 0, 256], sizes = [1, 32, 64], strides = [1, 1, 1]} : vector<5x64x768xbf16> to vector<1x32x64xbf16>
    %712 = vector.shape_cast %711 : vector<1x32x64xbf16> to vector<32x64xbf16>
    %713 = vector.extract_strided_slice %1 {offsets = [4, 0, 384], sizes = [1, 64, 32], strides = [1, 1, 1]} : vector<5x64x768xbf16> to vector<1x64x32xbf16>
    %714 = vector.shape_cast %713 : vector<1x64x32xbf16> to vector<64x32xbf16>
    %715 = vector.extract_strided_slice %1 {offsets = [4, 0, 512], sizes = [1, 32, 32], strides = [1, 1, 1]} : vector<5x64x768xbf16> to vector<1x32x32xbf16>
    %716 = vector.shape_cast %715 : vector<1x32x32xbf16> to vector<32x32xbf16>
    %717 = vector.extract_strided_slice %1 {offsets = [4, 0, 640], sizes = [1, 32, 2], strides = [1, 1, 1]} : vector<5x64x768xbf16> to vector<1x32x2xbf16>
    %718 = vector.shape_cast %717 : vector<1x32x2xbf16> to vector<32x2xbf16>
    %719 = vector.extract_strided_slice %2 {offsets = [4, 0, 0], sizes = [1, 1, 32], strides = [1, 1, 1]} : vector<5x12x128xf32> to vector<1x1x32xf32>
    %720 = vector.shape_cast %719 : vector<1x1x32xf32> to vector<1x32xf32>
    %721 = vector.extract_strided_slice %2 {offsets = [4, 1, 0], sizes = [1, 1, 32], strides = [1, 1, 1]} : vector<5x12x128xf32> to vector<1x1x32xf32>
    %722 = vector.shape_cast %721 : vector<1x1x32xf32> to vector<1x32xf32>
    %723 = vector.extract_strided_slice %2 {offsets = [4, 2, 0], sizes = [1, 1, 96], strides = [1, 1, 1]} : vector<5x12x128xf32> to vector<1x1x96xf32>
    %724 = vector.shape_cast %723 : vector<1x1x96xf32> to vector<1x96xf32>
    %725 = vector.extract_strided_slice %2 {offsets = [4, 3, 0], sizes = [1, 1, 32], strides = [1, 1, 1]} : vector<5x12x128xf32> to vector<1x1x32xf32>
    %726 = vector.shape_cast %725 : vector<1x1x32xf32> to vector<1x32xf32>
    %727 = vector.extract_strided_slice %2 {offsets = [4, 4, 0], sizes = [1, 1, 32], strides = [1, 1, 1]} : vector<5x12x128xf32> to vector<1x1x32xf32>
    %728 = vector.shape_cast %727 : vector<1x1x32xf32> to vector<1x32xf32>
    %729 = vector.extract_strided_slice %2 {offsets = [4, 5, 0], sizes = [1, 1, 32], strides = [1, 1, 1]} : vector<5x12x128xf32> to vector<1x1x32xf32>
    %730 = vector.shape_cast %729 : vector<1x1x32xf32> to vector<1x32xf32>
    %731 = vector.extract_strided_slice %2 {offsets = [4, 6, 0], sizes = [1, 1, 64], strides = [1, 1, 1]} : vector<5x12x128xf32> to vector<1x1x64xf32>
    %732 = vector.shape_cast %731 : vector<1x1x64xf32> to vector<1x64xf32>
    %733 = vector.extract_strided_slice %2 {offsets = [4, 7, 0], sizes = [1, 1, 32], strides = [1, 1, 1]} : vector<5x12x128xf32> to vector<1x1x32xf32>
    %734 = vector.shape_cast %733 : vector<1x1x32xf32> to vector<1x32xf32>
    %735 = vector.extract_strided_slice %2 {offsets = [4, 8, 0], sizes = [1, 1, 32], strides = [1, 1, 1]} : vector<5x12x128xf32> to vector<1x1x32xf32>
    %736 = vector.shape_cast %735 : vector<1x1x32xf32> to vector<1x32xf32>
    %737 = vector.extract_strided_slice %2 {offsets = [4, 9, 0], sizes = [1, 1, 32], strides = [1, 1, 1]} : vector<5x12x128xf32> to vector<1x1x32xf32>
    %738 = vector.shape_cast %737 : vector<1x1x32xf32> to vector<1x32xf32>
    %739 = vector.extract_strided_slice %2 {offsets = [4, 10, 0], sizes = [1, 1, 32], strides = [1, 1, 1]} : vector<5x12x128xf32> to vector<1x1x32xf32>
    %740 = vector.shape_cast %739 : vector<1x1x32xf32> to vector<1x32xf32>
    %741 = vector.extract_strided_slice %2 {offsets = [4, 11, 0], sizes = [1, 1, 2], strides = [1, 1, 1]} : vector<5x12x128xf32> to vector<1x1x2xf32>
    %742 = vector.shape_cast %741 : vector<1x1x2xf32> to vector<1x2xf32>
    %743 = vector.shape_cast %704 : vector<2x8x32xf32> to vector<16x32xf32>
    %cst_160 = arith.constant dense<0.000000e+00> : vector<16xf32>
    %744 = vector.multi_reduction <add>, %743, %cst_160 [1] : vector<16x32xf32> to vector<16xf32>
    %745 = vector.shape_cast %744 : vector<16xf32> to vector<16x1xf32>
    %cst_161 = arith.constant 3.200000e+01 : f32
    %746 = vector.broadcast %cst_161 : f32 to vector<16x1xf32>
    %747 = arith.divf %745, %746 : vector<16x1xf32>
    %748 = vector.broadcast %747 : vector<16x1xf32> to vector<16x32xf32>
    %749 = arith.subf %743, %748 : vector<16x32xf32>
    %750 = arith.mulf %749, %749 : vector<16x32xf32>
    %cst_162 = arith.constant dense<0.000000e+00> : vector<16xf32>
    %751 = vector.multi_reduction <add>, %750, %cst_162 [1] : vector<16x32xf32> to vector<16xf32>
    %752 = vector.shape_cast %751 : vector<16xf32> to vector<16x1xf32>
    %cst_163 = arith.constant 3.200000e+01 : f32
    %753 = vector.broadcast %cst_163 : f32 to vector<16x1xf32>
    %754 = arith.divf %752, %753 : vector<16x1xf32>
    %755 = vector.broadcast %747 : vector<16x1xf32> to vector<16x32xf32>
    %756 = arith.subf %743, %755 : vector<16x32xf32>
    %cst_164 = arith.constant 9.99999996E-13 : f32
    %757 = vector.broadcast %cst_164 : f32 to vector<16x1xf32>
    %758 = arith.addf %754, %757 : vector<16x1xf32>
    %759 = math.rsqrt %758 : vector<16x1xf32>
    %760 = vector.broadcast %759 : vector<16x1xf32> to vector<16x32xf32>
    %761 = arith.mulf %756, %760 : vector<16x32xf32>
    %762 = vector.broadcast %720 : vector<1x32xf32> to vector<16x32xf32>
    %763 = arith.mulf %761, %762 : vector<16x32xf32>
    %764 = vector.broadcast %722 : vector<1x32xf32> to vector<16x32xf32>
    %765 = arith.addf %763, %764 : vector<16x32xf32>
    %766 = arith.truncf %765 : vector<16x32xf32> to vector<16x32xbf16>
    %cst_165 = arith.constant dense<0.000000e+00> : vector<16x96xf32>
    %767 = tpu.matmul %766, %708, %cst_165 {dimension_numbers = #tpu.dot_dimension_numbers<[1], [0], [0], [1], [0, 0, 1, 1], [], []>} : vector<16x32xbf16>, vector<32x96xbf16>, vector<16x96xf32> -> vector<16x96xf32>
    %768 = vector.broadcast %724 : vector<1x96xf32> to vector<16x96xf32>
    %769 = arith.addf %767, %768 : vector<16x96xf32>
    %770 = vector.shape_cast %769 : vector<16x96xf32> to vector<2x8x96xf32>
    %771 = vector.extract_strided_slice %770 {offsets = [0, 0, 0], sizes = [2, 8, 32], strides = [1, 1, 1]} : vector<2x8x96xf32> to vector<2x8x32xf32>
    %772 = vector.extract_strided_slice %770 {offsets = [0, 0, 32], sizes = [2, 8, 32], strides = [1, 1, 1]} : vector<2x8x96xf32> to vector<2x8x32xf32>
    %773 = vector.extract_strided_slice %770 {offsets = [0, 0, 64], sizes = [2, 8, 32], strides = [1, 1, 1]} : vector<2x8x96xf32> to vector<2x8x32xf32>
    "tpu.trace_start"() <{level = 10 : i32, message = "bqh,bkh->bqk"}> : () -> ()
    %cst_166 = arith.constant dense<0.000000e+00> : vector<2x8x8xf32>
    %774 = tpu.matmul %771, %772, %cst_166 {dimension_numbers = #tpu.dot_dimension_numbers<[2], [2], [1], [1], [0, 0, 0, 1, 1, 1], [0], [0]>} : vector<2x8x32xf32>, vector<2x8x32xf32>, vector<2x8x8xf32> -> vector<2x8x8xf32>
    "tpu.trace_stop"() : () -> ()
    %cst_167 = arith.constant 0.176776692 : f32
    %775 = vector.broadcast %cst_167 : f32 to vector<2x8x8xf32>
    %776 = arith.mulf %774, %775 : vector<2x8x8xf32>
    %777 = vector.shape_cast %706 : vector<2x8xf32> to vector<2x1x8xf32>
    %778 = vector.broadcast %777 : vector<2x1x8xf32> to vector<2x8x8xf32>
    %779 = arith.addf %776, %778 : vector<2x8x8xf32>
    %cst_168 = arith.constant dense<0xFF800000> : vector<2x8xf32>
    %780 = vector.multi_reduction <maximumf>, %779, %cst_168 [2] : vector<2x8x8xf32> to vector<2x8xf32>
    %781 = vector.shape_cast %780 : vector<2x8xf32> to vector<2x8x1xf32>
    %782 = vector.broadcast %781 : vector<2x8x1xf32> to vector<2x8x8xf32>
    %783 = arith.subf %779, %782 : vector<2x8x8xf32>
    %784 = math.exp %783 : vector<2x8x8xf32>
    %cst_169 = arith.constant dense<0.000000e+00> : vector<2x8xf32>
    %785 = vector.multi_reduction <add>, %784, %cst_169 [2] : vector<2x8x8xf32> to vector<2x8xf32>
    %786 = vector.shape_cast %785 : vector<2x8xf32> to vector<2x8x1xf32>
    %787 = tpu.reciprocal %786 {approx = true} : vector<2x8x1xf32> -> vector<2x8x1xf32>
    %788 = vector.broadcast %787 : vector<2x8x1xf32> to vector<2x8x8xf32>
    %789 = arith.mulf %784, %788 : vector<2x8x8xf32>
    "tpu.trace_start"() <{level = 10 : i32, message = "bqk,bkh->bqh"}> : () -> ()
    %cst_170 = arith.constant dense<0.000000e+00> : vector<2x8x32xf32>
    %790 = tpu.matmul %789, %773, %cst_170 {dimension_numbers = #tpu.dot_dimension_numbers<[2], [1], [1], [2], [0, 0, 0, 1, 1, 2], [0], [0]>} : vector<2x8x8xf32>, vector<2x8x32xf32>, vector<2x8x32xf32> -> vector<2x8x32xf32>
    "tpu.trace_stop"() : () -> ()
    %791 = vector.shape_cast %790 : vector<2x8x32xf32> to vector<16x32xf32>
    %792 = arith.truncf %791 : vector<16x32xf32> to vector<16x32xbf16>
    %cst_171 = arith.constant dense<0.000000e+00> : vector<16x32xf32>
    %793 = tpu.matmul %792, %710, %cst_171 {dimension_numbers = #tpu.dot_dimension_numbers<[1], [0], [0], [1], [0, 0, 1, 1], [], []>} : vector<16x32xbf16>, vector<32x32xbf16>, vector<16x32xf32> -> vector<16x32xf32>
    %794 = vector.broadcast %726 : vector<1x32xf32> to vector<16x32xf32>
    %795 = arith.addf %793, %794 : vector<16x32xf32>
    %796 = arith.addf %765, %795 : vector<16x32xf32>
    %cst_172 = arith.constant dense<0.000000e+00> : vector<16xf32>
    %797 = vector.multi_reduction <add>, %796, %cst_172 [1] : vector<16x32xf32> to vector<16xf32>
    %798 = vector.shape_cast %797 : vector<16xf32> to vector<16x1xf32>
    %cst_173 = arith.constant 3.200000e+01 : f32
    %799 = vector.broadcast %cst_173 : f32 to vector<16x1xf32>
    %800 = arith.divf %798, %799 : vector<16x1xf32>
    %801 = vector.broadcast %800 : vector<16x1xf32> to vector<16x32xf32>
    %802 = arith.subf %796, %801 : vector<16x32xf32>
    %803 = arith.mulf %802, %802 : vector<16x32xf32>
    %cst_174 = arith.constant dense<0.000000e+00> : vector<16xf32>
    %804 = vector.multi_reduction <add>, %803, %cst_174 [1] : vector<16x32xf32> to vector<16xf32>
    %805 = vector.shape_cast %804 : vector<16xf32> to vector<16x1xf32>
    %cst_175 = arith.constant 3.200000e+01 : f32
    %806 = vector.broadcast %cst_175 : f32 to vector<16x1xf32>
    %807 = arith.divf %805, %806 : vector<16x1xf32>
    %808 = vector.broadcast %800 : vector<16x1xf32> to vector<16x32xf32>
    %809 = arith.subf %796, %808 : vector<16x32xf32>
    %cst_176 = arith.constant 9.99999996E-13 : f32
    %810 = vector.broadcast %cst_176 : f32 to vector<16x1xf32>
    %811 = arith.addf %807, %810 : vector<16x1xf32>
    %812 = math.rsqrt %811 : vector<16x1xf32>
    %813 = vector.broadcast %812 : vector<16x1xf32> to vector<16x32xf32>
    %814 = arith.mulf %809, %813 : vector<16x32xf32>
    %815 = vector.broadcast %728 : vector<1x32xf32> to vector<16x32xf32>
    %816 = arith.mulf %814, %815 : vector<16x32xf32>
    %817 = vector.broadcast %730 : vector<1x32xf32> to vector<16x32xf32>
    %818 = arith.addf %816, %817 : vector<16x32xf32>
    %819 = arith.truncf %818 : vector<16x32xf32> to vector<16x32xbf16>
    %cst_177 = arith.constant dense<0.000000e+00> : vector<16x64xf32>
    %820 = tpu.matmul %819, %712, %cst_177 {dimension_numbers = #tpu.dot_dimension_numbers<[1], [0], [0], [1], [0, 0, 1, 1], [], []>} : vector<16x32xbf16>, vector<32x64xbf16>, vector<16x64xf32> -> vector<16x64xf32>
    %821 = vector.broadcast %732 : vector<1x64xf32> to vector<16x64xf32>
    %822 = arith.addf %820, %821 : vector<16x64xf32>
    %823 = arith.mulf %822, %822 : vector<16x64xf32>
    %824 = arith.mulf %822, %823 : vector<16x64xf32>
    %cst_178 = arith.constant 4.471500e-02 : f32
    %825 = vector.broadcast %cst_178 : f32 to vector<16x64xf32>
    %826 = arith.mulf %825, %824 : vector<16x64xf32>
    %827 = arith.addf %822, %826 : vector<16x64xf32>
    %cst_179 = arith.constant 0.797884583 : f32
    %828 = vector.broadcast %cst_179 : f32 to vector<16x64xf32>
    %829 = arith.mulf %828, %827 : vector<16x64xf32>
    %830 = math.tanh %829 : vector<16x64xf32>
    %cst_180 = arith.constant 1.000000e+00 : f32
    %831 = vector.broadcast %cst_180 : f32 to vector<16x64xf32>
    %832 = arith.addf %831, %830 : vector<16x64xf32>
    %cst_181 = arith.constant 5.000000e-01 : f32
    %833 = vector.broadcast %cst_181 : f32 to vector<16x64xf32>
    %834 = arith.mulf %833, %832 : vector<16x64xf32>
    %835 = arith.mulf %822, %834 : vector<16x64xf32>
    %836 = arith.truncf %835 : vector<16x64xf32> to vector<16x64xbf16>
    %cst_182 = arith.constant dense<0.000000e+00> : vector<16x32xf32>
    %837 = tpu.matmul %836, %714, %cst_182 {dimension_numbers = #tpu.dot_dimension_numbers<[1], [0], [0], [1], [0, 0, 1, 1], [], []>} : vector<16x64xbf16>, vector<64x32xbf16>, vector<16x32xf32> -> vector<16x32xf32>
    %838 = vector.broadcast %734 : vector<1x32xf32> to vector<16x32xf32>
    %839 = arith.addf %837, %838 : vector<16x32xf32>
    %840 = arith.addf %818, %839 : vector<16x32xf32>
    %cst_183 = arith.constant dense<0.000000e+00> : vector<16xf32>
    %841 = vector.multi_reduction <add>, %840, %cst_183 [1] : vector<16x32xf32> to vector<16xf32>
    %842 = vector.shape_cast %841 : vector<16xf32> to vector<16x1xf32>
    %cst_184 = arith.constant 3.200000e+01 : f32
    %843 = vector.broadcast %cst_184 : f32 to vector<16x1xf32>
    %844 = arith.divf %842, %843 : vector<16x1xf32>
    %845 = vector.broadcast %844 : vector<16x1xf32> to vector<16x32xf32>
    %846 = arith.subf %840, %845 : vector<16x32xf32>
    %847 = arith.mulf %846, %846 : vector<16x32xf32>
    %cst_185 = arith.constant dense<0.000000e+00> : vector<16xf32>
    %848 = vector.multi_reduction <add>, %847, %cst_185 [1] : vector<16x32xf32> to vector<16xf32>
    %849 = vector.shape_cast %848 : vector<16xf32> to vector<16x1xf32>
    %cst_186 = arith.constant 3.200000e+01 : f32
    %850 = vector.broadcast %cst_186 : f32 to vector<16x1xf32>
    %851 = arith.divf %849, %850 : vector<16x1xf32>
    %852 = vector.broadcast %844 : vector<16x1xf32> to vector<16x32xf32>
    %853 = arith.subf %840, %852 : vector<16x32xf32>
    %cst_187 = arith.constant 9.99999996E-13 : f32
    %854 = vector.broadcast %cst_187 : f32 to vector<16x1xf32>
    %855 = arith.addf %851, %854 : vector<16x1xf32>
    %856 = math.rsqrt %855 : vector<16x1xf32>
    %857 = vector.broadcast %856 : vector<16x1xf32> to vector<16x32xf32>
    %858 = arith.mulf %853, %857 : vector<16x32xf32>
    %859 = vector.broadcast %736 : vector<1x32xf32> to vector<16x32xf32>
    %860 = arith.mulf %858, %859 : vector<16x32xf32>
    %861 = vector.broadcast %738 : vector<1x32xf32> to vector<16x32xf32>
    %862 = arith.addf %860, %861 : vector<16x32xf32>
    %863 = vector.shape_cast %862 : vector<16x32xf32> to vector<2x8x32xf32>
    %864 = vector.extract_strided_slice %863 {offsets = [0, 0, 0], sizes = [2, 1, 32], strides = [1, 1, 1]} : vector<2x8x32xf32> to vector<2x1x32xf32>
    %865 = vector.shape_cast %864 : vector<2x1x32xf32> to vector<2x32xf32>
    %866 = arith.truncf %865 : vector<2x32xf32> to vector<2x32xbf16>
    %cst_188 = arith.constant dense<0.000000e+00> : vector<2x32xf32>
    %867 = tpu.matmul %866, %716, %cst_188 {dimension_numbers = #tpu.dot_dimension_numbers<[1], [0], [0], [1], [0, 0, 1, 1], [], []>} : vector<2x32xbf16>, vector<32x32xbf16>, vector<2x32xf32> -> vector<2x32xf32>
    %868 = vector.broadcast %740 : vector<1x32xf32> to vector<2x32xf32>
    %869 = arith.addf %867, %868 : vector<2x32xf32>
    %870 = math.tanh %869 : vector<2x32xf32>
    %871 = arith.truncf %870 : vector<2x32xf32> to vector<2x32xbf16>
    %cst_189 = arith.constant dense<0.000000e+00> : vector<2x2xf32>
    %872 = tpu.matmul %871, %718, %cst_189 {dimension_numbers = #tpu.dot_dimension_numbers<[1], [0], [0], [1], [0, 0, 1, 1], [], []>} : vector<2x32xbf16>, vector<32x2xbf16>, vector<2x2xf32> -> vector<2x2xf32>
    %873 = vector.broadcast %742 : vector<1x2xf32> to vector<2x2xf32>
    %874 = arith.addf %872, %873 : vector<2x2xf32>
    %cst_190 = arith.constant 4.000000e-01 : f32
    %875 = vector.broadcast %cst_190 : f32 to vector<2x2xf32>
    %876 = arith.mulf %875, %874 : vector<2x2xf32>
    %877 = arith.addf %702, %876 : vector<2x2xf32>
    %c0_191 = arith.constant 0 : index
    %c0_192 = arith.constant 0 : index
    %878 = vector.load %arg4[%c0_191, %c0_192] : memref<2x2xf32, #tpu.memory_space<vmem>>, vector<2x2xf32>
    tpu.vector_store %arg4[%c0_191, %c0_192], %877 {strides = array<i32>} : memref<2x2xf32, #tpu.memory_space<vmem>>, vector<2x2xf32>,
    return
  }
}

</mosaic_0001>

<bundles_post_ra>
// kernel: tpu_custom_call.1
= control target key start
LH: loop header
LB: loop body
LE: loop exit
PB: predicated region body
PF: predicated region fallthrough
CT: control target
= control target key end

     0   :  { %9 = vsyncpa [#allocation3], 0  ;;  %s6387_s0 = inlined_call_operand.hbm [shape: f32[5,2,8,32], index: 0, kind: input, shape index: {}]   ;;  %s6388_s1 = inlined_call_operand.hbm [shape: f32[5,2,8], index: 1, kind: input, shape index: {}]   ;;  %s6389_s2 = inlined_call_operand.hbm [shape: bf16[5,64,768], index: 2, kind: input, shape index: {}]   ;;  %s6390_s3 = inlined_call_operand.hbm [shape: f32[5,12,128], index: 3, kind: input, shape index: {}]   ;;  %s6391_s4 = inlined_call_operand.hbm [shape: f32[2,2], index: 4, kind: output, shape index: {}]  }
   0x1   :  { %10 = vsyncpa [#allocation6], 0 }
   0x2   :  { %11 = vsyncpa [#allocation9], 0 }
   0x3   :  { %12 = vsyncpa [#allocation4], 0  ;;  %s5590_s15 = smov [#allocation5]  }
   0x4   :  { %s30_s16 = sshll.u32 %s5590_s15, 4  ;;  %s31_s16 = int_to_ptr.vmem [resolvable:$true] %s30_s16 }
   0x5   :  { %s5490_s17 = scalar_lea.vmem %s31_s16, 160  ;;  %p5495_p1 = scmp.lt.s32.totalorder %s31_s16, %s31_s16 }
   0x6   :  { %p5491_p0 = scmp.ne.s32.totalorder %s31_s16, %s5490_s17  ;;  %p5496_p2 = scmp.lt.s32.totalorder %s5490_s17, %s5490_s17 }
   0x8   :  { %p5497_p3 = por %p5496_p2, %p5495_p1 }
   0xa   :  { %p5498_p4 = pnand %p5497_p3, %p5491_p0 }
   0xc   :  { %5501 = shalt.err (!%p5498_p4)
}
   0xd   :  { %s5591_s18 = smov 32   ;;  %s5592_s19 = smov 2  }
   0xe   :  { %36 = dma.hbm_to_vmem [thread:$0]  %s6388_s1, 160, %s31_s16, [#allocation6], %s5591_s18, %s5591_s18, %s5592_s19  }
   0xf   :  { %s5593_s22 = smov [#allocation2]  }
  0x10   :  { %s18_s23 = sshll.u32 %s5593_s22, 4  ;;  %s19_s23 = int_to_ptr.vmem [resolvable:$true] %s18_s23 }
  0x11   :  { %s5510_s24 = scalar_lea.vmem %s19_s23, 1280  ;;  %p5515_p6 = scmp.lt.s32.totalorder %s19_s23, %s19_s23 }
  0x12   :  { %p5511_p5 = scmp.ne.s32.totalorder %s19_s23, %s5510_s24  ;;  %p5516_p7 = scmp.lt.s32.totalorder %s5510_s24, %s5510_s24 }
  0x14   :  { %p5517_p8 = por %p5516_p7, %p5515_p6 }
  0x16   :  { %p5518_p9 = pnand %p5517_p8, %p5511_p5 }
  0x18   :  { %5521 = shalt.err (!%p5518_p9)
}
  0x19   :  { %s5594_s25 = smov 128   ;;  %s5595_s26 = smov 8  }
  0x1a   :  { %24 = dma.hbm_to_vmem [thread:$0]  %s6387_s0, 1280, %s19_s23, [#allocation3], %s5594_s25, %s5594_s25, %s5595_s26  }
  0x1b   :  { %s5596_s29 = smov [#allocation7]  }
  0x1c   :  { %s42_s30 = sshll.u32 %s5596_s29, 4  ;;  %s43_s30 = int_to_ptr.vmem [resolvable:$true] %s42_s30 }
  0x1d   :  { %s5530_s1 = scalar_lea.vmem %s43_s30, 15360  ;;  %p5535_p11 = scmp.lt.s32.totalorder %s43_s30, %s43_s30 }
  0x1e   :  { %p5531_p10 = scmp.ne.s32.totalorder %s43_s30, %s5530_s1  ;;  %p5536_p12 = scmp.lt.s32.totalorder %s5530_s1, %s5530_s1 }
  0x20   :  { %p5537_p13 = por %p5536_p12, %p5535_p11 }
  0x22   :  { %p5538_p0 = pnand %p5537_p13, %p5531_p10 }
  0x24   :  { %5541 = shalt.err (!%p5538_p0)
}
  0x25   :  { %s5597_s5 = smov 384   ;;  %s5598_s6 = smov 24  }
  0x26   :  { %48 = dma.hbm_to_vmem [thread:$0]  %s6389_s2, 15360, %s43_s30, [#allocation6], %s5597_s5, %s5597_s5, %s5598_s6  }
  0x27   :  { %s5599_s9 = smov [#allocation8]  }
  0x28   :  { %s54_s10 = sshll.u32 %s5599_s9, 4  ;;  %s55_s10 = int_to_ptr.vmem [resolvable:$true] %s54_s10 }
  0x29   :  { %s5550_s0 = scalar_lea.vmem %s55_s10, 1280  ;;  %p5555_p2 = scmp.lt.s32.totalorder %s55_s10, %s55_s10 }
  0x2a   :  { %p5551_p1 = scmp.ne.s32.totalorder %s55_s10, %s5550_s0  ;;  %p5556_p3 = scmp.lt.s32.totalorder %s5550_s0, %s5550_s0 }
  0x2c   :  { %p5557_p4 = por %p5556_p3, %p5555_p2 }
  0x2e   :  { %p5558_p5 = pnand %p5557_p4, %p5551_p1 }
  0x30   :  { %5561 = shalt.err (!%p5558_p5)
}
  0x31   :  { %60 = dma.hbm_to_vmem [thread:$0]  %s6390_s3, 1280, %s55_s10, [#allocation9], %s5594_s25, %s5594_s25, %s5595_s26  }
  0x32   :  { %5582 = dma.done.wait [#allocation3], 1280  }
  0x33   :  { %5583 = vsyncadd [#allocation3], 4294966016 }
  0x34   :  { %5584 = dma.done.wait [#allocation6], 15520  }
  0x35   :  { %5585 = vsyncadd [#allocation6], 4294951776 }
  0x36   :  { %5586 = dma.done.wait [#allocation9], 1280  }
  0x37   :  { %5587 = vsyncadd [#allocation9], 4294966016  ;;  %vm199_vm0 = vcmask 261120   ;;  %v164_v0 = vld [vmem:[#allocation2] sm:$0xff]  ;;  %v165_v1 = vld [vmem:[#allocation2 + $0x8] sm:$0xff]  ;;  %v5600_v17 = vmov 0.0   ;;  %v227_v30 = vlaneseq }
  0x38   :  { %v200_v2 = vsel %vm199_vm0, %v164_v0, 0.0  ;;  %v203_v3 = vsel %vm199_vm0, %v165_v1, 0.0  ;;  %v80_v14 = vld [vmem:[#allocation7 + $0x30] sm:$0xff]  ;;  %v83_v15 = vld [vmem:[#allocation7 + $0x48] sm:$0xff]  ;;  %v5647_v16 = vld [vmem:[#allocation7] sm:$0xff]  ;;  %4946 = vmatprep.subr.bf16.mxu0 %v5600_v17  ;;  %vm5601_vm1 = vmmov 0   ;;  %4954 = vmatprep.subr.mxu1 %v5600_v17 }
  0x39   :  { %201 = vadd.xlane.f32.xlu0 %v200_v2  ;;  %v173_v18 = vrot.slane %v80_v14, 4  ;;  %v174_v19 = vrot.slane %v83_v15, 4  ;;  %v4672_v20 = vcombine.low %v80_v14, %v83_v15  ;;  %v5650_v21 = vld [vmem:[#allocation7 + $0x18] sm:$0xff]  ;;  %4950 = vmatprep.mubr.msk.bf16.mxu0 %vm5601_vm1, %v5600_v17  ;;  %v5663_v31 = vshrl.u32 %v227_v30, 7  ;;  %v5668_v33 = vld [vmem:[#allocation8] sm:$0xff]  ;;  %s5602_s2 = smov 96  }
  0x3a   :  { %4956 = vmatprep.mubr.msk.f32.mxu1 %vm5601_vm1, %v5600_v17  ;;  %v4671_v23 = vcombine.low %v5647_v16, %v5650_v21  ;;  %v5603_v56 = vmov 1966171168   ;;  %v4678_v60 = vld.sshfl [vmem:[#allocation5] sm:$0x11 pattern:$0x75316420] }
  0x3b   :  { %4947 = vmatpush3.bf16.msra.mxu0 %v4672_v20  ;;  %v5657_v22 = vcombine.low %v173_v18, %v174_v19  ;;  %v5666_v32 = vsub.s32 0, %v5663_v31  ;;  %v5673_v37 = vsub.s32 1, %v5663_v31  ;;  %v5687_v46 = vsub.s32 2, %v5663_v31  ;;  %s5604_s3 = smov 64   ;;  %s5605_s13 = smov [#allocation10]  }
  0x3c   :  { %4948 = vmatprep.subr.bf16.mxu0 %v5600_v17  ;;  %v462_v57 = vunpack.c.l.s4 %v5603_v56  ;;  %v460_v62 = vcombine.high %v4678_v60, %v4678_v60  ;;  %vm487_vm2 = vcmask 64512   ;;  %vm855_vm3 = vcmask 523264   ;;  %s4660_s14 = sshll.u32 %s5605_s13, 4  ;;  %s4661_s14 = int_to_ptr.vmem [resolvable:$true] %s4660_s14 }
  0x3d   :  { %204 = vadd.xlane.f32.xlu0 %v203_v3  ;;  %v230_v36 = vrot.slane %v5668_v33, %v5666_v32  ;;  %v236_v41 = vrot.slane %v5668_v33, %v5673_v37  ;;  %v243_v47 = vrot.slane %v5668_v33, %v5687_v46  ;;  %vm951_vm4 = vcmask 1041409   ;;  %s5562_s15 = scalar_lea.vmem %s4661_s14, 32  ;;  %p5567_p7 = scmp.lt.s32.totalorder %s4661_s14, %s4661_s14 }
  0x3e   :  { %v463_v58 = vunpack.c.0.s8 %v462_v57  ;;  %vm4652_vm5 = vcmask 9216   ;;  %p5563_p6 = scmp.ne.s32.totalorder %s4661_s14, %s5562_s15  ;;  %p5568_p8 = scmp.lt.s32.totalorder %s5562_s15, %s5562_s15 }
  0x3f   :  { %4949 = vmatpush3.bf16.msra.mxu0 %v4671_v23 }
  0x40   :  { %4969 = vmatprep.subr.mxu0 %v5600_v17  ;;  %v5704_v59 = vsub.s32 %v463_v58, %v5663_v31  ;;  %p5569_p9 = por %p5568_p8, %p5567_p7 }
  0x42   :  { %v467_v61 = vrot.slane %v4678_v60, %v5704_v59  ;;  %p5570_p10 = pnand %p5569_p9, %p5563_p6 }
  0x44   :  { %v478_v63 = vrot.slane %v467_v61, %v5666_v32 }
  0xc2   :  { %v202_v4 = vpop.xlane.xlu0 %201 }
  0xc3   :  { %v207_v5 = vmul.f32 0.03125, %v202_v4 }
  0xc5   :  { %v209_v6 = vsub.f32 %v164_v0, %v207_v5  ;;  %v474_v0 = vrot.slane %v460_v62, %v5704_v59 }
  0xc6   :  { %v205_v7 = vpop.xlane.xlu0 %204 }
  0xc7   :  { %v208_v8 = vmul.f32 0.03125, %v205_v7  ;;  %v211_v9 = vmul.f32 %v209_v6, %v209_v6  ;;  %v482_v5 = vrot.slane %v474_v0, %v5666_v32 }
  0xc9   :  { %v210_v10 = vsub.f32 %v165_v1, %v208_v8  ;;  %v213_v11 = vsel %vm199_vm0, %v211_v9, 0.0 }
  0xca   :  { %214 = vadd.xlane.f32.xlu1 %v213_v11 }
  0xcb   :  { %v212_v12 = vmul.f32 %v210_v10, %v210_v10 }
  0xcd   :  { %v216_v13 = vsel %vm199_vm0, %v212_v12, 0.0 }
  0xce   :  { %217 = vadd.xlane.f32.xlu1 %v216_v13 }
 0x153   :  { %v215_v24 = vpop.xlane.xlu1 %214 }
 0x154   :  { %v219_v25 = vmul.f32 0.03125, %v215_v24 }
 0x156   :  { %v221_v26 = vadd.f32 1e-12, %v219_v25 }
 0x157   :  { %v218_v27 = vpop.xlane.xlu1 %217 }
 0x158   :  { %5352 = vrsqrt.f32 %v221_v26  ;;  %v220_v28 = vmul.f32 0.03125, %v218_v27 }
 0x15a   :  { %v222_v29 = vadd.f32 1e-12, %v220_v28 }
 0x15c   :  { %5354 = vrsqrt.f32 %v222_v29 }
 0x165   :  { %v5353_v34 = vpop.eup %5352 }
 0x166   :  { %v225_v35 = vmul.f32 %v5353_v34, %v209_v6 }
 0x168   :  { %v231_v40 = vmul.f32 %v230_v36, %v225_v35 }
 0x169   :  { %v5355_v38 = vpop.eup %5354 }
 0x16a   :  { %v226_v39 = vmul.f32 %v5355_v38, %v210_v10  ;;  %v5677_v43 = vadd.f32 %v236_v41, %v231_v40  ;;  %v171_v38 = vrot.slane %v5647_v16, 4 }
 0x16c   :  { %v232_v42 = vmul.f32 %v230_v36, %v226_v39  ;;  %v172_v39 = vrot.slane %v5650_v21, 4 }
 0x16e   :  { %v5679_v44 = vadd.f32 %v236_v41, %v232_v42  ;;  %v4681_v40 = vcombine.low %v171_v38, %v172_v39 }
 0x170   :  { %v239_v45 = vpack.c.bf16 %v5679_v44, %v5677_v43 }
 0x172   :  { %4951 = vmatmul.mubr.msk.bf16.vlgmr.msra.gmra.mxu0 %vm199_vm0, %v239_v45 }
 0x173   :  { %4971 = vmatprep.mubr.msk.f32.mxu0 %vm5601_vm1, %v5600_v17 }
 0x232   :  { %v289_v48 = vpop.f32.mrf.mxu0 }
 0x233   :  { %v290_v49 = vadd.f32 %v289_v48, %v243_v47  ;;  %v5733_v48 = vsub.s32 3, %v5663_v31 }
 0x234   :  { %v4952_v50 = vpop.f32.mrf.mxu0 }
 0x235   :  { %297 = vrot.lane.b32.xlu0 %v290_v49, %s5602_s2  ;;  %v666_v16 = vrot.slane %v5668_v33, %v5733_v48 }
 0x236   :  { %v292_v51 = vpop.f32.mrf.mxu0 }
 0x237   :  { %v293_v52 = vadd.f32 %v292_v51, %v243_v47 }
 0x238   :  { %v4953_v53 = vpop.f32.mrf.mxu0 }
 0x239   :  { %374 = vrot.lane.b32.xlu1 %v293_v52, %s5602_s2 }
 0x2a7   :  { %v298_v54 = vpop.permute.xlu0 %297 }
 0x2a8   :  { %4955 = vmatpush3.xpose.msk.msra.mxu1 %vm199_vm0, %v298_v54 }
 0x2a9   :  { %4959 = vmatprep.subr.mxu1 %v5600_v17 }
 0x2ab   :  { %4957 = vmatmul.mubr.msk.f32.vlgmr.msra.gmra.mxu1 %vm199_vm0, %v290_v49  ;;  %v375_v55 = vpop.permute.xlu1 %374 }
 0x2ac   :  { %4960 = vmatpush3.xpose.msk.msra.mxu1 %vm199_vm0, %v375_v55  ;;  %4961 = vmatprep.mubr.msk.f32.mxu1 %vm5601_vm1, %v5600_v17 }
 0x2ad   :  { %4964 = vmatprep.subr.mxu1 %v5600_v17 }
 0x2af   :  { %4962 = vmatmul.mubr.msk.f32.vlgmr.msra.gmra.mxu1 %vm199_vm0, %v293_v52 }
 0x2b0   :  { %4966 = vmatprep.mubr.msk.f32.mxu1 %vm5601_vm1, %v5600_v17 }
 0x36b   :  { %v369_v1 = vpop.f32.mrf.mxu1 }
 0x36c   :  { %v450_v2 = vmul.f32 0.17677669, %v369_v1 }
 0x36d   :  { %v4958_v3 = vpop.f32.mrf.mxu1 }
 0x36e   :  { %v485_v4 = vadd.f32 %v478_v63, %v450_v2 }
 0x36f   :  { %v446_v6 = vpop.f32.mrf.mxu1 }
 0x370   :  { %v451_v7 = vmul.f32 0.17677669, %v446_v6  ;;  %v488_v8 = vsel %vm487_vm2, %v485_v4, -inf  ;;  %v75_v6 = vld [vmem:[#allocation7 + $0x8] sm:$0xff] }
 0x371   :  { %489 = vmax.xlane.f32.xlu1 %v488_v8  ;;  %v4963_v9 = vpop.f32.mrf.mxu1 }
 0x372   :  { %v486_v10 = vadd.f32 %v482_v5, %v451_v7  ;;  %v84_v5 = vld [vmem:[#allocation7 + $0x50] sm:$0xff]  ;;  %v78_v7 = vld [vmem:[#allocation7 + $0x20] sm:$0xff] }
 0x373   :  { %v4684_v8 = vcombine.low %v75_v6, %v78_v7 }
 0x374   :  { %v491_v11 = vsel %vm487_vm2, %v486_v10, -inf }
 0x375   :  { %492 = vmax.xlane.f32.xlu0 %v491_v11 }
 0x3fa   :  { %v490_v12 = vpop.xlane.xlu1 %489 }
 0x3fb   :  { %v494_v13 = vsub.f32 %v485_v4, %v490_v12  ;;  %v81_v4 = vld [vmem:[#allocation7 + $0x38] sm:$0xff] }
 0x3fd   :  { %v496_v14 = vmul.f32 1.442695, %v494_v13 }
 0x3fe   :  { %v493_v15 = vpop.xlane.xlu0 %492 }
 0x3ff   :  { %5356 = vpow2.f32 %v496_v14  ;;  %v495_v18 = vsub.f32 %v486_v10, %v493_v15  ;;  %v5746_v15 = vsub.s32 4, %v5663_v31 }
 0x401   :  { %v498_v19 = vmul.f32 1.442695, %v495_v18 }
 0x403   :  { %5358 = vpow2.f32 %v498_v19 }
 0x40c   :  { %v5357_v20 = vpop.eup %5356 }
 0x40d   :  { %v500_v23 = vsel %vm487_vm2, %v5357_v20, 0.0 }
 0x40e   :  { %501 = vadd.xlane.f32.xlu0 %v500_v23  ;;  %v5751_v23 = vsub.s32 5, %v5663_v31 }
 0x410   :  { %v5359_v24 = vpop.eup %5358 }
 0x411   :  { %v503_v25 = vsel %vm487_vm2, %v5359_v24, 0.0 }
 0x412   :  { %504 = vadd.xlane.f32.xlu1 %v503_v25 }
 0x423   :  { %586 = vrot.lane.b32.xlu1 %v293_v52, %s5604_s3 }
 0x424   :  { %510 = vrot.lane.b32.xlu0 %v290_v49, %s5604_s3 }
 0x497   :  { %v502_v26 = vpop.xlane.xlu0 %501 }
 0x498   :  { %5360 = vrcp.f32 %v502_v26 }
 0x49b   :  { %v511_v27 = vpop.permute.xlu0 %510  ;;  %v505_v28 = vpop.xlane.xlu1 %504 }
 0x49c   :  { %5362 = vrcp.f32 %v505_v28  ;;  %4965 = vmatpush3.msra.mxu1 %v511_v27  ;;  %v756_v27 = vrot.slane %v5668_v33, %v5751_v23 }
 0x49d   :  { %4974 = vmatprep.subr.bf16.mxu1 %v5600_v17 }
 0x49f   :  { %v587_v29 = vpop.permute.xlu1 %586 }
 0x4a0   :  { %4970 = vmatpush3.msra.mxu0 %v587_v29 }
 0x4a1   :  { %4982 = vmatprep.subr.bf16.mxu0 %v5600_v17 }
 0x4a5   :  { %v5361_v30 = vpop.eup %5360 }
 0x4a6   :  { %v508_v34 = vmul.f32 %v5361_v30, %v5357_v20  ;;  %v750_v20 = vrot.slane %v5668_v33, %v5746_v15 }
 0x4a8   :  { %4967 = vmatmul.mubr.msk.f32.vlgmr.msra.gmra.mxu1 %vm487_vm2, %v508_v34 }
 0x4a9   :  { %v5363_v35 = vpop.eup %5362  ;;  %4975 = vmatpush3.bf16.msra.mxu1 %v5657_v22  ;;  %4978 = vmatprep.mubr.msk.bf16.mxu1 %vm5601_vm1, %v5600_v17 }
 0x4aa   :  { %v509_v36 = vmul.f32 %v5363_v35, %v5359_v24  ;;  %4976 = vmatprep.subr.bf16.mxu1 %v5600_v17  ;;  %v88_v35 = vld [vmem:[#allocation7 + $0x98] sm:$0xff] }
 0x4ab   :  { %v189_v38 = vrot.slane %v88_v35, 4 }
 0x4ac   :  { %4972 = vmatmul.mubr.msk.f32.vlgmr.msra.gmra.mxu0 %vm487_vm2, %v509_v36  ;;  %v89_v36 = vld [vmem:[#allocation7 + $0xb0] sm:$0xff] }
 0x4ad   :  { %4986 = vmatprep.mubr.msk.bf16.mxu0 %vm5601_vm1, %v5600_v17  ;;  %4977 = vmatpush3.bf16.msra.mxu1 %v4681_v40  ;;  %v190_v39 = vrot.slane %v89_v36, 4 }
 0x4ae   :  { %4990 = vmatprep.subr.bf16.mxu1 %v5600_v17 }
 0x4af   :  { %v4690_v40 = vcombine.low %v189_v38, %v190_v39 }
 0x568   :  { %v582_v22 = vpop.f32.mrf.mxu1 }
 0x56a   :  { %v4968_v41 = vpop.f32.mrf.mxu1 }
 0x56b   :  { %v87_v41 = vld [vmem:[#allocation7 + $0x80] sm:$0xff] }
 0x56c   :  { %v658_v42 = vpop.f32.mrf.mxu0 }
 0x56d   :  { %v662_v45 = vpack.c.bf16 %v658_v42, %v582_v22  ;;  %v86_v22 = vld [vmem:[#allocation7 + $0x68] sm:$0xff] }
 0x56e   :  { %v4973_v47 = vpop.f32.mrf.mxu0  ;;  %v187_v42 = vrot.slane %v86_v22, 4 }
 0x56f   :  { %4979 = vmatmul.mubr.msk.bf16.vlgmr.msra.gmra.mxu1 %vm199_vm0, %v662_v45  ;;  %v188_v45 = vrot.slane %v87_v41, 4 }
 0x570   :  { %4998 = vmatprep.mubr.msk.bf16.mxu1 %vm5601_vm1, %v5600_v17  ;;  %4991 = vmatpush3.bf16.msra.mxu1 %v4690_v40 }
 0x571   :  { %4992 = vmatprep.subr.bf16.mxu1 %v5600_v17  ;;  %v4689_v47 = vcombine.low %v187_v42, %v188_v45 }
 0x574   :  { %4993 = vmatpush3.bf16.msra.mxu1 %v4689_v47 }
 0x575   :  { %4994 = vmatprep.subr.bf16.mxu1 %v5600_v17 }
 0x62f   :  { %v712_v21 = vpop.f32.mrf.mxu1 }
 0x630   :  { %v713_v49 = vadd.f32 %v712_v21, %v666_v16  ;;  %v186_v21 = vrot.slane %v84_v5, 4 }
 0x631   :  { %v4980_v50 = vpop.f32.mrf.mxu1 }
 0x632   :  { %v719_v51 = vadd.f32 %v713_v49, %v5677_v43  ;;  %v183_v50 = vrot.slane %v75_v6, 4 }
 0x633   :  { %v715_v52 = vpop.f32.mrf.mxu1 }
 0x634   :  { %v716_v53 = vadd.f32 %v715_v52, %v666_v16  ;;  %v721_v54 = vsel %vm199_vm0, %v719_v51, 0.0  ;;  %v185_v16 = vrot.slane %v81_v4, 4 }
 0x635   :  { %722 = vadd.xlane.f32.xlu1 %v721_v54  ;;  %v4981_v55 = vpop.f32.mrf.mxu1  ;;  %v1065_v54 = vld [vmem:[#allocation2 + $0x10] sm:$0xff] }
 0x636   :  { %v720_v56 = vadd.f32 %v716_v53, %v5679_v44  ;;  %v4685_v44 = vcombine.low %v81_v4, %v84_v5  ;;  %v4688_v49 = vcombine.low %v185_v16, %v186_v21  ;;  %v1066_v53 = vld [vmem:[#allocation2 + $0x18] sm:$0xff] }
 0x637   :  { %v1104_v55 = vsel %vm199_vm0, %v1066_v53, 0.0 }
 0x638   :  { %v724_v57 = vsel %vm199_vm0, %v720_v56, 0.0  ;;  %4983 = vmatpush3.bf16.msra.mxu0 %v4685_v44  ;;  %4995 = vmatpush3.bf16.msra.mxu1 %v4688_v49 }
 0x639   :  { %725 = vadd.xlane.f32.xlu0 %v724_v57  ;;  %4984 = vmatprep.subr.bf16.mxu0 %v5600_v17  ;;  %v5771_v57 = vsub.s32 6, %v5663_v31 }
 0x63a   :  { %4996 = vmatprep.subr.bf16.mxu1 %v5600_v17 }
 0x63c   :  { %4985 = vmatpush3.bf16.msra.mxu0 %v4684_v8 }
 0x63d   :  { %5002 = vmatprep.subr.bf16.mxu0 %v5600_v17 }
 0x6be   :  { %v723_v58 = vpop.xlane.xlu1 %722 }
 0x6bf   :  { %v727_v60 = vmul.f32 0.03125, %v723_v58  ;;  %v763_v58 = vrot.slane %v5668_v33, %v5771_v57 }
 0x6c1   :  { %v729_v61 = vsub.f32 %v719_v51, %v727_v60  ;;  %v184_v51 = vrot.slane %v78_v7, 4 }
 0x6c2   :  { %v726_v62 = vpop.xlane.xlu0 %725 }
 0x6c3   :  { %v728_v63 = vmul.f32 0.03125, %v726_v62  ;;  %v731_v0 = vmul.f32 %v729_v61, %v729_v61  ;;  %v4687_v52 = vcombine.low %v183_v50, %v184_v51 }
 0x6c5   :  { %v730_v1 = vsub.f32 %v720_v56, %v728_v63  ;;  %v733_v43 = vsel %vm199_vm0, %v731_v0, 0.0  ;;  %4997 = vmatpush3.bf16.msra.mxu1 %v4687_v52  ;;  %v1101_v56 = vsel %vm199_vm0, %v1065_v54, 0.0  ;;  %v5791_v52 = vld [vmem:[#allocation7 + $0x108] sm:$0xff] }
 0x6c6   :  { %734 = vadd.xlane.f32.xlu0 %v733_v43  ;;  %5018 = vmatprep.subr.bf16.mxu1 %v5600_v17 }
 0x6c7   :  { %v732_v2 = vmul.f32 %v730_v1, %v730_v1 }
 0x6c9   :  { %v736_v3 = vsel %vm199_vm0, %v732_v2, 0.0 }
 0x6ca   :  { %737 = vadd.xlane.f32.xlu1 %v736_v3  ;;  %1102 = vadd.xlane.f32.xlu0 %v1101_v56 }
 0x6ce   :  { %1105 = vadd.xlane.f32.xlu1 %v1104_v55  ;;  %v5797_v55 = vld [vmem:[#allocation7 + $0xd8] sm:$0xff] }
 0x74f   :  { %v735_v9 = vpop.xlane.xlu0 %734 }
 0x750   :  { %v739_v10 = vmul.f32 0.03125, %v735_v9 }
 0x752   :  { %v741_v11 = vadd.f32 1e-12, %v739_v10 }
 0x753   :  { %v738_v12 = vpop.xlane.xlu1 %737 }
 0x754   :  { %5364 = vrsqrt.f32 %v741_v11  ;;  %v740_v13 = vmul.f32 0.03125, %v738_v12 }
 0x756   :  { %v742_v14 = vadd.f32 1e-12, %v740_v13 }
 0x758   :  { %5366 = vrsqrt.f32 %v742_v14 }
 0x761   :  { %v5365_v18 = vpop.eup %5364 }
 0x762   :  { %v745_v19 = vmul.f32 %v5365_v18, %v729_v61 }
 0x764   :  { %v751_v26 = vmul.f32 %v750_v20, %v745_v19 }
 0x765   :  { %v5367_v24 = vpop.eup %5366 }
 0x766   :  { %v746_v25 = vmul.f32 %v5367_v24, %v730_v1  ;;  %v5755_v29 = vadd.f32 %v756_v27, %v751_v26  ;;  %v5779_v26 = vsub.s32 7, %v5663_v31 }
 0x768   :  { %v752_v28 = vmul.f32 %v750_v20, %v746_v25  ;;  %v1106_v25 = vpop.xlane.xlu1 %1105 }
 0x76a   :  { %v5757_v30 = vadd.f32 %v756_v27, %v752_v28  ;;  %v1108_v27 = vmul.f32 0.03125, %v1106_v25  ;;  %v1103_v28 = vpop.xlane.xlu0 %1102 }
 0x76b   :  { %v1107_v36 = vmul.f32 0.03125, %v1103_v28  ;;  %v85_v28 = vld [vmem:[#allocation7 + $0x58] sm:$0xff] }
 0x76c   :  { %v759_v34 = vpack.c.bf16 %v5757_v30, %v5755_v29  ;;  %v1110_v35 = vsub.f32 %v1066_v53, %v1108_v27  ;;  %v82_v27 = vld [vmem:[#allocation7 + $0x40] sm:$0xff] }
 0x76d   :  { %v1109_v22 = vsub.f32 %v1065_v54, %v1107_v36  ;;  %v5795_v54 = vld [vmem:[#allocation7 + $0xc0] sm:$0xff]  ;;  %v79_v36 = vld [vmem:[#allocation7 + $0x28] sm:$0xff] }
 0x76e   :  { %4987 = vmatmul.mubr.msk.bf16.vlgmr.msra.gmra.mxu0 %vm199_vm0, %v759_v34  ;;  %v838_v34 = vrot.slane %v5668_v33, %v5779_v26  ;;  %v1112_v42 = vmul.f32 %v1110_v35, %v1110_v35 }
 0x76f   :  { %5006 = vmatprep.mubr.msk.bf16.mxu0 %vm5601_vm1, %v5600_v17  ;;  %v1111_v33 = vmul.f32 %v1109_v22, %v1109_v22 }
 0x770   :  { %v1116_v21 = vsel %vm199_vm0, %v1112_v42, 0.0 }
 0x771   :  { %v1113_v51 = vsel %vm199_vm0, %v1111_v33, 0.0 }
 0x82e   :  { %v809_v60 = vpop.f32.mrf.mxu0 }
 0x82f   :  { %v810_v61 = vadd.f32 %v809_v60, %v763_v58 }
 0x830   :  { %v4988_v62 = vpop.f32.mrf.mxu0 }
 0x831   :  { %v816_v63 = vmul.f32 %v810_v61, %v810_v61 }
 0x832   :  { %v812_v0 = vpop.f32.mrf.mxu0 }
 0x833   :  { %v818_v1 = vmul.f32 %v816_v63, %v810_v61  ;;  %v813_v43 = vadd.f32 %v812_v0, %v763_v58 }
 0x834   :  { %v4989_v2 = vpop.f32.mrf.mxu0 }
 0x835   :  { %v820_v3 = vmul.f32 0.044715, %v818_v1  ;;  %v817_v4 = vmul.f32 %v813_v43, %v813_v43 }
 0x837   :  { %v822_v5 = vadd.f32 %v820_v3, %v810_v61  ;;  %v819_v44 = vmul.f32 %v817_v4, %v813_v43 }
 0x839   :  { %v824_v6 = vmul.f32 0.7978846, %v822_v5  ;;  %v821_v7 = vmul.f32 0.044715, %v819_v44 }
 0x83b   :  { %5368 = vtanh.f32 %v824_v6  ;;  %v823_v8 = vadd.f32 %v821_v7, %v813_v43 }
 0x83d   :  { %v825_v9 = vmul.f32 0.7978846, %v823_v8  ;;  %v5805_v8 = vld [vmem:[#allocation8 + $0x10] sm:$0xff] }
 0x83f   :  { %5370 = vtanh.f32 %v825_v9 }
 0x848   :  { %v5369_v10 = vpop.eup %5368 }
 0x849   :  { %v828_v11 = vadd.f32 1.0, %v5369_v10 }
 0x84b   :  { %v830_v13 = vmul.f32 0.5, %v828_v11  ;;  %v1130_v11 = vrot.slane %v5805_v8, %v5666_v32 }
 0x84c   :  { %v5371_v12 = vpop.eup %5370 }
 0x84d   :  { %v829_v14 = vadd.f32 1.0, %v5371_v12  ;;  %v832_v19 = vmul.f32 %v830_v13, %v810_v61 }
 0x84f   :  { %v831_v18 = vmul.f32 0.5, %v829_v14 }
 0x851   :  { %v833_v20 = vmul.f32 %v831_v18, %v813_v43  ;;  %v1136_v18 = vrot.slane %v5805_v8, %v5673_v37 }
 0x853   :  { %v834_v24 = vpack.c.bf16 %v833_v20, %v832_v19 }
 0x855   :  { %4999 = vmatmul.mubr.msk.bf16.vlgmr.msra.gmra.mxu1 %vm855_vm3, %v834_v24 }
 0x856   :  { %5022 = vmatprep.mubr.msk.bf16.mxu1 %vm5601_vm1, %v5600_v17 }
 0x915   :  { %v893_v38 = vpop.f32.mrf.mxu1 }
 0x916   :  { %v894_v39 = vadd.f32 %v893_v38, %v838_v34 }
 0x917   :  { %v5000_v40 = vpop.f32.mrf.mxu1 }
 0x918   :  { %v900_v41 = vadd.f32 %v894_v39, %v5755_v29  ;;  %v5789_v29 = vld [vmem:[#allocation7 + $0xf0] sm:$0xff] }
 0x919   :  { %v896_v45 = vpop.f32.mrf.mxu1  ;;  %v4699_v53 = vcombine.low %v5789_v29, %v5791_v52 }
 0x91a   :  { %v897_v47 = vadd.f32 %v896_v45, %v838_v34  ;;  %v902_v16 = vsel %vm199_vm0, %v900_v41, 0.0  ;;  %v76_v34 = vld [vmem:[#allocation7 + $0x10] sm:$0xff] }
 0x91b   :  { %903 = vadd.xlane.f32.xlu1 %v902_v16  ;;  %v5001_v31 = vpop.f32.mrf.mxu1  ;;  %5019 = vmatpush3.bf16.msra.mxu1 %v4699_v53  ;;  %v4692_v38 = vcombine.low %v76_v34, %v79_v36 }
 0x91c   :  { %v901_v49 = vadd.f32 %v897_v47, %v5757_v30  ;;  %v4698_v30 = vcombine.low %v5795_v54, %v5797_v55  ;;  %5020 = vmatprep.subr.bf16.mxu1 %v5600_v17  ;;  %v5822_v47 = vld [vmem:[#allocation8 + $0x8] sm:$0xf] }
 0x91d   :  { %v931_v16 = vrot.slane %v5822_v47, %v5666_v32  ;;  %v937_v33 = vrot.slane %v5822_v47, %v5673_v37 }
 0x91e   :  { %v905_v50 = vsel %vm199_vm0, %v901_v49, 0.0 }
 0x91f   :  { %1117 = vadd.xlane.f32.xlu1 %v1116_v21  ;;  %906 = vadd.xlane.f32.xlu0 %v905_v50 }
 0x920   :  { %5021 = vmatpush3.bf16.msra.mxu1 %v4698_v30 }
 0x921   :  { %5036 = vmatprep.subr.mxu1 %v5600_v17 }
 0x923   :  { %1114 = vadd.xlane.f32.xlu0 %v1113_v51 }
 0x9a4   :  { %v904_v56 = vpop.xlane.xlu1 %903 }
 0x9a5   :  { %v908_v58 = vmul.f32 0.03125, %v904_v56 }
 0x9a7   :  { %v910_v60 = vsub.f32 %v900_v41, %v908_v58 }
 0x9a8   :  { %v1118_v61 = vpop.xlane.xlu1 %1117  ;;  %v907_v62 = vpop.xlane.xlu0 %906 }
 0x9a9   :  { %v1120_v63 = vmul.f32 0.03125, %v1118_v61  ;;  %v909_v0 = vmul.f32 0.03125, %v907_v62  ;;  %v912_v1 = vmul.f32 %v910_v60, %v910_v60 }
 0x9ab   :  { %v1122_v43 = vadd.f32 1e-12, %v1120_v63  ;;  %v911_v2 = vsub.f32 %v901_v49, %v909_v0  ;;  %v914_v3 = vsel %vm199_vm0, %v912_v1, 0.0 }
 0x9ac   :  { %915 = vadd.xlane.f32.xlu1 %v914_v3  ;;  %v1115_v4 = vpop.xlane.xlu0 %1114 }
 0x9ad   :  { %5372 = vrsqrt.f32 %v1122_v43  ;;  %v1119_v5 = vmul.f32 0.03125, %v1115_v4  ;;  %v913_v44 = vmul.f32 %v911_v2, %v911_v2 }
 0x9af   :  { %v1121_v6 = vadd.f32 1e-12, %v1119_v5  ;;  %v917_v7 = vsel %vm199_vm0, %v913_v44, 0.0 }
 0x9b0   :  { %918 = vadd.xlane.f32.xlu0 %v917_v7  ;;  %v197_v7 = vrot.slane %v82_v27, 4 }
 0x9b1   :  { %5374 = vrsqrt.f32 %v1121_v6 }
 0x9ba   :  { %v5373_v9 = vpop.eup %5372 }
 0x9bb   :  { %v1126_v10 = vmul.f32 %v5373_v9, %v1110_v35  ;;  %v4693_v35 = vcombine.low %v82_v27, %v85_v28  ;;  %v198_v9 = vrot.slane %v85_v28, 4 }
 0x9bd   :  { %v1132_v14 = vmul.f32 %v1130_v11, %v1126_v10  ;;  %5003 = vmatpush3.bf16.msra.mxu0 %v4693_v35  ;;  %v4696_v10 = vcombine.low %v197_v7, %v198_v9 }
 0x9be   :  { %v5375_v12 = vpop.eup %5374  ;;  %5004 = vmatprep.subr.bf16.mxu0 %v5600_v17 }
 0x9bf   :  { %v1125_v13 = vmul.f32 %v5375_v12, %v1109_v22  ;;  %v5813_v24 = vadd.f32 %v1136_v18, %v1132_v14  ;;  %v196_v12 = vrot.slane %v79_v36, 4  ;;  %v945_v14 = vrot.slane %v5822_v47, %v5687_v46 }
 0x9c1   :  { %v1131_v19 = vmul.f32 %v1130_v11, %v1125_v13  ;;  %5005 = vmatpush3.bf16.msra.mxu0 %v4692_v38  ;;  %v195_v11 = vrot.slane %v76_v34, 4 }
 0x9c2   :  { %5010 = vmatprep.subr.bf16.mxu0 %v5600_v17 }
 0x9c3   :  { %v5811_v20 = vadd.f32 %v1136_v18, %v1131_v19  ;;  %v4695_v13 = vcombine.low %v195_v11, %v196_v12 }
 0x9c5   :  { %v1139_v25 = vpack.c.bf16 %v5813_v24, %v5811_v20 }
 0x9c7   :  { %5023 = vmatmul.mubr.msk.bf16.vlgmr.msra.gmra.mxu1 %vm199_vm0, %v1139_v25 }
 0x9c8   :  { %5038 = vmatprep.mubr.msk.f32.mxu1 %vm5601_vm1, %v5600_v17 }
 0xa35   :  { %v916_v39 = vpop.xlane.xlu1 %915 }
 0xa36   :  { %v920_v40 = vmul.f32 0.03125, %v916_v39 }
 0xa38   :  { %v922_v22 = vadd.f32 1e-12, %v920_v40  ;;  %v4705_v40 = vld.sshfl [vmem:[#allocation5 + $0x2] sm:$0x11 pattern:$0x75316420] }
 0xa39   :  { %v919_v41 = vpop.xlane.xlu0 %918 }
 0xa3a   :  { %5376 = vrsqrt.f32 %v922_v22  ;;  %v921_v42 = vmul.f32 0.03125, %v919_v41  ;;  %v1367_v41 = vrot.slane %v4705_v40, %v5704_v59 }
 0xa3c   :  { %v923_v45 = vadd.f32 1e-12, %v921_v42  ;;  %v1360_v42 = vcombine.high %v4705_v40, %v4705_v40 }
 0xa3e   :  { %5378 = vrsqrt.f32 %v923_v45 }
 0xa47   :  { %v5377_v31 = vpop.eup %5376 }
 0xa48   :  { %v926_v21 = vmul.f32 %v5377_v31, %v910_v60  ;;  %v1143_v60 = vrot.slane %v5805_v8, %v5687_v46  ;;  %v1378_v31 = vrot.slane %v1367_v41, %v5666_v32 }
 0xa4a   :  { %v932_v49 = vmul.f32 %v931_v16, %v926_v21  ;;  %v1374_v21 = vrot.slane %v1360_v42, %v5704_v59 }
 0xa4b   :  { %v5379_v50 = vpop.eup %5378 }
 0xa4c   :  { %v927_v51 = vmul.f32 %v5379_v50, %v911_v2  ;;  %v938_v30 = vadd.f32 %v937_v33, %v932_v49 }
 0xa4e   :  { %v933_v53 = vmul.f32 %v931_v16, %v927_v51  ;;  %v940_v58 = vpack.c.bf16 %v938_v30, %v938_v30 }
 0xa50   :  { %v939_v56 = vadd.f32 %v937_v33, %v933_v53  ;;  %v948_v63 = vunpack.c.l.b16 %v940_v58  ;;  %v1382_v53 = vrot.slane %v1374_v21, %v5666_v32 }
 0xa52   :  { %v941_v61 = vpack.c.bf16 %v939_v56, %v939_v56 }
 0xa54   :  { %v949_v62 = vunpack.c.l.b16 %v941_v61 }
 0xa56   :  { %v950_v0 = vrot.slane %v949_v62, 7 }
 0xa58   :  { %v952_v1 = vsel %vm951_vm4, %v950_v0, %v948_v63 }
 0xa59   :  { %v953_v43 = vpack.c.b16 %v952_v1, %v952_v1 }
 0xa5b   :  { %5007 = vmatmul.mubr.msk.bf16.vlgmr.msra.gmra.mxu0 %vm199_vm0, %v953_v43 }
 0xa5c   :  { %5014 = vmatprep.mubr.msk.bf16.mxu0 %vm5601_vm1, %v5600_v17  ;;  %5011 = vmatpush3.bf16.msra.mxu0 %v4696_v10 }
 0xa5d   :  { %5012 = vmatprep.subr.bf16.mxu0 %v5600_v17 }
 0xa60   :  { %5013 = vmatpush3.bf16.msra.mxu0 %v4695_v13 }
 0xa61   :  { %5026 = vmatprep.subr.mxu0 %v5600_v17 }
 0xa87   :  { %v1189_v2 = vpop.f32.mrf.mxu1 }
 0xa88   :  { %v5834_v3 = vadd.f32 %v1189_v2, %v1143_v60 }
 0xa89   :  { %v5024_v4 = vpop.f32.mrf.mxu1 }
 0xa8a   :  { %1197 = vrot.lane.b32.xlu0 %v5834_v3, %s5602_s2 }
 0xa8b   :  { %v1192_v5 = vpop.f32.mrf.mxu1 }
 0xa8c   :  { %v5838_v44 = vadd.f32 %v1192_v5, %v1143_v60 }
 0xa8d   :  { %v5025_v6 = vpop.f32.mrf.mxu1 }
 0xa8e   :  { %1274 = vrot.lane.b32.xlu1 %v5838_v44, %s5602_s2 }
 0xafc   :  { %v1198_v39 = vpop.permute.xlu0 %1197 }
 0xb00   :  { %v1275_v34 = vpop.permute.xlu1 %1274 }
 0xb1b   :  { %v999_v18 = vpop.f32.mrf.mxu0 }
 0xb1c   :  { %v1000_v19 = vadd.f32 %v999_v18, %v945_v14 }
 0xb1d   :  { %v5008_v25 = vpop.f32.mrf.mxu0 }
 0xb1e   :  { %5380 = vtanh.f32 %v1000_v19  ;;  %v1075_v19 = vrot.slane %v5789_v29, 4  ;;  %v1076_v25 = vrot.slane %v5791_v52, 4  ;;  %v1565_v29 = vrot.slane %v5805_v8, %v5733_v48 }
 0xb1f   :  { %v1002_v35 = vpop.f32.mrf.mxu0 }
 0xb20   :  { %v4709_v35 = vcombine.low %v1075_v19, %v1076_v25 }
 0xb21   :  { %v5009_v27 = vpop.f32.mrf.mxu0 }
 0xb22   :  { %v1073_v27 = vrot.slane %v5795_v54, 4 }
 0xb2b   :  { %v5381_v28 = vpop.eup %5380 }
 0xb2c   :  { %v1006_v38 = vpack.c.bf16 %v5381_v28, %v5381_v28  ;;  %v1074_v28 = vrot.slane %v5797_v55, 4 }
 0xb2e   :  { %5015 = vmatmul.mubr.msk.bf16.vlgmr.msra.gmra.mxu0 %vm199_vm0, %v1006_v38  ;;  %v4708_v38 = vcombine.low %v1073_v27, %v1074_v28  ;;  %v104_v28 = vld [vmem:[#allocation7 + $0x158] sm:$0xff] }
 0xb2f   :  { %5027 = vmatpush3.xpose.msk.msra.mxu0 %vm199_vm0, %v1198_v39  ;;  %5028 = vmatprep.mubr.msk.f32.mxu0 %vm5601_vm1, %v5600_v17 }
 0xb30   :  { %5031 = vmatprep.subr.mxu0 %v5600_v17 }
 0xb36   :  { %5029 = vmatmul.mubr.msk.f32.vlgmr.msra.gmra.mxu0 %vm199_vm0, %v5834_v3 }
 0xb37   :  { %5032 = vmatpush3.xpose.msk.msra.mxu0 %vm199_vm0, %v1275_v34  ;;  %5033 = vmatprep.mubr.msk.f32.mxu0 %vm5601_vm1, %v5600_v17 }
 0xb38   :  { %5041 = vmatprep.subr.mxu0 %v5600_v17 }
 0xb3a   :  { %5034 = vmatmul.mubr.msk.f32.vlgmr.msra.gmra.mxu0 %vm199_vm0, %v5838_v44 }
 0xb3b   :  { %5043 = vmatprep.mubr.msk.f32.mxu0 %vm5601_vm1, %v5600_v17 }
 0xbee   :  { %v5861_v36 = vpop.f32.mrf.mxu0 }
 0xbf0   :  { %v5016_v22 = vpop.f32.mrf.mxu0 }
 0xbf2   :  { %v1059_v45 = vpop.f32.mrf.mxu0 }
 0xbf4   :  { %v5017_v16 = vpop.f32.mrf.mxu0 }
 0xbf6   :  { %v1269_v49 = vpop.f32.mrf.mxu0 }
 0xbf7   :  { %v1350_v33 = vmul.f32 0.17677669, %v1269_v49 }
 0xbf8   :  { %v5030_v50 = vpop.f32.mrf.mxu0 }
 0xbf9   :  { %v1385_v51 = vadd.f32 %v1378_v31, %v1350_v33 }
 0xbfa   :  { %v1346_v30 = vpop.f32.mrf.mxu0 }
 0xbfb   :  { %v1351_v56 = vmul.f32 0.17677669, %v1346_v30  ;;  %v1387_v58 = vsel %vm487_vm2, %v1385_v51, -inf }
 0xbfc   :  { %1388 = vmax.xlane.f32.xlu1 %v1387_v58  ;;  %v5035_v61 = vpop.f32.mrf.mxu0 }
 0xbfd   :  { %v1386_v62 = vadd.f32 %v1382_v53, %v1351_v56 }
 0xbff   :  { %v1390_v63 = vsel %vm487_vm2, %v1386_v62, -inf }
 0xc00   :  { %1391 = vmax.xlane.f32.xlu0 %v1390_v63 }
 0xc85   :  { %v1389_v0 = vpop.xlane.xlu1 %1388 }
 0xc86   :  { %v1393_v1 = vsub.f32 %v1385_v51, %v1389_v0  ;;  %v97_v0 = vld [vmem:[#allocation7 + $0xf8] sm:$0xff] }
 0xc88   :  { %v1395_v43 = vmul.f32 1.442695, %v1393_v1  ;;  %v100_v1 = vld [vmem:[#allocation7 + $0x110] sm:$0xff] }
 0xc89   :  { %v1392_v60 = vpop.xlane.xlu0 %1391 }
 0xc8a   :  { %5382 = vpow2.f32 %v1395_v43  ;;  %v1394_v2 = vsub.f32 %v1386_v62, %v1392_v60  ;;  %v91_v43 = vld [vmem:[#allocation7 + $0xc8] sm:$0xff]  ;;  %v94_v60 = vld [vmem:[#allocation7 + $0xe0] sm:$0xff] }
 0xc8c   :  { %v1397_v4 = vmul.f32 1.442695, %v1394_v2  ;;  %v4711_v2 = vcombine.low %v91_v43, %v94_v60 }
 0xc8e   :  { %5384 = vpow2.f32 %v1397_v4 }
 0xc97   :  { %v5383_v5 = vpop.eup %5382 }
 0xc98   :  { %v1399_v6 = vsel %vm487_vm2, %v5383_v5, 0.0 }
 0xc99   :  { %1400 = vadd.xlane.f32.xlu0 %v1399_v6 }
 0xc9b   :  { %v5385_v7 = vpop.eup %5384 }
 0xc9c   :  { %v1402_v9 = vsel %vm487_vm2, %v5385_v7, 0.0 }
 0xc9d   :  { %1403 = vadd.xlane.f32.xlu1 %v1402_v9 }
 0xcae   :  { %1485 = vrot.lane.b32.xlu1 %v5838_v44, %s5604_s3 }
 0xcaf   :  { %1409 = vrot.lane.b32.xlu0 %v5834_v3, %s5604_s3 }
 0xd22   :  { %v1401_v10 = vpop.xlane.xlu0 %1400 }
 0xd23   :  { %5386 = vrcp.f32 %v1401_v10 }
 0xd26   :  { %v1410_v11 = vpop.permute.xlu0 %1409  ;;  %v1404_v12 = vpop.xlane.xlu1 %1403 }
 0xd27   :  { %5388 = vrcp.f32 %v1404_v12  ;;  %5037 = vmatpush3.msra.mxu1 %v1410_v11 }
 0xd28   :  { %5046 = vmatprep.subr.bf16.mxu1 %v5600_v17 }
 0xd2a   :  { %v1486_v13 = vpop.permute.xlu1 %1485 }
 0xd2b   :  { %5042 = vmatpush3.msra.mxu0 %v1486_v13  ;;  %v1649_v13 = vrot.slane %v5805_v8, %v5746_v15 }
 0xd2c   :  { %5054 = vmatprep.subr.bf16.mxu0 %v5600_v17 }
 0xd30   :  { %v5387_v14 = vpop.eup %5386 }
 0xd31   :  { %v1407_v18 = vmul.f32 %v5387_v14, %v5383_v5 }
 0xd33   :  { %5039 = vmatmul.mubr.msk.f32.vlgmr.msra.gmra.mxu1 %vm487_vm2, %v1407_v18 }
 0xd34   :  { %v5389_v44 = vpop.eup %5388  ;;  %5050 = vmatprep.mubr.msk.bf16.mxu1 %vm5601_vm1, %v5600_v17  ;;  %5047 = vmatpush3.bf16.msra.mxu1 %v4709_v35 }
 0xd35   :  { %v1408_v3 = vmul.f32 %v5389_v44, %v5385_v7  ;;  %5048 = vmatprep.subr.bf16.mxu1 %v5600_v17 }
 0xd37   :  { %5044 = vmatmul.mubr.msk.f32.vlgmr.msra.gmra.mxu0 %vm487_vm2, %v1408_v3  ;;  %v1655_v3 = vrot.slane %v5805_v8, %v5751_v23 }
 0xd38   :  { %5058 = vmatprep.mubr.msk.bf16.mxu0 %vm5601_vm1, %v5600_v17  ;;  %5049 = vmatpush3.bf16.msra.mxu1 %v4708_v38  ;;  %v105_v38 = vld [vmem:[#allocation7 + $0x170] sm:$0xff] }
 0xd39   :  { %5062 = vmatprep.subr.bf16.mxu1 %v5600_v17 }
 0xdf3   :  { %v1481_v39 = vpop.f32.mrf.mxu1 }
 0xdf5   :  { %v5040_v34 = vpop.f32.mrf.mxu1 }
 0xdf6   :  { %v1092_v34 = vrot.slane %v105_v38, 4 }
 0xdf7   :  { %v1557_v40 = vpop.f32.mrf.mxu0 }
 0xdf8   :  { %v1561_v22 = vpack.c.bf16 %v1557_v40, %v1481_v39  ;;  %v1091_v39 = vrot.slane %v104_v28, 4  ;;  %v1737_v28 = vrot.slane %v5805_v8, %v5779_v26 }
 0xdf9   :  { %v5045_v41 = vpop.f32.mrf.mxu0 }
 0xdfa   :  { %5051 = vmatmul.mubr.msk.bf16.vlgmr.msra.gmra.mxu1 %vm199_vm0, %v1561_v22  ;;  %v4717_v40 = vcombine.low %v1091_v39, %v1092_v34  ;;  %v102_v22 = vld [vmem:[#allocation7 + $0x128] sm:$0xff]  ;;  %v103_v41 = vld [vmem:[#allocation7 + $0x140] sm:$0xff] }
 0xdfb   :  { %5070 = vmatprep.mubr.msk.bf16.mxu1 %vm5601_vm1, %v5600_v17 }
 0xdfc   :  { %5063 = vmatpush3.bf16.msra.mxu1 %v4717_v40 }
 0xdfd   :  { %5064 = vmatprep.subr.bf16.mxu1 %v5600_v17 }
 0xeba   :  { %v1611_v52 = vpop.f32.mrf.mxu1 }
 0xebb   :  { %v1612_v54 = vadd.f32 %v1611_v52, %v1565_v29  ;;  %v1090_v52 = vrot.slane %v103_v41, 4 }
 0xebc   :  { %v5052_v55 = vpop.f32.mrf.mxu1 }
 0xebd   :  { %v1618_v42 = vadd.f32 %v1612_v54, %v5811_v20  ;;  %v1087_v55 = vrot.slane %v97_v0, 4 }
 0xebe   :  { %v1614_v45 = vpop.f32.mrf.mxu1 }
 0xebf   :  { %v1615_v16 = vadd.f32 %v1614_v45, %v1565_v29  ;;  %v1620_v31 = vsel %vm199_vm0, %v1618_v42, 0.0  ;;  %v1089_v29 = vrot.slane %v102_v22, 4 }
 0xec0   :  { %1621 = vadd.xlane.f32.xlu1 %v1620_v31  ;;  %v5053_v21 = vpop.f32.mrf.mxu1  ;;  %v1086_v31 = vrot.slane %v94_v60, 4 }
 0xec1   :  { %v1619_v49 = vadd.f32 %v1615_v16, %v5813_v24  ;;  %v4712_v24 = vcombine.low %v97_v0, %v100_v1  ;;  %v4716_v54 = vcombine.low %v1089_v29, %v1090_v52  ;;  %v1085_v16 = vrot.slane %v91_v43, 4 }
 0xec3   :  { %v1623_v33 = vsel %vm199_vm0, %v1619_v49, 0.0  ;;  %5055 = vmatpush3.bf16.msra.mxu0 %v4712_v24  ;;  %5065 = vmatpush3.bf16.msra.mxu1 %v4716_v54  ;;  %v4714_v21 = vcombine.low %v1085_v16, %v1086_v31 }
 0xec4   :  { %1624 = vadd.xlane.f32.xlu0 %v1623_v33  ;;  %5056 = vmatprep.subr.bf16.mxu0 %v5600_v17  ;;  %v1962_v33 = vld [vmem:[#allocation2 + $0x20] sm:$0xff] }
 0xec5   :  { %5066 = vmatprep.subr.bf16.mxu1 %v5600_v17 }
 0xec7   :  { %5057 = vmatpush3.bf16.msra.mxu0 %v4711_v2 }
 0xec8   :  { %5074 = vmatprep.subr.bf16.mxu0 %v5600_v17 }
 0xf49   :  { %v1622_v50 = vpop.xlane.xlu1 %1621 }
 0xf4a   :  { %v1626_v51 = vmul.f32 0.03125, %v1622_v50 }
 0xf4c   :  { %v1628_v53 = vsub.f32 %v1618_v42, %v1626_v51  ;;  %v1088_v42 = vrot.slane %v100_v1, 4  ;;  %v1998_v51 = vsel %vm199_vm0, %v1962_v33, 0.0 }
 0xf4d   :  { %v1625_v30 = vpop.xlane.xlu0 %1624 }
 0xf4e   :  { %v1627_v56 = vmul.f32 0.03125, %v1625_v30  ;;  %v1630_v58 = vmul.f32 %v1628_v53, %v1628_v53  ;;  %v4715_v45 = vcombine.low %v1087_v55, %v1088_v42 }
 0xf50   :  { %v1629_v61 = vsub.f32 %v1619_v49, %v1627_v56  ;;  %v1632_v20 = vsel %vm199_vm0, %v1630_v58, 0.0  ;;  %5067 = vmatpush3.bf16.msra.mxu1 %v4715_v45  ;;  %v1963_v49 = vld [vmem:[#allocation2 + $0x28] sm:$0xff] }
 0xf51   :  { %1633 = vadd.xlane.f32.xlu0 %v1632_v20  ;;  %5068 = vmatprep.subr.bf16.mxu1 %v5600_v17  ;;  %v2001_v50 = vsel %vm199_vm0, %v1963_v49, 0.0 }
 0xf52   :  { %v1631_v62 = vmul.f32 %v1629_v61, %v1629_v61 }
 0xf54   :  { %v1635_v63 = vsel %vm199_vm0, %v1631_v62, 0.0  ;;  %5069 = vmatpush3.bf16.msra.mxu1 %v4714_v21 }
 0xf55   :  { %1636 = vadd.xlane.f32.xlu1 %v1635_v63  ;;  %5090 = vmatprep.subr.bf16.mxu1 %v5600_v17 }
 0xf56   :  { %1999 = vadd.xlane.f32.xlu0 %v1998_v51  ;;  %v5940_v51 = vld [vmem:[#allocation7 + $0x180] sm:$0xff] }
 0xf59   :  { %2002 = vadd.xlane.f32.xlu1 %v2001_v50 }
 0xfda   :  { %v1634_v4 = vpop.xlane.xlu0 %1633 }
 0xfdb   :  { %v1638_v5 = vmul.f32 0.03125, %v1634_v4 }
 0xfdd   :  { %v1640_v6 = vadd.f32 1e-12, %v1638_v5 }
 0xfde   :  { %v1637_v7 = vpop.xlane.xlu1 %1636 }
 0xfdf   :  { %5390 = vrsqrt.f32 %v1640_v6  ;;  %v1639_v9 = vmul.f32 0.03125, %v1637_v7 }
 0xfe1   :  { %v1641_v10 = vadd.f32 1e-12, %v1639_v9 }
 0xfe3   :  { %5392 = vrsqrt.f32 %v1641_v10 }
 0xfec   :  { %v5391_v11 = vpop.eup %5390 }
 0xfed   :  { %v1644_v12 = vmul.f32 %v5391_v11, %v1628_v53  ;;  %v1662_v53 = vrot.slane %v5805_v8, %v5771_v57 }
 0xfef   :  { %v1650_v44 = vmul.f32 %v1649_v13, %v1644_v12 }
 0xff0   :  { %v5393_v14 = vpop.eup %5392 }
 0xff1   :  { %v1645_v18 = vmul.f32 %v5393_v14, %v1629_v61  ;;  %v5906_v25 = vadd.f32 %v1655_v3, %v1650_v44 }
 0xff3   :  { %v1651_v19 = vmul.f32 %v1649_v13, %v1645_v18 }
 0xff5   :  { %v5908_v35 = vadd.f32 %v1655_v3, %v1651_v19  ;;  %v2003_v3 = vpop.xlane.xlu1 %2002 }
 0xff6   :  { %v2005_v19 = vmul.f32 0.03125, %v2003_v3 }
 0xff7   :  { %v1658_v27 = vpack.c.bf16 %v5908_v35, %v5906_v25 }
 0xff8   :  { %v2007_v38 = vsub.f32 %v1963_v49, %v2005_v19 }
 0xff9   :  { %5059 = vmatmul.mubr.msk.bf16.vlgmr.msra.gmra.mxu0 %vm199_vm0, %v1658_v27  ;;  %v2000_v27 = vpop.xlane.xlu0 %1999 }
 0xffa   :  { %5078 = vmatprep.mubr.msk.bf16.mxu0 %vm5601_vm1, %v5600_v17  ;;  %v2004_v39 = vmul.f32 0.03125, %v2000_v27  ;;  %v2009_v52 = vmul.f32 %v2007_v38, %v2007_v38 }
 0xffc   :  { %v2006_v41 = vsub.f32 %v1962_v33, %v2004_v39  ;;  %v2013_v16 = vsel %vm199_vm0, %v2009_v52, 0.0  ;;  %v5936_v33 = vld [vmem:[#allocation7 + $0x1c8] sm:$0xff]  ;;  %v92_v39 = vld [vmem:[#allocation7 + $0xd0] sm:$0xff] }
 0xffe   :  { %v2008_v8 = vmul.f32 %v2006_v41, %v2006_v41 }
0x1000   :  { %v2010_v49 = vsel %vm199_vm0, %v2008_v8, 0.0 }
0x10b9   :  { %v1708_v30 = vpop.f32.mrf.mxu0 }
0x10ba   :  { %v1709_v56 = vadd.f32 %v1708_v30, %v1662_v53 }
0x10bb   :  { %v5060_v58 = vpop.f32.mrf.mxu0 }
0x10bc   :  { %v1715_v61 = vmul.f32 %v1709_v56, %v1709_v56 }
0x10bd   :  { %v1711_v20 = vpop.f32.mrf.mxu0 }
0x10be   :  { %v1717_v62 = vmul.f32 %v1715_v61, %v1709_v56  ;;  %v1712_v63 = vadd.f32 %v1711_v20, %v1662_v53  ;;  %v5942_v53 = vld [vmem:[#allocation7 + $0x198] sm:$0xff] }
0x10bf   :  { %v5061_v0 = vpop.f32.mrf.mxu0 }
0x10c0   :  { %v1719_v1 = vmul.f32 0.044715, %v1717_v62  ;;  %v1716_v24 = vmul.f32 %v1712_v63, %v1712_v63 }
0x10c2   :  { %v1721_v43 = vadd.f32 %v1719_v1, %v1709_v56  ;;  %v1718_v60 = vmul.f32 %v1716_v24, %v1712_v63 }
0x10c4   :  { %v1723_v2 = vmul.f32 0.7978846, %v1721_v43  ;;  %v1720_v4 = vmul.f32 0.044715, %v1718_v60 }
0x10c6   :  { %5394 = vtanh.f32 %v1723_v2  ;;  %v1722_v5 = vadd.f32 %v1720_v4, %v1712_v63 }
0x10c8   :  { %v1724_v6 = vmul.f32 0.7978846, %v1722_v5 }
0x10ca   :  { %5396 = vtanh.f32 %v1724_v6 }
0x10d3   :  { %v5395_v7 = vpop.eup %5394 }
0x10d4   :  { %v1727_v9 = vadd.f32 1.0, %v5395_v7  ;;  %v5950_v7 = vld [vmem:[#allocation8 + $0x20] sm:$0xff] }
0x10d6   :  { %v1729_v11 = vmul.f32 0.5, %v1727_v9 }
0x10d7   :  { %v5397_v10 = vpop.eup %5396 }
0x10d8   :  { %v1728_v12 = vadd.f32 1.0, %v5397_v10  ;;  %v1731_v14 = vmul.f32 %v1729_v11, %v1709_v56  ;;  %v2027_v11 = vrot.slane %v5950_v7, %v5666_v32 }
0x10da   :  { %v1730_v13 = vmul.f32 0.5, %v1728_v12 }
0x10dc   :  { %v1732_v18 = vmul.f32 %v1730_v13, %v1712_v63 }
0x10de   :  { %v1733_v44 = vpack.c.bf16 %v1732_v18, %v1731_v14  ;;  %v2033_v18 = vrot.slane %v5950_v7, %v5673_v37 }
0x10e0   :  { %5071 = vmatmul.mubr.msk.bf16.vlgmr.msra.gmra.mxu1 %vm855_vm3, %v1733_v44 }
0x10e1   :  { %5094 = vmatprep.mubr.msk.bf16.mxu1 %vm5601_vm1, %v5600_v17 }
0x11a0   :  { %v1791_v34 = vpop.f32.mrf.mxu1 }
0x11a1   :  { %v1792_v40 = vadd.f32 %v1791_v34, %v1737_v28 }
0x11a2   :  { %v5072_v22 = vpop.f32.mrf.mxu1 }
0x11a3   :  { %v1798_v29 = vadd.f32 %v1792_v40, %v5906_v25  ;;  %v5934_v25 = vld [vmem:[#allocation7 + $0x1b0] sm:$0xff]  ;;  %v95_v40 = vld [vmem:[#allocation7 + $0xe8] sm:$0xff] }
0x11a4   :  { %v1794_v54 = vpop.f32.mrf.mxu1  ;;  %v4726_v50 = vcombine.low %v5934_v25, %v5936_v33  ;;  %v4719_v22 = vcombine.low %v92_v39, %v95_v40 }
0x11a5   :  { %v1795_v55 = vadd.f32 %v1794_v54, %v1737_v28  ;;  %v1800_v42 = vsel %vm199_vm0, %v1798_v29, 0.0  ;;  %v98_v28 = vld [vmem:[#allocation7 + $0x100] sm:$0xff] }
0x11a6   :  { %1801 = vadd.xlane.f32.xlu1 %v1800_v42  ;;  %v5073_v45 = vpop.f32.mrf.mxu1  ;;  %5091 = vmatpush3.bf16.msra.mxu1 %v4726_v50 }
0x11a7   :  { %v1799_v31 = vadd.f32 %v1795_v55, %v5908_v35  ;;  %v4725_v35 = vcombine.low %v5940_v51, %v5942_v53  ;;  %5092 = vmatprep.subr.bf16.mxu1 %v5600_v17  ;;  %v5967_v45 = vld [vmem:[#allocation8 + $0x18] sm:$0xf] }
0x11a9   :  { %v1803_v21 = vsel %vm199_vm0, %v1799_v31, 0.0 }
0x11aa   :  { %2014 = vadd.xlane.f32.xlu1 %v2013_v16  ;;  %1804 = vadd.xlane.f32.xlu0 %v1803_v21  ;;  %v1829_v16 = vrot.slane %v5967_v45, %v5666_v32 }
0x11ab   :  { %5093 = vmatpush3.bf16.msra.mxu1 %v4725_v35 }
0x11ac   :  { %5108 = vmatprep.subr.mxu1 %v5600_v17 }
0x11ae   :  { %2011 = vadd.xlane.f32.xlu0 %v2010_v49  ;;  %v1835_v49 = vrot.slane %v5967_v45, %v5673_v37 }
0x122f   :  { %v1802_v30 = vpop.xlane.xlu1 %1801 }
0x1230   :  { %v1806_v56 = vmul.f32 0.03125, %v1802_v30 }
0x1232   :  { %v1808_v58 = vsub.f32 %v1798_v29, %v1806_v56 }
0x1233   :  { %v2015_v61 = vpop.xlane.xlu1 %2014  ;;  %v1805_v20 = vpop.xlane.xlu0 %1804 }
0x1234   :  { %v2017_v62 = vmul.f32 0.03125, %v2015_v61  ;;  %v1807_v63 = vmul.f32 0.03125, %v1805_v20  ;;  %v1810_v0 = vmul.f32 %v1808_v58, %v1808_v58 }
0x1236   :  { %v2019_v1 = vadd.f32 1e-12, %v2017_v62  ;;  %v1809_v24 = vsub.f32 %v1799_v31, %v1807_v63  ;;  %v1812_v43 = vsel %vm199_vm0, %v1810_v0, 0.0 }
0x1237   :  { %1813 = vadd.xlane.f32.xlu1 %v1812_v43  ;;  %v2012_v60 = vpop.xlane.xlu0 %2011 }
0x1238   :  { %5398 = vrsqrt.f32 %v2019_v1  ;;  %v2016_v2 = vmul.f32 0.03125, %v2012_v60  ;;  %v1811_v4 = vmul.f32 %v1809_v24, %v1809_v24 }
0x123a   :  { %v2018_v5 = vadd.f32 1e-12, %v2016_v2  ;;  %v1815_v6 = vsel %vm199_vm0, %v1811_v4, 0.0 }
0x123b   :  { %1816 = vadd.xlane.f32.xlu0 %v1815_v6 }
0x123c   :  { %5400 = vrsqrt.f32 %v2018_v5 }
0x1245   :  { %v5399_v9 = vpop.eup %5398 }
0x1246   :  { %v2023_v10 = vmul.f32 %v5399_v9, %v2007_v38  ;;  %v101_v38 = vld [vmem:[#allocation7 + $0x118] sm:$0xff] }
0x1247   :  { %v4720_v34 = vcombine.low %v98_v28, %v101_v38 }
0x1248   :  { %v2029_v14 = vmul.f32 %v2027_v11, %v2023_v10  ;;  %v1099_v10 = vrot.slane %v98_v28, 4 }
0x1249   :  { %v5401_v12 = vpop.eup %5400  ;;  %5075 = vmatpush3.bf16.msra.mxu0 %v4720_v34 }
0x124a   :  { %v2022_v13 = vmul.f32 %v5401_v12, %v2006_v41  ;;  %v5958_v19 = vadd.f32 %v2033_v18, %v2029_v14  ;;  %5076 = vmatprep.subr.bf16.mxu0 %v5600_v17  ;;  %v1098_v14 = vrot.slane %v95_v40, 4  ;;  %v1010_v40 = vrot.slane %v5822_v47, %v5733_v48 }
0x124c   :  { %v2028_v44 = vmul.f32 %v2027_v11, %v2022_v13  ;;  %v1100_v11 = vrot.slane %v101_v38, 4  ;;  %v1097_v13 = vrot.slane %v92_v39, 4 }
0x124d   :  { %5077 = vmatpush3.bf16.msra.mxu0 %v4719_v22 }
0x124e   :  { %v5956_v3 = vadd.f32 %v2033_v18, %v2028_v44  ;;  %5082 = vmatprep.subr.bf16.mxu0 %v5600_v17  ;;  %v4723_v12 = vcombine.low %v1099_v10, %v1100_v11  ;;  %v4722_v18 = vcombine.low %v1097_v13, %v1098_v14  ;;  %v1843_v44 = vrot.slane %v5967_v45, %v5687_v46 }
0x1250   :  { %v2036_v27 = vpack.c.bf16 %v5958_v19, %v5956_v3 }
0x1252   :  { %5095 = vmatmul.mubr.msk.bf16.vlgmr.msra.gmra.mxu1 %vm199_vm0, %v2036_v27 }
0x1253   :  { %5110 = vmatprep.mubr.msk.f32.mxu1 %vm5601_vm1, %v5600_v17 }
0x12c0   :  { %v1814_v41 = vpop.xlane.xlu1 %1813 }
0x12c1   :  { %v1818_v29 = vmul.f32 0.03125, %v1814_v41 }
0x12c3   :  { %v1820_v52 = vadd.f32 1e-12, %v1818_v29 }
0x12c4   :  { %v1817_v54 = vpop.xlane.xlu0 %1816 }
0x12c5   :  { %5402 = vrsqrt.f32 %v1820_v52  ;;  %v1819_v55 = vmul.f32 0.03125, %v1817_v54  ;;  %v1907_v54 = vrot.slane %v5967_v45, %v5733_v48 }
0x12c7   :  { %v1821_v42 = vadd.f32 1e-12, %v1819_v55  ;;  %v1057_v55 = vadd.f32 %v5861_v36, %v1010_v40 }
0x12c9   :  { %5404 = vrsqrt.f32 %v1821_v42 }
0x12d2   :  { %v5403_v31 = vpop.eup %5402 }
0x12d3   :  { %v1824_v8 = vmul.f32 %v5403_v31, %v1808_v58  ;;  %v2040_v58 = vrot.slane %v5950_v7, %v5687_v46 }
0x12d5   :  { %v1830_v21 = vmul.f32 %v1829_v16, %v1824_v8 }
0x12d6   :  { %v5405_v50 = vpop.eup %5404 }
0x12d7   :  { %v1825_v35 = vmul.f32 %v5405_v50, %v1809_v24  ;;  %v1836_v56 = vadd.f32 %v1835_v49, %v1830_v21  ;;  %v1062_v21 = vmul.f32 0.25, %v1057_v55  ;;  %v1971_v55 = vrot.slane %v5942_v53, 4 }
0x12d9   :  { %v1831_v30 = vmul.f32 %v1829_v16, %v1825_v35  ;;  %v1838_v20 = vpack.c.bf16 %v1836_v56, %v1836_v56  ;;  %v4732_v16 = vld.sshfl [vmem:[#allocation5 + $0x4] sm:$0x11 pattern:$0x75316420] }
0x12da   :  { %v2264_v50 = vrot.slane %v4732_v16, %v5704_v59  ;;  %v2257_v35 = vcombine.high %v4732_v16, %v4732_v16 }
0x12db   :  { %v1837_v61 = vadd.f32 %v1835_v49, %v1831_v30  ;;  %v1846_v0 = vunpack.c.l.b16 %v1838_v20 }
0x12dc   :  { %v2275_v47 = vrot.slane %v2264_v50, %v5666_v32  ;;  %v2271_v20 = vrot.slane %v2257_v35, %v5704_v59 }
0x12dd   :  { %v1839_v62 = vpack.c.bf16 %v1837_v61, %v1837_v61 }
0x12df   :  { %v1847_v63 = vunpack.c.l.b16 %v1839_v62 }
0x12e1   :  { %v1848_v1 = vrot.slane %v1847_v63, 7 }
0x12e3   :  { %v1849_v43 = vsel %vm951_vm4, %v1848_v1, %v1846_v0  ;;  %v2279_v0 = vrot.slane %v2271_v20, %v5666_v32 }
0x12e4   :  { %v1850_v60 = vpack.c.b16 %v1849_v43, %v1849_v43 }
0x12e6   :  { %5079 = vmatmul.mubr.msk.bf16.vlgmr.msra.gmra.mxu0 %vm199_vm0, %v1850_v60 }
0x12e7   :  { %5086 = vmatprep.mubr.msk.bf16.mxu0 %vm5601_vm1, %v5600_v17  ;;  %5083 = vmatpush3.bf16.msra.mxu0 %v4723_v12 }
0x12e8   :  { %5084 = vmatprep.subr.bf16.mxu0 %v5600_v17 }
0x12eb   :  { %5085 = vmatpush3.bf16.msra.mxu0 %v4722_v18 }
0x12ec   :  { %5098 = vmatprep.subr.mxu0 %v5600_v17 }
0x1312   :  { %v2086_v24 = vpop.f32.mrf.mxu1 }
0x1313   :  { %v5979_v2 = vadd.f32 %v2086_v24, %v2040_v58 }
0x1314   :  { %v5096_v4 = vpop.f32.mrf.mxu1 }
0x1315   :  { %2094 = vrot.lane.b32.xlu0 %v5979_v2, %s5602_s2 }
0x1316   :  { %v2089_v5 = vpop.f32.mrf.mxu1 }
0x1317   :  { %v5983_v6 = vadd.f32 %v2089_v5, %v2040_v58 }
0x1318   :  { %v5097_v9 = vpop.f32.mrf.mxu1 }
0x1319   :  { %2171 = vrot.lane.b32.xlu1 %v5983_v6, %s5602_s2 }
0x1387   :  { %v2095_v52 = vpop.permute.xlu0 %2094 }
0x138b   :  { %v2172_v39 = vpop.permute.xlu1 %2171 }
0x13a6   :  { %v1896_v27 = vpop.f32.mrf.mxu0 }
0x13a7   :  { %v1897_v34 = vadd.f32 %v1896_v27, %v1843_v44 }
0x13a8   :  { %v5080_v22 = vpop.f32.mrf.mxu0 }
0x13a9   :  { %5406 = vtanh.f32 %v1897_v34 }
0x13aa   :  { %v1899_v41 = vpop.f32.mrf.mxu0 }
0x13ac   :  { %v5081_v28 = vpop.f32.mrf.mxu0 }
0x13b6   :  { %v5407_v38 = vpop.eup %5406 }
0x13b7   :  { %v1903_v29 = vpack.c.bf16 %v5407_v38, %v5407_v38 }
0x13b9   :  { %5087 = vmatmul.mubr.msk.bf16.vlgmr.msra.gmra.mxu0 %vm199_vm0, %v1903_v29 }
0x13ba   :  { %5099 = vmatpush3.xpose.msk.msra.mxu0 %vm199_vm0, %v2095_v52  ;;  %5100 = vmatprep.mubr.msk.f32.mxu0 %vm5601_vm1, %v5600_v17  ;;  %v1972_v52 = vrot.slane %v5934_v25, 4  ;;  %v2462_v25 = vrot.slane %v5950_v7, %v5733_v48 }
0x13bb   :  { %5103 = vmatprep.subr.mxu0 %v5600_v17 }
0x13c1   :  { %5101 = vmatmul.mubr.msk.f32.vlgmr.msra.gmra.mxu0 %vm199_vm0, %v5979_v2 }
0x13c2   :  { %5104 = vmatpush3.xpose.msk.msra.mxu0 %vm199_vm0, %v2172_v39  ;;  %5105 = vmatprep.mubr.msk.f32.mxu0 %vm5601_vm1, %v5600_v17  ;;  %v1973_v39 = vrot.slane %v5936_v33, 4 }
0x13c3   :  { %5113 = vmatprep.subr.mxu0 %v5600_v17 }
0x13c4   :  { %v4736_v40 = vcombine.low %v1972_v52, %v1973_v39 }
0x13c5   :  { %5106 = vmatmul.mubr.msk.f32.vlgmr.msra.gmra.mxu0 %vm199_vm0, %v5983_v6 }
0x13c6   :  { %5115 = vmatprep.mubr.msk.f32.mxu0 %vm5601_vm1, %v5600_v17 }
0x1479   :  { %v1953_v42 = vpop.f32.mrf.mxu0 }
0x147a   :  { %v1954_v31 = vadd.f32 %v1953_v42, %v1907_v54  ;;  %v1970_v54 = vrot.slane %v5940_v51, 4 }
0x147b   :  { %v5088_v8 = vpop.f32.mrf.mxu0 }
0x147c   :  { %v1959_v49 = vmul.f32 0.125, %v1954_v31  ;;  %v4735_v42 = vcombine.low %v1970_v54, %v1971_v55  ;;  %v120_v54 = vld [vmem:[#allocation7 + $0x218] sm:$0xff]  ;;  %v121_v55 = vld [vmem:[#allocation7 + $0x230] sm:$0xff] }
0x147d   :  { %v1956_v30 = vpop.f32.mrf.mxu0 }
0x147e   :  { %v6012_v56 = vadd.f32 %v1959_v49, %v1062_v21 }
0x147f   :  { %v5089_v61 = vpop.f32.mrf.mxu0 }
0x1481   :  { %v2166_v45 = vpop.f32.mrf.mxu0 }
0x1482   :  { %v2247_v62 = vmul.f32 0.17677669, %v2166_v45 }
0x1483   :  { %v5102_v36 = vpop.f32.mrf.mxu0 }
0x1484   :  { %v2282_v63 = vadd.f32 %v2275_v47, %v2247_v62 }
0x1485   :  { %v2243_v1 = vpop.f32.mrf.mxu0 }
0x1486   :  { %v2248_v43 = vmul.f32 0.17677669, %v2243_v1  ;;  %v2284_v60 = vsel %vm487_vm2, %v2282_v63, -inf }
0x1487   :  { %2285 = vmax.xlane.f32.xlu1 %v2284_v60  ;;  %v5107_v58 = vpop.f32.mrf.mxu0 }
0x1488   :  { %v2283_v24 = vadd.f32 %v2279_v0, %v2248_v43 }
0x148a   :  { %v2287_v4 = vsel %vm487_vm2, %v2283_v24, -inf }
0x148b   :  { %2288 = vmax.xlane.f32.xlu0 %v2287_v4  ;;  %v113_v4 = vld [vmem:[#allocation7 + $0x1b8] sm:$0xff] }
0x1510   :  { %v2286_v5 = vpop.xlane.xlu1 %2285 }
0x1511   :  { %v2290_v9 = vsub.f32 %v2282_v63, %v2286_v5  ;;  %v116_v5 = vld [vmem:[#allocation7 + $0x1d0] sm:$0xff] }
0x1513   :  { %v2292_v10 = vmul.f32 1.442695, %v2290_v9  ;;  %v107_v9 = vld [vmem:[#allocation7 + $0x188] sm:$0xff] }
0x1514   :  { %v2289_v11 = vpop.xlane.xlu0 %2288 }
0x1515   :  { %5408 = vpow2.f32 %v2292_v10  ;;  %v2291_v12 = vsub.f32 %v2283_v24, %v2289_v11  ;;  %v110_v10 = vld [vmem:[#allocation7 + $0x1a0] sm:$0xff] }
0x1516   :  { %v4738_v11 = vcombine.low %v107_v9, %v110_v10 }
0x1517   :  { %v2294_v13 = vmul.f32 1.442695, %v2291_v12 }
0x1519   :  { %5410 = vpow2.f32 %v2294_v13 }
0x1522   :  { %v5409_v14 = vpop.eup %5408 }
0x1523   :  { %v2296_v18 = vsel %vm487_vm2, %v5409_v14, 0.0 }
0x1524   :  { %2297 = vadd.xlane.f32.xlu0 %v2296_v18 }
0x1526   :  { %v5411_v44 = vpop.eup %5410 }
0x1527   :  { %v2299_v27 = vsel %vm487_vm2, %v5411_v44, 0.0 }
0x1528   :  { %2300 = vadd.xlane.f32.xlu1 %v2299_v27 }
0x1539   :  { %2382 = vrot.lane.b32.xlu1 %v5983_v6, %s5604_s3 }
0x153a   :  { %2306 = vrot.lane.b32.xlu0 %v5979_v2, %s5604_s3 }
0x15ad   :  { %v2298_v34 = vpop.xlane.xlu0 %2297 }
0x15ae   :  { %5412 = vrcp.f32 %v2298_v34 }
0x15b1   :  { %v2307_v22 = vpop.permute.xlu0 %2306  ;;  %v2301_v41 = vpop.xlane.xlu1 %2300 }
0x15b2   :  { %5414 = vrcp.f32 %v2301_v41  ;;  %5109 = vmatpush3.msra.mxu1 %v2307_v22  ;;  %v2546_v41 = vrot.slane %v5950_v7, %v5746_v15 }
0x15b3   :  { %5118 = vmatprep.subr.bf16.mxu1 %v5600_v17 }
0x15b5   :  { %v2383_v28 = vpop.permute.xlu1 %2382 }
0x15b6   :  { %5114 = vmatpush3.msra.mxu0 %v2383_v28 }
0x15b7   :  { %5126 = vmatprep.subr.bf16.mxu0 %v5600_v17 }
0x15bb   :  { %v5413_v38 = vpop.eup %5412 }
0x15bc   :  { %v2304_v29 = vmul.f32 %v5413_v38, %v5409_v14 }
0x15be   :  { %5111 = vmatmul.mubr.msk.f32.vlgmr.msra.gmra.mxu1 %vm487_vm2, %v2304_v29 }
0x15bf   :  { %v5415_v6 = vpop.eup %5414  ;;  %5122 = vmatprep.mubr.msk.bf16.mxu1 %vm5601_vm1, %v5600_v17  ;;  %5119 = vmatpush3.bf16.msra.mxu1 %v4736_v40 }
0x15c0   :  { %v2305_v2 = vmul.f32 %v5415_v6, %v5411_v44  ;;  %5120 = vmatprep.subr.bf16.mxu1 %v5600_v17  ;;  %v2552_v6 = vrot.slane %v5950_v7, %v5751_v23 }
0x15c2   :  { %5116 = vmatmul.mubr.msk.f32.vlgmr.msra.gmra.mxu0 %vm487_vm2, %v2305_v2 }
0x15c3   :  { %5130 = vmatprep.mubr.msk.bf16.mxu0 %vm5601_vm1, %v5600_v17  ;;  %5121 = vmatpush3.bf16.msra.mxu1 %v4735_v42  ;;  %v1988_v42 = vrot.slane %v120_v54, 4 }
0x15c4   :  { %5134 = vmatprep.subr.bf16.mxu1 %v5600_v17 }
0x167e   :  { %v2378_v16 = vpop.f32.mrf.mxu1 }
0x1680   :  { %v5112_v31 = vpop.f32.mrf.mxu1 }
0x1682   :  { %v2454_v8 = vpop.f32.mrf.mxu0 }
0x1683   :  { %v2458_v21 = vpack.c.bf16 %v2454_v8, %v2378_v16  ;;  %v1989_v16 = vrot.slane %v121_v55, 4  ;;  %v118_v8 = vld [vmem:[#allocation7 + $0x1e8] sm:$0xff] }
0x1684   :  { %v5117_v49 = vpop.f32.mrf.mxu0 }
0x1685   :  { %5123 = vmatmul.mubr.msk.bf16.vlgmr.msra.gmra.mxu1 %vm199_vm0, %v2458_v21  ;;  %v4744_v31 = vcombine.low %v1988_v42, %v1989_v16  ;;  %v119_v21 = vld [vmem:[#allocation7 + $0x200] sm:$0xff]  ;;  %v1986_v49 = vrot.slane %v118_v8, 4 }
0x1686   :  { %5142 = vmatprep.mubr.msk.bf16.mxu1 %vm5601_vm1, %v5600_v17 }
0x1687   :  { %5135 = vmatpush3.bf16.msra.mxu1 %v4744_v31 }
0x1688   :  { %5136 = vmatprep.subr.bf16.mxu1 %v5600_v17 }
0x1745   :  { %v2508_v33 = vpop.f32.mrf.mxu1 }
0x1746   :  { %v2509_v51 = vadd.f32 %v2508_v33, %v2462_v25 }
0x1747   :  { %v5124_v53 = vpop.f32.mrf.mxu1 }
0x1748   :  { %v2515_v50 = vadd.f32 %v2509_v51, %v5956_v3  ;;  %v1984_v51 = vrot.slane %v113_v4, 4  ;;  %v1985_v53 = vrot.slane %v116_v5, 4 }
0x1749   :  { %v2511_v35 = vpop.f32.mrf.mxu1 }
0x174a   :  { %v2512_v30 = vadd.f32 %v2511_v35, %v2462_v25  ;;  %v2517_v61 = vsel %vm199_vm0, %v2515_v50, 0.0  ;;  %v1987_v25 = vrot.slane %v119_v21, 4  ;;  %v1982_v35 = vrot.slane %v107_v9, 4 }
0x174b   :  { %2518 = vadd.xlane.f32.xlu1 %v2517_v61  ;;  %v5125_v47 = vpop.f32.mrf.mxu1 }
0x174c   :  { %v2516_v20 = vadd.f32 %v2512_v30, %v5958_v19  ;;  %v4739_v19 = vcombine.low %v113_v4, %v116_v5  ;;  %v4743_v33 = vcombine.low %v1986_v49, %v1987_v25  ;;  %v1983_v30 = vrot.slane %v110_v10, 4  ;;  %v2860_v47 = vld [vmem:[#allocation2 + $0x38] sm:$0xff] }
0x174e   :  { %v2520_v45 = vsel %vm199_vm0, %v2516_v20, 0.0  ;;  %5127 = vmatpush3.bf16.msra.mxu0 %v4739_v19  ;;  %5137 = vmatpush3.bf16.msra.mxu1 %v4743_v33  ;;  %v4741_v61 = vcombine.low %v1982_v35, %v1983_v30 }
0x174f   :  { %2521 = vadd.xlane.f32.xlu0 %v2520_v45  ;;  %5128 = vmatprep.subr.bf16.mxu0 %v5600_v17  ;;  %v2898_v45 = vsel %vm199_vm0, %v2860_v47, 0.0 }
0x1750   :  { %5138 = vmatprep.subr.bf16.mxu1 %v5600_v17 }
0x1752   :  { %5129 = vmatpush3.bf16.msra.mxu0 %v4738_v11 }
0x1753   :  { %5146 = vmatprep.subr.bf16.mxu0 %v5600_v17 }
0x17d4   :  { %v2519_v62 = vpop.xlane.xlu1 %2518 }
0x17d5   :  { %v2523_v36 = vmul.f32 0.03125, %v2519_v62 }
0x17d7   :  { %v2525_v63 = vsub.f32 %v2515_v50, %v2523_v36  ;;  %v4742_v50 = vcombine.low %v1984_v51, %v1985_v53  ;;  %v2559_v36 = vrot.slane %v5950_v7, %v5771_v57 }
0x17d8   :  { %v2522_v0 = vpop.xlane.xlu0 %2521 }
0x17d9   :  { %v2524_v1 = vmul.f32 0.03125, %v2522_v0  ;;  %v2527_v43 = vmul.f32 %v2525_v63, %v2525_v63  ;;  %5139 = vmatpush3.bf16.msra.mxu1 %v4742_v50 }
0x17da   :  { %5140 = vmatprep.subr.bf16.mxu1 %v5600_v17 }
0x17db   :  { %v2526_v60 = vsub.f32 %v2516_v20, %v2524_v1  ;;  %v2529_v3 = vsel %vm199_vm0, %v2527_v43, 0.0  ;;  %v2859_v20 = vld [vmem:[#allocation2 + $0x30] sm:$0xff] }
0x17dc   :  { %2530 = vadd.xlane.f32.xlu0 %v2529_v3  ;;  %v2895_v62 = vsel %vm199_vm0, %v2859_v20, 0.0 }
0x17dd   :  { %v2528_v58 = vmul.f32 %v2526_v60, %v2526_v60  ;;  %5141 = vmatpush3.bf16.msra.mxu1 %v4741_v61 }
0x17de   :  { %5162 = vmatprep.subr.bf16.mxu1 %v5600_v17 }
0x17df   :  { %v2532_v24 = vsel %vm199_vm0, %v2528_v58, 0.0 }
0x17e0   :  { %2533 = vadd.xlane.f32.xlu1 %v2532_v24  ;;  %2896 = vadd.xlane.f32.xlu0 %v2895_v62  ;;  %v6092_v62 = vld [vmem:[#allocation7 + $0x258] sm:$0xff] }
0x17e4   :  { %2899 = vadd.xlane.f32.xlu1 %v2898_v45  ;;  %v6090_v45 = vld [vmem:[#allocation7 + $0x240] sm:$0xff] }
0x1865   :  { %v2531_v12 = vpop.xlane.xlu0 %2530 }
0x1866   :  { %v2535_v13 = vmul.f32 0.03125, %v2531_v12 }
0x1868   :  { %v2537_v14 = vadd.f32 1e-12, %v2535_v13 }
0x1869   :  { %v2534_v18 = vpop.xlane.xlu1 %2533 }
0x186a   :  { %5416 = vrsqrt.f32 %v2537_v14  ;;  %v2536_v44 = vmul.f32 0.03125, %v2534_v18 }
0x186c   :  { %v2538_v27 = vadd.f32 1e-12, %v2536_v44 }
0x186e   :  { %5418 = vrsqrt.f32 %v2538_v27 }
0x1877   :  { %v5417_v34 = vpop.eup %5416 }
0x1878   :  { %v2541_v22 = vmul.f32 %v5417_v34, %v2525_v63 }
0x187a   :  { %v2547_v29 = vmul.f32 %v2546_v41, %v2541_v22 }
0x187b   :  { %v5419_v28 = vpop.eup %5418 }
0x187c   :  { %v2542_v38 = vmul.f32 %v5419_v28, %v2526_v60  ;;  %v6056_v52 = vadd.f32 %v2552_v6, %v2547_v29  ;;  %v2900_v29 = vpop.xlane.xlu1 %2899 }
0x187e   :  { %v2548_v2 = vmul.f32 %v2546_v41, %v2542_v38 }
0x1880   :  { %v6058_v39 = vadd.f32 %v2552_v6, %v2548_v2  ;;  %v2902_v6 = vmul.f32 0.03125, %v2900_v29  ;;  %v2897_v2 = vpop.xlane.xlu0 %2896 }
0x1881   :  { %v2901_v55 = vmul.f32 0.03125, %v2897_v2  ;;  %v114_v2 = vld [vmem:[#allocation7 + $0x1c0] sm:$0xff] }
0x1882   :  { %v2555_v40 = vpack.c.bf16 %v6058_v39, %v6056_v52  ;;  %v2904_v54 = vsub.f32 %v2860_v47, %v2902_v6  ;;  %v6086_v47 = vld [vmem:[#allocation7 + $0x288] sm:$0xff] }
0x1883   :  { %v2903_v8 = vsub.f32 %v2859_v20, %v2901_v55 }
0x1884   :  { %5131 = vmatmul.mubr.msk.bf16.vlgmr.msra.gmra.mxu0 %vm199_vm0, %v2555_v40  ;;  %v2634_v40 = vrot.slane %v5950_v7, %v5779_v26  ;;  %v2906_v49 = vmul.f32 %v2904_v54, %v2904_v54 }
0x1885   :  { %5150 = vmatprep.mubr.msk.bf16.mxu0 %vm5601_vm1, %v5600_v17  ;;  %v2905_v7 = vmul.f32 %v2903_v8, %v2903_v8 }
0x1886   :  { %v2910_v50 = vsel %vm199_vm0, %v2906_v49, 0.0 }
0x1887   :  { %v2907_v61 = vsel %vm199_vm0, %v2905_v7, 0.0 }
0x1944   :  { %v2605_v63 = vpop.f32.mrf.mxu0 }
0x1945   :  { %v2606_v0 = vadd.f32 %v2605_v63, %v2559_v36 }
0x1946   :  { %v5132_v1 = vpop.f32.mrf.mxu0 }
0x1947   :  { %v2612_v43 = vmul.f32 %v2606_v0, %v2606_v0 }
0x1948   :  { %v2608_v60 = vpop.f32.mrf.mxu0 }
0x1949   :  { %v2614_v3 = vmul.f32 %v2612_v43, %v2606_v0  ;;  %v2609_v58 = vadd.f32 %v2608_v60, %v2559_v36 }
0x194a   :  { %v5133_v24 = vpop.f32.mrf.mxu0 }
0x194b   :  { %v2616_v4 = vmul.f32 0.044715, %v2614_v3  ;;  %v2613_v5 = vmul.f32 %v2609_v58, %v2609_v58 }
0x194d   :  { %v2618_v19 = vadd.f32 %v2616_v4, %v2606_v0  ;;  %v2615_v9 = vmul.f32 %v2613_v5, %v2609_v58 }
0x194f   :  { %v2620_v10 = vmul.f32 0.7978846, %v2618_v19  ;;  %v2617_v11 = vmul.f32 0.044715, %v2615_v9 }
0x1951   :  { %5420 = vtanh.f32 %v2620_v10  ;;  %v2619_v12 = vadd.f32 %v2617_v11, %v2609_v58 }
0x1953   :  { %v2621_v13 = vmul.f32 0.7978846, %v2619_v12 }
0x1955   :  { %5422 = vtanh.f32 %v2621_v13  ;;  %v6100_v13 = vld [vmem:[#allocation8 + $0x30] sm:$0xff] }
0x195e   :  { %v5421_v14 = vpop.eup %5420 }
0x195f   :  { %v2624_v18 = vadd.f32 1.0, %v5421_v14 }
0x1961   :  { %v2626_v27 = vmul.f32 0.5, %v2624_v18 }
0x1962   :  { %v5423_v44 = vpop.eup %5422 }
0x1963   :  { %v2625_v34 = vadd.f32 1.0, %v5423_v44  ;;  %v2628_v41 = vmul.f32 %v2626_v27, %v2606_v0  ;;  %v2924_v44 = vrot.slane %v6100_v13, %v5666_v32 }
0x1965   :  { %v2627_v22 = vmul.f32 0.5, %v2625_v34 }
0x1967   :  { %v2629_v28 = vmul.f32 %v2627_v22, %v2609_v58 }
0x1969   :  { %v2630_v38 = vpack.c.bf16 %v2629_v28, %v2628_v41  ;;  %v2930_v41 = vrot.slane %v6100_v13, %v5673_v37 }
0x196b   :  { %5143 = vmatmul.mubr.msk.bf16.vlgmr.msra.gmra.mxu1 %vm855_vm3, %v2630_v38 }
0x196c   :  { %5166 = vmatprep.mubr.msk.bf16.mxu1 %vm5601_vm1, %v5600_v17 }
0x1a2b   :  { %v2688_v42 = vpop.f32.mrf.mxu1 }
0x1a2c   :  { %v2689_v16 = vadd.f32 %v2688_v42, %v2634_v40  ;;  %v111_v42 = vld [vmem:[#allocation7 + $0x1a8] sm:$0xff] }
0x1a2d   :  { %v5144_v31 = vpop.f32.mrf.mxu1 }
0x1a2e   :  { %v2695_v21 = vadd.f32 %v2689_v16, %v6056_v52  ;;  %v6084_v52 = vld [vmem:[#allocation7 + $0x270] sm:$0xff] }
0x1a2f   :  { %v2691_v25 = vpop.f32.mrf.mxu1  ;;  %v4753_v20 = vcombine.low %v6084_v52, %v6086_v47 }
0x1a30   :  { %v2692_v33 = vadd.f32 %v2691_v25, %v2634_v40  ;;  %v2697_v51 = vsel %vm199_vm0, %v2695_v21, 0.0  ;;  %v117_v40 = vld [vmem:[#allocation7 + $0x1d8] sm:$0xff] }
0x1a31   :  { %2698 = vadd.xlane.f32.xlu1 %v2697_v51  ;;  %v5145_v53 = vpop.f32.mrf.mxu1  ;;  %5163 = vmatpush3.bf16.msra.mxu1 %v4753_v20  ;;  %v4747_v55 = vcombine.low %v114_v2, %v117_v40  ;;  %v6117_v51 = vld [vmem:[#allocation8 + $0x28] sm:$0xf] }
0x1a32   :  { %v2696_v35 = vadd.f32 %v2692_v33, %v6058_v39  ;;  %v4752_v39 = vcombine.low %v6090_v45, %v6092_v62  ;;  %5164 = vmatprep.subr.bf16.mxu1 %v5600_v17  ;;  %v2726_v53 = vrot.slane %v6117_v51, %v5666_v32 }
0x1a33   :  { %5147 = vmatpush3.bf16.msra.mxu0 %v4747_v55 }
0x1a34   :  { %v2700_v30 = vsel %vm199_vm0, %v2696_v35, 0.0  ;;  %5148 = vmatprep.subr.bf16.mxu0 %v5600_v17 }
0x1a35   :  { %2911 = vadd.xlane.f32.xlu1 %v2910_v50  ;;  %2701 = vadd.xlane.f32.xlu0 %v2700_v30  ;;  %v2732_v30 = vrot.slane %v6117_v51, %v5673_v37 }
0x1a36   :  { %5165 = vmatpush3.bf16.msra.mxu1 %v4752_v39 }
0x1a37   :  { %5180 = vmatprep.subr.mxu1 %v5600_v17 }
0x1a39   :  { %2908 = vadd.xlane.f32.xlu0 %v2907_v61 }
0x1aba   :  { %v2699_v36 = vpop.xlane.xlu1 %2698 }
0x1abb   :  { %v2703_v63 = vmul.f32 0.03125, %v2699_v36 }
0x1abd   :  { %v2705_v0 = vsub.f32 %v2695_v21, %v2703_v63 }
0x1abe   :  { %v2912_v1 = vpop.xlane.xlu1 %2911  ;;  %v2702_v43 = vpop.xlane.xlu0 %2701 }
0x1abf   :  { %v2914_v60 = vmul.f32 0.03125, %v2912_v1  ;;  %v2704_v3 = vmul.f32 0.03125, %v2702_v43  ;;  %v2707_v58 = vmul.f32 %v2705_v0, %v2705_v0 }
0x1ac1   :  { %v2916_v24 = vadd.f32 1e-12, %v2914_v60  ;;  %v2706_v4 = vsub.f32 %v2696_v35, %v2704_v3  ;;  %v2709_v5 = vsel %vm199_vm0, %v2707_v58, 0.0 }
0x1ac2   :  { %2710 = vadd.xlane.f32.xlu1 %v2709_v5  ;;  %v2909_v19 = vpop.xlane.xlu0 %2908 }
0x1ac3   :  { %5424 = vrsqrt.f32 %v2916_v24  ;;  %v2913_v9 = vmul.f32 0.03125, %v2909_v19  ;;  %v2708_v10 = vmul.f32 %v2706_v4, %v2706_v4 }
0x1ac5   :  { %v2915_v11 = vadd.f32 1e-12, %v2913_v9  ;;  %v2712_v12 = vsel %vm199_vm0, %v2708_v10, 0.0 }
0x1ac6   :  { %2713 = vadd.xlane.f32.xlu0 %v2712_v12 }
0x1ac7   :  { %5426 = vrsqrt.f32 %v2915_v11 }
0x1ad0   :  { %v5425_v14 = vpop.eup %5424 }
0x1ad1   :  { %v2920_v18 = vmul.f32 %v5425_v14, %v2904_v54  ;;  %v108_v54 = vld [vmem:[#allocation7 + $0x190] sm:$0xff]  ;;  %v1996_v14 = vrot.slane %v114_v2, 4 }
0x1ad2   :  { %v4746_v16 = vcombine.low %v108_v54, %v111_v42 }
0x1ad3   :  { %v2926_v22 = vmul.f32 %v2924_v44, %v2920_v18  ;;  %v1997_v18 = vrot.slane %v117_v40, 4 }
0x1ad4   :  { %v5427_v27 = vpop.eup %5426  ;;  %5149 = vmatpush3.bf16.msra.mxu0 %v4746_v16 }
0x1ad5   :  { %v2919_v34 = vmul.f32 %v5427_v27, %v2903_v8  ;;  %v6108_v29 = vadd.f32 %v2930_v41, %v2926_v22  ;;  %5154 = vmatprep.subr.bf16.mxu0 %v5600_v17  ;;  %v1994_v27 = vrot.slane %v108_v54, 4 }
0x1ad7   :  { %v2925_v28 = vmul.f32 %v2924_v44, %v2919_v34  ;;  %v4750_v44 = vcombine.low %v1996_v14, %v1997_v18  ;;  %v1995_v34 = vrot.slane %v111_v42, 4  ;;  %v2804_v42 = vrot.slane %v6117_v51, %v5733_v48 }
0x1ad9   :  { %v6106_v38 = vadd.f32 %v2930_v41, %v2925_v28  ;;  %v4749_v22 = vcombine.low %v1994_v27, %v1995_v34  ;;  %v2740_v41 = vrot.slane %v6117_v51, %v5687_v46 }
0x1adb   :  { %v2933_v6 = vpack.c.bf16 %v6108_v29, %v6106_v38 }
0x1add   :  { %5167 = vmatmul.mubr.msk.bf16.vlgmr.msra.gmra.mxu1 %vm199_vm0, %v2933_v6 }
0x1ade   :  { %5182 = vmatprep.mubr.msk.f32.mxu1 %vm5601_vm1, %v5600_v17 }
0x1b4b   :  { %v2711_v31 = vpop.xlane.xlu1 %2710 }
0x1b4c   :  { %v2715_v8 = vmul.f32 0.03125, %v2711_v31 }
0x1b4e   :  { %v2717_v21 = vadd.f32 1e-12, %v2715_v8 }
0x1b4f   :  { %v2714_v49 = vpop.xlane.xlu0 %2713 }
0x1b50   :  { %5428 = vrsqrt.f32 %v2717_v21  ;;  %v2716_v25 = vmul.f32 0.03125, %v2714_v49  ;;  %v4759_v49 = vld.sshfl [vmem:[#allocation5 + $0x6] sm:$0x11 pattern:$0x75316420] }
0x1b52   :  { %v2718_v33 = vadd.f32 1e-12, %v2716_v25 }
0x1b54   :  { %5430 = vrsqrt.f32 %v2718_v33 }
0x1b5d   :  { %v5429_v50 = vpop.eup %5428 }
0x1b5e   :  { %v2721_v35 = vmul.f32 %v5429_v50, %v2705_v0  ;;  %v2937_v0 = vrot.slane %v6100_v13, %v5687_v46  ;;  %v3161_v50 = vrot.slane %v4759_v49, %v5704_v59 }
0x1b60   :  { %v2727_v7 = vmul.f32 %v2726_v53, %v2721_v35  ;;  %v3154_v35 = vcombine.high %v4759_v49, %v4759_v49 }
0x1b61   :  { %v5431_v61 = vpop.eup %5430 }
0x1b62   :  { %v2722_v20 = vmul.f32 %v5431_v61, %v2706_v4  ;;  %v2733_v36 = vadd.f32 %v2732_v30, %v2727_v7 }
0x1b64   :  { %v2728_v39 = vmul.f32 %v2726_v53, %v2722_v20  ;;  %v2735_v1 = vpack.c.bf16 %v2733_v36, %v2733_v36  ;;  %v3172_v20 = vrot.slane %v3161_v50, %v5666_v32 }
0x1b66   :  { %v2734_v63 = vadd.f32 %v2732_v30, %v2728_v39  ;;  %v2743_v3 = vunpack.c.l.b16 %v2735_v1  ;;  %v3168_v39 = vrot.slane %v3154_v35, %v5704_v59 }
0x1b68   :  { %v2736_v43 = vpack.c.bf16 %v2734_v63, %v2734_v63 }
0x1b6a   :  { %v2744_v60 = vunpack.c.l.b16 %v2736_v43  ;;  %v3176_v43 = vrot.slane %v3168_v39, %v5666_v32 }
0x1b6c   :  { %v2745_v58 = vrot.slane %v2744_v60, 7 }
0x1b6e   :  { %v2746_v24 = vsel %vm951_vm4, %v2745_v58, %v2743_v3 }
0x1b6f   :  { %v2747_v5 = vpack.c.b16 %v2746_v24, %v2746_v24 }
0x1b71   :  { %5151 = vmatmul.mubr.msk.bf16.vlgmr.msra.gmra.mxu0 %vm199_vm0, %v2747_v5 }
0x1b72   :  { %5158 = vmatprep.mubr.msk.bf16.mxu0 %vm5601_vm1, %v5600_v17  ;;  %5155 = vmatpush3.bf16.msra.mxu0 %v4750_v44 }
0x1b73   :  { %5156 = vmatprep.subr.bf16.mxu0 %v5600_v17 }
0x1b76   :  { %5157 = vmatpush3.bf16.msra.mxu0 %v4749_v22 }
0x1b77   :  { %5170 = vmatprep.subr.mxu0 %v5600_v17 }
0x1b9d   :  { %v2983_v4 = vpop.f32.mrf.mxu1 }
0x1b9e   :  { %v6129_v19 = vadd.f32 %v2983_v4, %v2937_v0 }
0x1b9f   :  { %v5168_v9 = vpop.f32.mrf.mxu1 }
0x1ba0   :  { %2991 = vrot.lane.b32.xlu0 %v6129_v19, %s5602_s2 }
0x1ba1   :  { %v2986_v10 = vpop.f32.mrf.mxu1 }
0x1ba2   :  { %v6133_v11 = vadd.f32 %v2986_v10, %v2937_v0 }
0x1ba3   :  { %v5169_v12 = vpop.f32.mrf.mxu1 }
0x1ba4   :  { %3068 = vrot.lane.b32.xlu1 %v6133_v11, %s5602_s2 }
0x1c12   :  { %v2992_v8 = vpop.permute.xlu0 %2991 }
0x1c16   :  { %v3069_v54 = vpop.permute.xlu1 %3068 }
0x1c31   :  { %v2793_v28 = vpop.f32.mrf.mxu0 }
0x1c32   :  { %v2794_v6 = vadd.f32 %v2793_v28, %v2740_v41 }
0x1c33   :  { %v5152_v55 = vpop.f32.mrf.mxu0 }
0x1c34   :  { %5432 = vtanh.f32 %v2794_v6 }
0x1c35   :  { %v2796_v16 = vpop.f32.mrf.mxu0 }
0x1c37   :  { %v5153_v2 = vpop.f32.mrf.mxu0 }
0x1c38   :  { %v2869_v2 = vrot.slane %v6084_v52, 4  ;;  %v3359_v52 = vrot.slane %v6100_v13, %v5733_v48 }
0x1c41   :  { %v5433_v40 = vpop.eup %5432 }
0x1c42   :  { %v2800_v31 = vpack.c.bf16 %v5433_v40, %v5433_v40  ;;  %v2870_v40 = vrot.slane %v6086_v47, 4 }
0x1c44   :  { %5159 = vmatmul.mubr.msk.bf16.vlgmr.msra.gmra.mxu0 %vm199_vm0, %v2800_v31  ;;  %v4763_v31 = vcombine.low %v2869_v2, %v2870_v40 }
0x1c45   :  { %5171 = vmatpush3.xpose.msk.msra.mxu0 %vm199_vm0, %v2992_v8  ;;  %5172 = vmatprep.mubr.msk.f32.mxu0 %vm5601_vm1, %v5600_v17  ;;  %v2867_v8 = vrot.slane %v6090_v45, 4 }
0x1c46   :  { %5175 = vmatprep.subr.mxu0 %v5600_v17 }
0x1c4c   :  { %5173 = vmatmul.mubr.msk.f32.vlgmr.msra.gmra.mxu0 %vm199_vm0, %v6129_v19 }
0x1c4d   :  { %5176 = vmatpush3.xpose.msk.msra.mxu0 %vm199_vm0, %v3069_v54  ;;  %5177 = vmatprep.mubr.msk.f32.mxu0 %vm5601_vm1, %v5600_v17  ;;  %v2868_v54 = vrot.slane %v6092_v62, 4 }
0x1c4e   :  { %5185 = vmatprep.subr.mxu0 %v5600_v17 }
0x1c50   :  { %5178 = vmatmul.mubr.msk.f32.vlgmr.msra.gmra.mxu0 %vm199_vm0, %v6133_v11 }
0x1c51   :  { %5187 = vmatprep.mubr.msk.f32.mxu0 %vm5601_vm1, %v5600_v17 }
0x1d04   :  { %v2850_v21 = vpop.f32.mrf.mxu0 }
0x1d05   :  { %v2851_v25 = vadd.f32 %v2850_v21, %v2804_v42  ;;  %v4762_v42 = vcombine.low %v2867_v8, %v2868_v54  ;;  %v136_v8 = vld [vmem:[#allocation7 + $0x2d8] sm:$0xff]  ;;  %v137_v54 = vld [vmem:[#allocation7 + $0x2f0] sm:$0xff] }
0x1d06   :  { %v5160_v33 = vpop.f32.mrf.mxu0 }
0x1d07   :  { %v2856_v53 = vmul.f32 0.15, %v2851_v25 }
0x1d08   :  { %v2853_v7 = vpop.f32.mrf.mxu0 }
0x1d09   :  { %v6160_v30 = vadd.f32 %v2856_v53, %v6012_v56 }
0x1d0a   :  { %v5161_v61 = vpop.f32.mrf.mxu0 }
0x1d0c   :  { %v3063_v36 = vpop.f32.mrf.mxu0 }
0x1d0d   :  { %v3144_v63 = vmul.f32 0.17677669, %v3063_v36 }
0x1d0e   :  { %v5174_v51 = vpop.f32.mrf.mxu0 }
0x1d0f   :  { %v3179_v1 = vadd.f32 %v3172_v20, %v3144_v63 }
0x1d10   :  { %v3140_v60 = vpop.f32.mrf.mxu0 }
0x1d11   :  { %v3145_v3 = vmul.f32 0.17677669, %v3140_v60  ;;  %v3181_v58 = vsel %vm487_vm2, %v3179_v1, -inf }
0x1d12   :  { %3182 = vmax.xlane.f32.xlu1 %v3181_v58  ;;  %v5179_v24 = vpop.f32.mrf.mxu0 }
0x1d13   :  { %v3180_v5 = vadd.f32 %v3176_v43, %v3145_v3 }
0x1d15   :  { %v3184_v56 = vsel %vm487_vm2, %v3180_v5, -inf }
0x1d16   :  { %3185 = vmax.xlane.f32.xlu0 %v3184_v56  ;;  %v129_v56 = vld [vmem:[#allocation7 + $0x278] sm:$0xff] }
0x1d9b   :  { %v3183_v0 = vpop.xlane.xlu1 %3182 }
0x1d9c   :  { %v3187_v4 = vsub.f32 %v3179_v1, %v3183_v0  ;;  %v132_v0 = vld [vmem:[#allocation7 + $0x290] sm:$0xff] }
0x1d9e   :  { %v3189_v9 = vmul.f32 1.442695, %v3187_v4  ;;  %v123_v4 = vld [vmem:[#allocation7 + $0x248] sm:$0xff] }
0x1d9f   :  { %v3186_v10 = vpop.xlane.xlu0 %3185 }
0x1da0   :  { %5434 = vpow2.f32 %v3189_v9  ;;  %v3188_v12 = vsub.f32 %v3180_v5, %v3186_v10  ;;  %v126_v9 = vld [vmem:[#allocation7 + $0x260] sm:$0xff] }
0x1da1   :  { %v4765_v10 = vcombine.low %v123_v4, %v126_v9 }
0x1da2   :  { %v3191_v14 = vmul.f32 1.442695, %v3188_v12 }
0x1da4   :  { %5436 = vpow2.f32 %v3191_v14 }
0x1dad   :  { %v5435_v18 = vpop.eup %5434 }
0x1dae   :  { %v3193_v44 = vsel %vm487_vm2, %v5435_v18, 0.0 }
0x1daf   :  { %3194 = vadd.xlane.f32.xlu0 %v3193_v44 }
0x1db1   :  { %v5437_v27 = vpop.eup %5436 }
0x1db2   :  { %v3196_v34 = vsel %vm487_vm2, %v5437_v27, 0.0 }
0x1db3   :  { %3197 = vadd.xlane.f32.xlu1 %v3196_v34 }
0x1dc4   :  { %3279 = vrot.lane.b32.xlu1 %v6133_v11, %s5604_s3 }
0x1dc5   :  { %3203 = vrot.lane.b32.xlu0 %v6129_v19, %s5604_s3 }
0x1e38   :  { %v3195_v22 = vpop.xlane.xlu0 %3194 }
0x1e39   :  { %5438 = vrcp.f32 %v3195_v22 }
0x1e3c   :  { %v3204_v41 = vpop.permute.xlu0 %3203  ;;  %v3198_v28 = vpop.xlane.xlu1 %3197 }
0x1e3d   :  { %5440 = vrcp.f32 %v3198_v28  ;;  %5181 = vmatpush3.msra.mxu1 %v3204_v41  ;;  %v3443_v28 = vrot.slane %v6100_v13, %v5746_v15 }
0x1e3e   :  { %5190 = vmatprep.subr.bf16.mxu1 %v5600_v17 }
0x1e40   :  { %v3280_v6 = vpop.permute.xlu1 %3279 }
0x1e41   :  { %5186 = vmatpush3.msra.mxu0 %v3280_v6 }
0x1e42   :  { %5198 = vmatprep.subr.bf16.mxu0 %v5600_v17 }
0x1e46   :  { %v5439_v55 = vpop.eup %5438 }
0x1e47   :  { %v3201_v16 = vmul.f32 %v5439_v55, %v5435_v18 }
0x1e49   :  { %5183 = vmatmul.mubr.msk.f32.vlgmr.msra.gmra.mxu1 %vm487_vm2, %v3201_v16 }
0x1e4a   :  { %v5441_v11 = vpop.eup %5440  ;;  %5194 = vmatprep.mubr.msk.bf16.mxu1 %vm5601_vm1, %v5600_v17  ;;  %5191 = vmatpush3.bf16.msra.mxu1 %v4763_v31 }
0x1e4b   :  { %v3202_v19 = vmul.f32 %v5441_v11, %v5437_v27  ;;  %5192 = vmatprep.subr.bf16.mxu1 %v5600_v17  ;;  %v3449_v11 = vrot.slane %v6100_v13, %v5751_v23 }
0x1e4d   :  { %5188 = vmatmul.mubr.msk.f32.vlgmr.msra.gmra.mxu0 %vm487_vm2, %v3202_v19 }
0x1e4e   :  { %5202 = vmatprep.mubr.msk.bf16.mxu0 %vm5601_vm1, %v5600_v17  ;;  %5193 = vmatpush3.bf16.msra.mxu1 %v4762_v42  ;;  %v2885_v42 = vrot.slane %v136_v8, 4 }
0x1e4f   :  { %5206 = vmatprep.subr.bf16.mxu1 %v5600_v17 }
0x1f09   :  { %v3275_v21 = vpop.f32.mrf.mxu1 }
0x1f0b   :  { %v5184_v49 = vpop.f32.mrf.mxu1 }
0x1f0d   :  { %v3351_v25 = vpop.f32.mrf.mxu0 }
0x1f0e   :  { %v3355_v33 = vpack.c.bf16 %v3351_v25, %v3275_v21  ;;  %v2886_v21 = vrot.slane %v137_v54, 4  ;;  %v134_v25 = vld [vmem:[#allocation7 + $0x2a8] sm:$0xff] }
0x1f0f   :  { %v5189_v53 = vpop.f32.mrf.mxu0 }
0x1f10   :  { %5195 = vmatmul.mubr.msk.bf16.vlgmr.msra.gmra.mxu1 %vm199_vm0, %v3355_v33  ;;  %v4771_v49 = vcombine.low %v2885_v42, %v2886_v21  ;;  %v135_v33 = vld [vmem:[#allocation7 + $0x2c0] sm:$0xff]  ;;  %v2883_v53 = vrot.slane %v134_v25, 4 }
0x1f11   :  { %5214 = vmatprep.mubr.msk.bf16.mxu1 %vm5601_vm1, %v5600_v17 }
0x1f12   :  { %5207 = vmatpush3.bf16.msra.mxu1 %v4771_v49 }
0x1f13   :  { %5208 = vmatprep.subr.bf16.mxu1 %v5600_v17 }
0x1fd0   :  { %v3405_v47 = vpop.f32.mrf.mxu1 }
0x1fd1   :  { %v3406_v45 = vadd.f32 %v3405_v47, %v3359_v52 }
0x1fd2   :  { %v5196_v62 = vpop.f32.mrf.mxu1 }
0x1fd3   :  { %v3412_v50 = vadd.f32 %v3406_v45, %v6106_v38  ;;  %v2881_v45 = vrot.slane %v129_v56, 4  ;;  %v2882_v62 = vrot.slane %v132_v0, 4 }
0x1fd4   :  { %v3408_v35 = vpop.f32.mrf.mxu1 }
0x1fd5   :  { %v3409_v7 = vadd.f32 %v3408_v35, %v3359_v52  ;;  %v3414_v61 = vsel %vm199_vm0, %v3412_v50, 0.0  ;;  %v2884_v52 = vrot.slane %v135_v33, 4  ;;  %v2879_v35 = vrot.slane %v123_v4, 4 }
0x1fd6   :  { %3415 = vadd.xlane.f32.xlu1 %v3414_v61  ;;  %v5197_v20 = vpop.f32.mrf.mxu1 }
0x1fd7   :  { %v3413_v39 = vadd.f32 %v3409_v7, %v6108_v29  ;;  %v4766_v29 = vcombine.low %v129_v56, %v132_v0  ;;  %v4770_v47 = vcombine.low %v2883_v53, %v2884_v52  ;;  %v2880_v7 = vrot.slane %v126_v9, 4  ;;  %v3757_v20 = vld [vmem:[#allocation2 + $0x48] sm:$0xff] }
0x1fd9   :  { %v3417_v36 = vsel %vm199_vm0, %v3413_v39, 0.0  ;;  %5199 = vmatpush3.bf16.msra.mxu0 %v4766_v29  ;;  %5209 = vmatpush3.bf16.msra.mxu1 %v4770_v47  ;;  %v4768_v61 = vcombine.low %v2879_v35, %v2880_v7 }
0x1fda   :  { %3418 = vadd.xlane.f32.xlu0 %v3417_v36  ;;  %5200 = vmatprep.subr.bf16.mxu0 %v5600_v17  ;;  %v3795_v36 = vsel %vm199_vm0, %v3757_v20, 0.0 }
0x1fdb   :  { %5210 = vmatprep.subr.bf16.mxu1 %v5600_v17 }
0x1fdd   :  { %5201 = vmatpush3.bf16.msra.mxu0 %v4765_v10 }
0x1fde   :  { %5218 = vmatprep.subr.bf16.mxu0 %v5600_v17 }
0x205f   :  { %v3416_v63 = vpop.xlane.xlu1 %3415 }
0x2060   :  { %v3420_v51 = vmul.f32 0.03125, %v3416_v63 }
0x2062   :  { %v3422_v1 = vsub.f32 %v3412_v50, %v3420_v51  ;;  %v4769_v50 = vcombine.low %v2881_v45, %v2882_v62  ;;  %v3456_v51 = vrot.slane %v6100_v13, %v5771_v57 }
0x2063   :  { %v3419_v43 = vpop.xlane.xlu0 %3418 }
0x2064   :  { %v3421_v60 = vmul.f32 0.03125, %v3419_v43  ;;  %v3424_v3 = vmul.f32 %v3422_v1, %v3422_v1  ;;  %5211 = vmatpush3.bf16.msra.mxu1 %v4769_v50 }
0x2065   :  { %5212 = vmatprep.subr.bf16.mxu1 %v5600_v17 }
0x2066   :  { %v3423_v58 = vsub.f32 %v3413_v39, %v3421_v60  ;;  %v3426_v38 = vsel %vm199_vm0, %v3424_v3, 0.0  ;;  %v3756_v39 = vld [vmem:[#allocation2 + $0x40] sm:$0xff] }
0x2067   :  { %3427 = vadd.xlane.f32.xlu0 %v3426_v38  ;;  %v3792_v63 = vsel %vm199_vm0, %v3756_v39, 0.0 }
0x2068   :  { %v3425_v24 = vmul.f32 %v3423_v58, %v3423_v58  ;;  %5213 = vmatpush3.bf16.msra.mxu1 %v4768_v61 }
0x2069   :  { %5234 = vmatprep.subr.bf16.mxu1 %v5600_v17 }
0x206a   :  { %v3429_v5 = vsel %vm199_vm0, %v3425_v24, 0.0 }
0x206b   :  { %3430 = vadd.xlane.f32.xlu1 %v3429_v5  ;;  %3793 = vadd.xlane.f32.xlu0 %v3792_v63  ;;  %v6240_v63 = vld [vmem:[#allocation7 + $0x318] sm:$0xff] }
0x206f   :  { %3796 = vadd.xlane.f32.xlu1 %v3795_v36  ;;  %v6238_v36 = vld [vmem:[#allocation7 + $0x300] sm:$0xff] }
0x20f0   :  { %v3428_v12 = vpop.xlane.xlu0 %3427 }
0x20f1   :  { %v3432_v14 = vmul.f32 0.03125, %v3428_v12 }
0x20f3   :  { %v3434_v18 = vadd.f32 1e-12, %v3432_v14 }
0x20f4   :  { %v3431_v44 = vpop.xlane.xlu1 %3430 }
0x20f5   :  { %5442 = vrsqrt.f32 %v3434_v18  ;;  %v3433_v27 = vmul.f32 0.03125, %v3431_v44 }
0x20f7   :  { %v3435_v34 = vadd.f32 1e-12, %v3433_v27 }
0x20f9   :  { %5444 = vrsqrt.f32 %v3435_v34 }
0x2102   :  { %v5443_v22 = vpop.eup %5442 }
0x2103   :  { %v3438_v41 = vmul.f32 %v5443_v22, %v3422_v1 }
0x2105   :  { %v3444_v16 = vmul.f32 %v3443_v28, %v3438_v41 }
0x2106   :  { %v5445_v6 = vpop.eup %5444 }
0x2107   :  { %v3439_v55 = vmul.f32 %v5445_v6, %v3423_v58  ;;  %v6204_v2 = vadd.f32 %v3449_v11, %v3444_v16  ;;  %v3797_v16 = vpop.xlane.xlu1 %3796 }
0x2109   :  { %v3445_v19 = vmul.f32 %v3443_v28, %v3439_v55 }
0x210b   :  { %v6206_v40 = vadd.f32 %v3449_v11, %v3445_v19  ;;  %v3799_v11 = vmul.f32 0.03125, %v3797_v16  ;;  %v3794_v19 = vpop.xlane.xlu0 %3793 }
0x210c   :  { %v3798_v54 = vmul.f32 0.03125, %v3794_v19  ;;  %v130_v19 = vld [vmem:[#allocation7 + $0x280] sm:$0xff] }
0x210d   :  { %v3452_v31 = vpack.c.bf16 %v6206_v40, %v6204_v2  ;;  %v3801_v8 = vsub.f32 %v3757_v20, %v3799_v11  ;;  %v6234_v20 = vld [vmem:[#allocation7 + $0x348] sm:$0xff] }
0x210e   :  { %v3800_v25 = vsub.f32 %v3756_v39, %v3798_v54 }
0x210f   :  { %5203 = vmatmul.mubr.msk.bf16.vlgmr.msra.gmra.mxu0 %vm199_vm0, %v3452_v31  ;;  %v3531_v31 = vrot.slane %v6100_v13, %v5779_v26  ;;  %v3803_v53 = vmul.f32 %v3801_v8, %v3801_v8 }
0x2110   :  { %5222 = vmatprep.mubr.msk.bf16.mxu0 %vm5601_vm1, %v5600_v17  ;;  %v3802_v13 = vmul.f32 %v3800_v25, %v3800_v25 }
0x2111   :  { %v3807_v50 = vsel %vm199_vm0, %v3803_v53, 0.0 }
0x2112   :  { %v3804_v61 = vsel %vm199_vm0, %v3802_v13, 0.0 }
0x21cf   :  { %v3502_v1 = vpop.f32.mrf.mxu0 }
0x21d0   :  { %v3503_v43 = vadd.f32 %v3502_v1, %v3456_v51 }
0x21d1   :  { %v5204_v60 = vpop.f32.mrf.mxu0 }
0x21d2   :  { %v3509_v3 = vmul.f32 %v3503_v43, %v3503_v43 }
0x21d3   :  { %v3505_v58 = vpop.f32.mrf.mxu0 }
0x21d4   :  { %v3511_v38 = vmul.f32 %v3509_v3, %v3503_v43  ;;  %v3506_v24 = vadd.f32 %v3505_v58, %v3456_v51 }
0x21d5   :  { %v5205_v5 = vpop.f32.mrf.mxu0 }
0x21d6   :  { %v3513_v56 = vmul.f32 0.044715, %v3511_v38  ;;  %v3510_v0 = vmul.f32 %v3506_v24, %v3506_v24 }
0x21d8   :  { %v3515_v29 = vadd.f32 %v3513_v56, %v3503_v43  ;;  %v3512_v4 = vmul.f32 %v3510_v0, %v3506_v24 }
0x21da   :  { %v3517_v9 = vmul.f32 0.7978846, %v3515_v29  ;;  %v3514_v10 = vmul.f32 0.044715, %v3512_v4 }
0x21dc   :  { %5446 = vtanh.f32 %v3517_v9  ;;  %v3516_v12 = vadd.f32 %v3514_v10, %v3506_v24 }
0x21de   :  { %v3518_v14 = vmul.f32 0.7978846, %v3516_v12 }
0x21e0   :  { %5448 = vtanh.f32 %v3518_v14  ;;  %v6248_v14 = vld [vmem:[#allocation8 + $0x40] sm:$0xff] }
0x21e9   :  { %v5447_v18 = vpop.eup %5446 }
0x21ea   :  { %v3521_v44 = vadd.f32 1.0, %v5447_v18 }
0x21ec   :  { %v3523_v34 = vmul.f32 0.5, %v3521_v44 }
0x21ed   :  { %v5449_v27 = vpop.eup %5448 }
0x21ee   :  { %v3522_v22 = vadd.f32 1.0, %v5449_v27  ;;  %v3525_v28 = vmul.f32 %v3523_v34, %v3503_v43  ;;  %v3821_v27 = vrot.slane %v6248_v14, %v5666_v32 }
0x21f0   :  { %v3524_v41 = vmul.f32 0.5, %v3522_v22 }
0x21f2   :  { %v3526_v6 = vmul.f32 %v3524_v41, %v3506_v24 }
0x21f4   :  { %v3527_v55 = vpack.c.bf16 %v3526_v6, %v3525_v28  ;;  %v3827_v28 = vrot.slane %v6248_v14, %v5673_v37 }
0x21f6   :  { %5215 = vmatmul.mubr.msk.bf16.vlgmr.msra.gmra.mxu1 %vm855_vm3, %v3527_v55 }
0x21f7   :  { %5238 = vmatprep.mubr.msk.bf16.mxu1 %vm5601_vm1, %v5600_v17 }
0x22b6   :  { %v3585_v42 = vpop.f32.mrf.mxu1 }
0x22b7   :  { %v3586_v21 = vadd.f32 %v3585_v42, %v3531_v31  ;;  %v127_v42 = vld [vmem:[#allocation7 + $0x268] sm:$0xff] }
0x22b8   :  { %v5216_v49 = vpop.f32.mrf.mxu1 }
0x22b9   :  { %v3592_v33 = vadd.f32 %v3586_v21, %v6204_v2  ;;  %v6232_v2 = vld [vmem:[#allocation7 + $0x330] sm:$0xff] }
0x22ba   :  { %v3588_v52 = vpop.f32.mrf.mxu1  ;;  %v4780_v39 = vcombine.low %v6232_v2, %v6234_v20 }
0x22bb   :  { %v3589_v47 = vadd.f32 %v3588_v52, %v3531_v31  ;;  %v3594_v45 = vsel %vm199_vm0, %v3592_v33, 0.0  ;;  %v133_v31 = vld [vmem:[#allocation7 + $0x298] sm:$0xff] }
0x22bc   :  { %3595 = vadd.xlane.f32.xlu1 %v3594_v45  ;;  %v5217_v62 = vpop.f32.mrf.mxu1  ;;  %5235 = vmatpush3.bf16.msra.mxu1 %v4780_v39  ;;  %v4774_v54 = vcombine.low %v130_v19, %v133_v31  ;;  %v6265_v45 = vld [vmem:[#allocation8 + $0x38] sm:$0xf] }
0x22bd   :  { %v3593_v35 = vadd.f32 %v3589_v47, %v6206_v40  ;;  %v4779_v40 = vcombine.low %v6238_v36, %v6240_v63  ;;  %5236 = vmatprep.subr.bf16.mxu1 %v5600_v17  ;;  %v3623_v62 = vrot.slane %v6265_v45, %v5666_v32 }
0x22be   :  { %5219 = vmatpush3.bf16.msra.mxu0 %v4774_v54 }
0x22bf   :  { %v3597_v7 = vsel %vm199_vm0, %v3593_v35, 0.0  ;;  %5220 = vmatprep.subr.bf16.mxu0 %v5600_v17 }
0x22c0   :  { %3808 = vadd.xlane.f32.xlu1 %v3807_v50  ;;  %3598 = vadd.xlane.f32.xlu0 %v3597_v7  ;;  %v3629_v7 = vrot.slane %v6265_v45, %v5673_v37 }
0x22c1   :  { %5237 = vmatpush3.bf16.msra.mxu1 %v4779_v40 }
0x22c2   :  { %5252 = vmatprep.subr.mxu1 %v5600_v17 }
0x22c4   :  { %3805 = vadd.xlane.f32.xlu0 %v3804_v61 }
0x2345   :  { %v3596_v51 = vpop.xlane.xlu1 %3595 }
0x2346   :  { %v3600_v1 = vmul.f32 0.03125, %v3596_v51 }
0x2348   :  { %v3602_v43 = vsub.f32 %v3592_v33, %v3600_v1 }
0x2349   :  { %v3809_v60 = vpop.xlane.xlu1 %3808  ;;  %v3599_v3 = vpop.xlane.xlu0 %3598 }
0x234a   :  { %v3811_v58 = vmul.f32 0.03125, %v3809_v60  ;;  %v3601_v38 = vmul.f32 0.03125, %v3599_v3  ;;  %v3604_v24 = vmul.f32 %v3602_v43, %v3602_v43 }
0x234c   :  { %v3813_v5 = vadd.f32 1e-12, %v3811_v58  ;;  %v3603_v56 = vsub.f32 %v3593_v35, %v3601_v38  ;;  %v3606_v0 = vsel %vm199_vm0, %v3604_v24, 0.0 }
0x234d   :  { %3607 = vadd.xlane.f32.xlu1 %v3606_v0  ;;  %v3806_v29 = vpop.xlane.xlu0 %3805 }
0x234e   :  { %5450 = vrsqrt.f32 %v3813_v5  ;;  %v3810_v4 = vmul.f32 0.03125, %v3806_v29  ;;  %v3605_v9 = vmul.f32 %v3603_v56, %v3603_v56 }
0x2350   :  { %v3812_v10 = vadd.f32 1e-12, %v3810_v4  ;;  %v3609_v12 = vsel %vm199_vm0, %v3605_v9, 0.0 }
0x2351   :  { %3610 = vadd.xlane.f32.xlu0 %v3609_v12 }
0x2352   :  { %5452 = vrsqrt.f32 %v3812_v10 }
0x235b   :  { %v5451_v18 = vpop.eup %5450 }
0x235c   :  { %v3817_v44 = vmul.f32 %v5451_v18, %v3801_v8  ;;  %v124_v8 = vld [vmem:[#allocation7 + $0x250] sm:$0xff]  ;;  %v2893_v18 = vrot.slane %v130_v19, 4 }
0x235d   :  { %v4773_v21 = vcombine.low %v124_v8, %v127_v42 }
0x235e   :  { %v3823_v41 = vmul.f32 %v3821_v27, %v3817_v44  ;;  %v2894_v44 = vrot.slane %v133_v31, 4 }
0x235f   :  { %v5453_v34 = vpop.eup %5452  ;;  %5221 = vmatpush3.bf16.msra.mxu0 %v4773_v21 }
0x2360   :  { %v3816_v22 = vmul.f32 %v5453_v34, %v3800_v25  ;;  %v6256_v16 = vadd.f32 %v3827_v28, %v3823_v41  ;;  %5226 = vmatprep.subr.bf16.mxu0 %v5600_v17  ;;  %v2891_v34 = vrot.slane %v124_v8, 4 }
0x2362   :  { %v3822_v6 = vmul.f32 %v3821_v27, %v3816_v22  ;;  %v4777_v27 = vcombine.low %v2893_v18, %v2894_v44  ;;  %v2892_v22 = vrot.slane %v127_v42, 4  ;;  %v3701_v42 = vrot.slane %v6265_v45, %v5733_v48 }
0x2364   :  { %v6254_v55 = vadd.f32 %v3827_v28, %v3822_v6  ;;  %v4776_v41 = vcombine.low %v2891_v34, %v2892_v22  ;;  %v3637_v28 = vrot.slane %v6265_v45, %v5687_v46 }
0x2366   :  { %v3830_v11 = vpack.c.bf16 %v6256_v16, %v6254_v55 }
0x2368   :  { %5239 = vmatmul.mubr.msk.bf16.vlgmr.msra.gmra.mxu1 %vm199_vm0, %v3830_v11 }
0x2369   :  { %5254 = vmatprep.mubr.msk.f32.mxu1 %vm5601_vm1, %v5600_v17 }
0x23d6   :  { %v3608_v49 = vpop.xlane.xlu1 %3607 }
0x23d7   :  { %v3612_v25 = vmul.f32 0.03125, %v3608_v49 }
0x23d9   :  { %v3614_v33 = vadd.f32 1e-12, %v3612_v25 }
0x23da   :  { %v3611_v53 = vpop.xlane.xlu0 %3610 }
0x23db   :  { %5454 = vrsqrt.f32 %v3614_v33  ;;  %v3613_v52 = vmul.f32 0.03125, %v3611_v53  ;;  %v4786_v53 = vld.sshfl [vmem:[#allocation5 + $0x8] sm:$0x11 pattern:$0x75316420] }
0x23dd   :  { %v3615_v47 = vadd.f32 1e-12, %v3613_v52 }
0x23df   :  { %5456 = vrsqrt.f32 %v3615_v47 }
0x23e8   :  { %v5455_v50 = vpop.eup %5454 }
0x23e9   :  { %v3618_v35 = vmul.f32 %v5455_v50, %v3602_v43  ;;  %v3834_v43 = vrot.slane %v6248_v14, %v5687_v46  ;;  %v4058_v50 = vrot.slane %v4786_v53, %v5704_v59 }
0x23eb   :  { %v3624_v13 = vmul.f32 %v3623_v62, %v3618_v35  ;;  %v4051_v35 = vcombine.high %v4786_v53, %v4786_v53 }
0x23ec   :  { %v5457_v61 = vpop.eup %5456 }
0x23ed   :  { %v3619_v39 = vmul.f32 %v5457_v61, %v3603_v56  ;;  %v3630_v51 = vadd.f32 %v3629_v7, %v3624_v13 }
0x23ef   :  { %v3625_v40 = vmul.f32 %v3623_v62, %v3619_v39  ;;  %v3632_v60 = vpack.c.bf16 %v3630_v51, %v3630_v51  ;;  %v4069_v39 = vrot.slane %v4058_v50, %v5666_v32 }
0x23f1   :  { %v3631_v1 = vadd.f32 %v3629_v7, %v3625_v40  ;;  %v3640_v38 = vunpack.c.l.b16 %v3632_v60  ;;  %v4065_v40 = vrot.slane %v4051_v35, %v5704_v59 }
0x23f3   :  { %v3633_v3 = vpack.c.bf16 %v3631_v1, %v3631_v1 }
0x23f5   :  { %v3641_v58 = vunpack.c.l.b16 %v3633_v3  ;;  %v4073_v3 = vrot.slane %v4065_v40, %v5666_v32 }
0x23f7   :  { %v3642_v24 = vrot.slane %v3641_v58, 7 }
0x23f9   :  { %v3643_v5 = vsel %vm951_vm4, %v3642_v24, %v3640_v38 }
0x23fa   :  { %v3644_v0 = vpack.c.b16 %v3643_v5, %v3643_v5 }
0x23fc   :  { %5223 = vmatmul.mubr.msk.bf16.vlgmr.msra.gmra.mxu0 %vm199_vm0, %v3644_v0 }
0x23fd   :  { %5230 = vmatprep.mubr.msk.bf16.mxu0 %vm5601_vm1, %v5600_v17  ;;  %5227 = vmatpush3.bf16.msra.mxu0 %v4777_v27 }
0x23fe   :  { %5228 = vmatprep.subr.bf16.mxu0 %v5600_v17 }
0x2401   :  { %5229 = vmatpush3.bf16.msra.mxu0 %v4776_v41 }
0x2402   :  { %5242 = vmatprep.subr.mxu0 %v5600_v17 }
0x2428   :  { %v3880_v56 = vpop.f32.mrf.mxu1 }
0x2429   :  { %v6277_v29 = vadd.f32 %v3880_v56, %v3834_v43 }
0x242a   :  { %v5240_v4 = vpop.f32.mrf.mxu1 }
0x242b   :  { %3888 = vrot.lane.b32.xlu0 %v6277_v29, %s5602_s2 }
0x242c   :  { %v3883_v9 = vpop.f32.mrf.mxu1 }
0x242d   :  { %v6281_v10 = vadd.f32 %v3883_v9, %v3834_v43 }
0x242e   :  { %v5241_v12 = vpop.f32.mrf.mxu1 }
0x242f   :  { %3965 = vrot.lane.b32.xlu1 %v6281_v10, %s5602_s2 }
0x249d   :  { %v3889_v25 = vpop.permute.xlu0 %3888 }
0x24a1   :  { %v3966_v8 = vpop.permute.xlu1 %3965 }
0x24bc   :  { %v3690_v6 = vpop.f32.mrf.mxu0 }
0x24bd   :  { %v3691_v11 = vadd.f32 %v3690_v6, %v3637_v28 }
0x24be   :  { %v5224_v54 = vpop.f32.mrf.mxu0 }
0x24bf   :  { %5458 = vtanh.f32 %v3691_v11 }
0x24c0   :  { %v3693_v21 = vpop.f32.mrf.mxu0 }
0x24c1   :  { %v3766_v21 = vrot.slane %v6232_v2, 4  ;;  %v4256_v2 = vrot.slane %v6248_v14, %v5733_v48 }
0x24c2   :  { %v5225_v19 = vpop.f32.mrf.mxu0 }
0x24c3   :  { %v3767_v19 = vrot.slane %v6234_v20, 4 }
0x24cc   :  { %v5459_v31 = vpop.eup %5458 }
0x24cd   :  { %v3697_v49 = vpack.c.bf16 %v5459_v31, %v5459_v31  ;;  %v4790_v31 = vcombine.low %v3766_v21, %v3767_v19 }
0x24cf   :  { %5231 = vmatmul.mubr.msk.bf16.vlgmr.msra.gmra.mxu0 %vm199_vm0, %v3697_v49  ;;  %v3764_v49 = vrot.slane %v6238_v36, 4 }
0x24d0   :  { %5243 = vmatpush3.xpose.msk.msra.mxu0 %vm199_vm0, %v3889_v25  ;;  %5244 = vmatprep.mubr.msk.f32.mxu0 %vm5601_vm1, %v5600_v17  ;;  %v3765_v25 = vrot.slane %v6240_v63, 4 }
0x24d1   :  { %5247 = vmatprep.subr.mxu0 %v5600_v17 }
0x24d7   :  { %5245 = vmatmul.mubr.msk.f32.vlgmr.msra.gmra.mxu0 %vm199_vm0, %v6277_v29 }
0x24d8   :  { %5248 = vmatpush3.xpose.msk.msra.mxu0 %vm199_vm0, %v3966_v8  ;;  %5249 = vmatprep.mubr.msk.f32.mxu0 %vm5601_vm1, %v5600_v17  ;;  %v4789_v8 = vcombine.low %v3764_v49, %v3765_v25  ;;  %v153_v49 = vld [vmem:[#allocation7 + $0x3b0] sm:$0xff] }
0x24d9   :  { %5257 = vmatprep.subr.mxu0 %v5600_v17  ;;  %v3783_v25 = vrot.slane %v153_v49, 4 }
0x24db   :  { %5250 = vmatmul.mubr.msk.f32.vlgmr.msra.gmra.mxu0 %vm199_vm0, %v6281_v10 }
0x24dc   :  { %5259 = vmatprep.mubr.msk.f32.mxu0 %vm5601_vm1, %v5600_v17 }
0x258f   :  { %v3747_v33 = vpop.f32.mrf.mxu0 }
0x2590   :  { %v3748_v52 = vadd.f32 %v3747_v33, %v3701_v42 }
0x2591   :  { %v5232_v47 = vpop.f32.mrf.mxu0 }
0x2592   :  { %v3753_v62 = vmul.f32 0.3, %v3748_v52 }
0x2593   :  { %v3750_v13 = vpop.f32.mrf.mxu0 }
0x2594   :  { %v6308_v7 = vadd.f32 %v3753_v62, %v6160_v30 }
0x2595   :  { %v5233_v61 = vpop.f32.mrf.mxu0 }
0x2597   :  { %v3960_v51 = vpop.f32.mrf.mxu0 }
0x2598   :  { %v4041_v1 = vmul.f32 0.17677669, %v3960_v51 }
0x2599   :  { %v5246_v45 = vpop.f32.mrf.mxu0 }
0x259a   :  { %v4076_v60 = vadd.f32 %v4069_v39, %v4041_v1 }
0x259b   :  { %v4037_v58 = vpop.f32.mrf.mxu0 }
0x259c   :  { %v4042_v38 = vmul.f32 0.17677669, %v4037_v58  ;;  %v4078_v24 = vsel %vm487_vm2, %v4076_v60, -inf }
0x259d   :  { %4079 = vmax.xlane.f32.xlu1 %v4078_v24  ;;  %v5251_v5 = vpop.f32.mrf.mxu0 }
0x259e   :  { %v4077_v0 = vadd.f32 %v4073_v3, %v4042_v38 }
0x25a0   :  { %v4081_v30 = vsel %vm487_vm2, %v4077_v0, -inf }
0x25a1   :  { %4082 = vmax.xlane.f32.xlu0 %v4081_v30  ;;  %v148_v30 = vld [vmem:[#allocation7 + $0x350] sm:$0xff] }
0x2626   :  { %v4080_v43 = vpop.xlane.xlu1 %4079 }
0x2627   :  { %v4084_v56 = vsub.f32 %v4076_v60, %v4080_v43  ;;  %v139_v43 = vld [vmem:[#allocation7 + $0x308] sm:$0xff] }
0x2629   :  { %v4086_v4 = vmul.f32 1.442695, %v4084_v56  ;;  %v142_v56 = vld [vmem:[#allocation7 + $0x320] sm:$0xff] }
0x262a   :  { %v4083_v59 = vpop.xlane.xlu0 %4082 }
0x262b   :  { %5460 = vpow2.f32 %v4086_v4  ;;  %v4085_v9 = vsub.f32 %v4077_v0, %v4083_v59  ;;  %v145_v0 = vld [vmem:[#allocation7 + $0x338] sm:$0xff]  ;;  %v4792_v4 = vcombine.low %v139_v43, %v142_v56 }
0x262d   :  { %v4088_v12 = vmul.f32 1.442695, %v4085_v9 }
0x262f   :  { %5462 = vpow2.f32 %v4088_v12 }
0x2638   :  { %v5461_v18 = vpop.eup %5460 }
0x2639   :  { %v4090_v44 = vsel %vm487_vm2, %v5461_v18, 0.0 }
0x263a   :  { %4091 = vadd.xlane.f32.xlu0 %v4090_v44 }
0x263c   :  { %v5463_v27 = vpop.eup %5462 }
0x263d   :  { %v4093_v34 = vsel %vm487_vm2, %v5463_v27, 0.0 }
0x263e   :  { %4094 = vadd.xlane.f32.xlu1 %v4093_v34 }
0x264f   :  { %4176 = vrot.lane.b32.xlu1 %v6281_v10, %s5604_s3 }
0x2650   :  { %4100 = vrot.lane.b32.xlu0 %v6277_v29, %s5604_s3 }
0x26c3   :  { %v4092_v22 = vpop.xlane.xlu0 %4091 }
0x26c4   :  { %5464 = vrcp.f32 %v4092_v22 }
0x26c7   :  { %v4101_v41 = vpop.permute.xlu0 %4100  ;;  %v4095_v28 = vpop.xlane.xlu1 %4094 }
0x26c8   :  { %5466 = vrcp.f32 %v4095_v28  ;;  %5253 = vmatpush3.msra.mxu1 %v4101_v41  ;;  %v4340_v41 = vrot.slane %v6248_v14, %v5746_v15 }
0x26c9   :  { %5262 = vmatprep.subr.bf16.mxu1 %v5600_v17 }
0x26cb   :  { %v4177_v6 = vpop.permute.xlu1 %4176 }
0x26cc   :  { %5258 = vmatpush3.msra.mxu0 %v4177_v6 }
0x26cd   :  { %5270 = vmatprep.subr.bf16.mxu0 %v5600_v17 }
0x26d1   :  { %v5465_v11 = vpop.eup %5464 }
0x26d2   :  { %v4098_v54 = vmul.f32 %v5465_v11, %v5461_v18 }
0x26d4   :  { %5255 = vmatmul.mubr.msk.f32.vlgmr.msra.gmra.mxu1 %vm487_vm2, %v4098_v54  ;;  %v4346_v54 = vrot.slane %v6248_v14, %v5751_v23 }
0x26d5   :  { %v5467_v10 = vpop.eup %5466  ;;  %5266 = vmatprep.mubr.msk.bf16.mxu1 %vm5601_vm1, %v5600_v17  ;;  %5263 = vmatpush3.bf16.msra.mxu1 %v4790_v31  ;;  %v152_v31 = vld [vmem:[#allocation7 + $0x398] sm:$0xff] }
0x26d6   :  { %v4099_v29 = vmul.f32 %v5467_v10, %v5463_v27  ;;  %5264 = vmatprep.subr.bf16.mxu1 %v5600_v17  ;;  %v3782_v15 = vrot.slane %v152_v31, 4 }
0x26d8   :  { %5260 = vmatmul.mubr.msk.f32.vlgmr.msra.gmra.mxu0 %vm487_vm2, %v4099_v29 }
0x26d9   :  { %5274 = vmatprep.mubr.msk.bf16.mxu0 %vm5601_vm1, %v5600_v17  ;;  %5265 = vmatpush3.bf16.msra.mxu1 %v4789_v8  ;;  %v4798_v8 = vcombine.low %v3782_v15, %v3783_v25 }
0x26da   :  { %5278 = vmatprep.subr.bf16.mxu1 %v5600_v17 }
0x2794   :  { %v4172_v42 = vpop.f32.mrf.mxu1 }
0x2796   :  { %v5256_v33 = vpop.f32.mrf.mxu1 }
0x2797   :  { %v151_v33 = vld [vmem:[#allocation7 + $0x380] sm:$0xff] }
0x2798   :  { %v4248_v53 = vpop.f32.mrf.mxu0 }
0x2799   :  { %v4252_v52 = vpack.c.bf16 %v4248_v53, %v4172_v42  ;;  %v150_v42 = vld [vmem:[#allocation7 + $0x368] sm:$0xff]  ;;  %v3781_v53 = vrot.slane %v151_v33, 4  ;;  %v146_v33 = vld [vmem:[#allocation7 + $0x340] sm:$0xff] }
0x279a   :  { %v5261_v47 = vpop.f32.mrf.mxu0  ;;  %v3780_v23 = vrot.slane %v150_v42, 4 }
0x279b   :  { %5267 = vmatmul.mubr.msk.bf16.vlgmr.msra.gmra.mxu1 %vm199_vm0, %v4252_v52  ;;  %v3778_v47 = vrot.slane %v145_v0, 4 }
0x279c   :  { %5286 = vmatprep.mubr.msk.bf16.mxu1 %vm5601_vm1, %v5600_v17  ;;  %5279 = vmatpush3.bf16.msra.mxu1 %v4798_v8  ;;  %v4797_v52 = vcombine.low %v3780_v23, %v3781_v53  ;;  %v149_v23 = vld [vmem:[#allocation7 + $0x358] sm:$0xff] }
0x279d   :  { %5280 = vmatprep.subr.bf16.mxu1 %v5600_v17  ;;  %v4801_v53 = vcombine.low %v146_v33, %v149_v23 }
0x27a0   :  { %5281 = vmatpush3.bf16.msra.mxu1 %v4797_v52  ;;  %v143_v52 = vld [vmem:[#allocation7 + $0x328] sm:$0xff] }
0x27a1   :  { %5282 = vmatprep.subr.bf16.mxu1 %v5600_v17 }
0x285b   :  { %v4302_v20 = vpop.f32.mrf.mxu1 }
0x285c   :  { %v4303_v36 = vadd.f32 %v4302_v20, %v4256_v2 }
0x285d   :  { %v5268_v63 = vpop.f32.mrf.mxu1 }
0x285e   :  { %v4309_v62 = vadd.f32 %v4303_v36, %v6254_v55  ;;  %v3776_v36 = vrot.slane %v139_v43, 4  ;;  %v3777_v63 = vrot.slane %v142_v56, 4 }
0x285f   :  { %v4305_v50 = vpop.f32.mrf.mxu1 }
0x2860   :  { %v4306_v35 = vadd.f32 %v4305_v50, %v4256_v2  ;;  %v4311_v13 = vsel %vm199_vm0, %v4309_v62, 0.0  ;;  %v3779_v2 = vrot.slane %v148_v30, 4  ;;  %v4353_v50 = vrot.slane %v6248_v14, %v5771_v57 }
0x2861   :  { %4312 = vadd.xlane.f32.xlu1 %v4311_v13  ;;  %v5269_v61 = vpop.f32.mrf.mxu1 }
0x2862   :  { %v4310_v39 = vadd.f32 %v4306_v35, %v6256_v16  ;;  %v4793_v16 = vcombine.low %v145_v0, %v148_v30  ;;  %v4796_v20 = vcombine.low %v3778_v47, %v3779_v2 }
0x2864   :  { %v4314_v40 = vsel %vm199_vm0, %v4310_v39, 0.0  ;;  %5271 = vmatpush3.bf16.msra.mxu0 %v4793_v16  ;;  %5283 = vmatpush3.bf16.msra.mxu1 %v4796_v20 }
0x2865   :  { %4315 = vadd.xlane.f32.xlu0 %v4314_v40  ;;  %5272 = vmatprep.subr.bf16.mxu0 %v5600_v17 }
0x2866   :  { %5284 = vmatprep.subr.bf16.mxu1 %v5600_v17 }
0x2868   :  { %5273 = vmatpush3.bf16.msra.mxu0 %v4792_v4 }
0x2869   :  { %5290 = vmatprep.subr.bf16.mxu0 %v5600_v17 }
0x28ea   :  { %v4313_v51 = vpop.xlane.xlu1 %4312 }
0x28eb   :  { %v4317_v1 = vmul.f32 0.03125, %v4313_v51 }
0x28ed   :  { %v4319_v45 = vsub.f32 %v4309_v62, %v4317_v1  ;;  %v4795_v62 = vcombine.low %v3776_v36, %v3777_v63 }
0x28ee   :  { %v4316_v60 = vpop.xlane.xlu0 %4315 }
0x28ef   :  { %v4318_v3 = vmul.f32 0.03125, %v4316_v60  ;;  %v4321_v58 = vmul.f32 %v4319_v45, %v4319_v45  ;;  %5285 = vmatpush3.bf16.msra.mxu1 %v4795_v62 }
0x28f1   :  { %v4320_v38 = vsub.f32 %v4310_v39, %v4318_v3  ;;  %v4323_v55 = vsel %vm199_vm0, %v4321_v58, 0.0 }
0x28f2   :  { %4324 = vadd.xlane.f32.xlu0 %v4323_v55 }
0x28f3   :  { %v4322_v24 = vmul.f32 %v4320_v38, %v4320_v38 }
0x28f5   :  { %v4326_v5 = vsel %vm199_vm0, %v4322_v24, 0.0 }
0x28f6   :  { %4327 = vadd.xlane.f32.xlu1 %v4326_v5 }
0x297b   :  { %v4325_v59 = vpop.xlane.xlu0 %4324 }
0x297c   :  { %v4329_v9 = vmul.f32 0.03125, %v4325_v59 }
0x297e   :  { %v4331_v12 = vadd.f32 1e-12, %v4329_v9 }
0x297f   :  { %v4328_v18 = vpop.xlane.xlu1 %4327 }
0x2980   :  { %5468 = vrsqrt.f32 %v4331_v12  ;;  %v4330_v44 = vmul.f32 0.03125, %v4328_v18  ;;  %v4428_v18 = vrot.slane %v6248_v14, %v5779_v26 }
0x2982   :  { %v4332_v27 = vadd.f32 1e-12, %v4330_v44 }
0x2984   :  { %5470 = vrsqrt.f32 %v4332_v27 }
0x298d   :  { %v5469_v34 = vpop.eup %5468 }
0x298e   :  { %v4335_v22 = vmul.f32 %v5469_v34, %v4319_v45 }
0x2990   :  { %v4341_v11 = vmul.f32 %v4340_v41, %v4335_v22 }
0x2991   :  { %v5471_v28 = vpop.eup %5470 }
0x2992   :  { %v4336_v6 = vmul.f32 %v5471_v28, %v4320_v38  ;;  %v4347_v29 = vadd.f32 %v4346_v54, %v4341_v11 }
0x2994   :  { %v4342_v10 = vmul.f32 %v4340_v41, %v4336_v6 }
0x2996   :  { %v6352_v21 = vadd.f32 %v4346_v54, %v4342_v10 }
0x2998   :  { %v4349_v19 = vpack.c.bf16 %v6352_v21, %v4347_v29 }
0x299a   :  { %5275 = vmatmul.mubr.msk.bf16.vlgmr.msra.gmra.mxu0 %vm199_vm0, %v4349_v19 }
0x299b   :  { %5294 = vmatprep.mubr.msk.bf16.mxu0 %vm5601_vm1, %v5600_v17  ;;  %5291 = vmatpush3.bf16.msra.mxu0 %v4801_v53 }
0x299c   :  { %5292 = vmatprep.subr.bf16.mxu0 %v5600_v17 }
0x2a5a   :  { %v4399_v35 = vpop.f32.mrf.mxu0 }
0x2a5b   :  { %v4400_v13 = vadd.f32 %v4399_v35, %v4353_v50  ;;  %v163_v35 = vld [vmem:[#allocation8 + $0x48] sm:$0xf] }
0x2a5c   :  { %v5276_v61 = vpop.f32.mrf.mxu0 }
0x2a5d   :  { %v4406_v39 = vmul.f32 %v4400_v13, %v4400_v13 }
0x2a5e   :  { %v4402_v40 = vpop.f32.mrf.mxu0 }
0x2a5f   :  { %v4408_v51 = vmul.f32 %v4406_v39, %v4400_v13  ;;  %v4403_v1 = vadd.f32 %v4402_v40, %v4353_v50 }
0x2a60   :  { %v5277_v45 = vpop.f32.mrf.mxu0 }
0x2a61   :  { %v4410_v60 = vmul.f32 0.044715, %v4408_v51  ;;  %v4407_v3 = vmul.f32 %v4403_v1, %v4403_v1  ;;  %v4526_v51 = vrot.slane %v163_v35, %v5673_v37  ;;  %v3791_v37 = vrot.slane %v149_v23, 4 }
0x2a63   :  { %v4412_v58 = vadd.f32 %v4410_v60, %v4400_v13  ;;  %v4409_v38 = vmul.f32 %v4407_v3, %v4403_v1 }
0x2a65   :  { %v4414_v55 = vmul.f32 0.7978846, %v4412_v58  ;;  %v4411_v24 = vmul.f32 0.044715, %v4409_v38 }
0x2a67   :  { %5472 = vtanh.f32 %v4414_v55  ;;  %v4413_v5 = vadd.f32 %v4411_v24, %v4403_v1 }
0x2a69   :  { %v4415_v0 = vmul.f32 0.7978846, %v4413_v5 }
0x2a6b   :  { %5474 = vtanh.f32 %v4415_v0 }
0x2a74   :  { %v5473_v30 = vpop.eup %5472 }
0x2a75   :  { %v4418_v57 = vadd.f32 1.0, %v5473_v30 }
0x2a77   :  { %v4420_v43 = vmul.f32 0.5, %v4418_v57 }
0x2a78   :  { %v5475_v16 = vpop.eup %5474 }
0x2a79   :  { %v4419_v56 = vadd.f32 1.0, %v5475_v16  ;;  %v4422_v59 = vmul.f32 %v4420_v43, %v4400_v13  ;;  %v4520_v13 = vrot.slane %v163_v35, %v5666_v32  ;;  %v3790_v32 = vrot.slane %v146_v33, 4 }
0x2a7b   :  { %v4421_v4 = vmul.f32 0.5, %v4419_v56  ;;  %v4804_v16 = vcombine.low %v3790_v32, %v3791_v37  ;;  %v3789_v56 = vrot.slane %v143_v52, 4 }
0x2a7d   :  { %v4423_v9 = vmul.f32 %v4421_v4, %v4403_v1 }
0x2a7f   :  { %v4424_v12 = vpack.c.bf16 %v4423_v9, %v4422_v59  ;;  %v4534_v59 = vrot.slane %v163_v35, %v5687_v46 }
0x2a81   :  { %5287 = vmatmul.mubr.msk.bf16.vlgmr.msra.gmra.mxu1 %vm855_vm3, %v4424_v12 }
0x2b41   :  { %v4482_v44 = vpop.f32.mrf.mxu1 }
0x2b42   :  { %v4483_v27 = vadd.f32 %v4482_v44, %v4428_v18 }
0x2b43   :  { %v5288_v34 = vpop.f32.mrf.mxu1 }
0x2b44   :  { %v4489_v22 = vadd.f32 %v4483_v27, %v4347_v29 }
0x2b45   :  { %v4485_v41 = vpop.f32.mrf.mxu1 }
0x2b46   :  { %v4486_v28 = vadd.f32 %v4485_v41, %v4428_v18  ;;  %v4491_v6 = vsel %vm199_vm0, %v4489_v22, 0.0  ;;  %v4598_v41 = vrot.slane %v163_v35, %v5733_v48 }
0x2b47   :  { %4492 = vadd.xlane.f32.xlu1 %v4491_v6  ;;  %v5289_v11 = vpop.f32.mrf.mxu1 }
0x2b48   :  { %v4490_v54 = vadd.f32 %v4486_v28, %v6352_v21  ;;  %v140_v21 = vld [vmem:[#allocation7 + $0x310] sm:$0xff] }
0x2b49   :  { %v4800_v47 = vcombine.low %v140_v21, %v143_v52  ;;  %v3788_v43 = vrot.slane %v140_v21, 4 }
0x2b4a   :  { %v4494_v10 = vsel %vm199_vm0, %v4490_v54, 0.0 }
0x2b4b   :  { %4495 = vadd.xlane.f32.xlu0 %v4494_v10  ;;  %5293 = vmatpush3.bf16.msra.mxu0 %v4800_v47  ;;  %v4803_v4 = vcombine.low %v3788_v43, %v3789_v56 }
0x2b4c   :  { %5298 = vmatprep.subr.bf16.mxu0 %v5600_v17 }
0x2bd0   :  { %v4493_v19 = vpop.xlane.xlu1 %4492 }
0x2bd1   :  { %v4497_v31 = vmul.f32 0.03125, %v4493_v19 }
0x2bd3   :  { %v4499_v49 = vsub.f32 %v4489_v22, %v4497_v31 }
0x2bd4   :  { %v4496_v15 = vpop.xlane.xlu0 %4495 }
0x2bd5   :  { %v4498_v26 = vmul.f32 0.03125, %v4496_v15  ;;  %v4501_v14 = vmul.f32 %v4499_v49, %v4499_v49 }
0x2bd7   :  { %v4500_v25 = vsub.f32 %v4490_v54, %v4498_v26  ;;  %v4503_v29 = vsel %vm199_vm0, %v4501_v14, 0.0 }
0x2bd8   :  { %4504 = vadd.xlane.f32.xlu1 %v4503_v29 }
0x2bd9   :  { %v4502_v8 = vmul.f32 %v4500_v25, %v4500_v25 }
0x2bdb   :  { %v4506_v42 = vsel %vm199_vm0, %v4502_v8, 0.0 }
0x2bdc   :  { %4507 = vadd.xlane.f32.xlu0 %v4506_v42 }
0x2c61   :  { %v4505_v2 = vpop.xlane.xlu1 %4504 }
0x2c62   :  { %v4509_v20 = vmul.f32 0.03125, %v4505_v2 }
0x2c64   :  { %v4511_v36 = vadd.f32 1e-12, %v4509_v20 }
0x2c65   :  { %v4508_v63 = vpop.xlane.xlu0 %4507 }
0x2c66   :  { %5476 = vrsqrt.f32 %v4511_v36  ;;  %v4510_v62 = vmul.f32 0.03125, %v4508_v63 }
0x2c68   :  { %v4512_v50 = vadd.f32 1e-12, %v4510_v62 }
0x2c6a   :  { %5478 = vrsqrt.f32 %v4512_v50 }
0x2c73   :  { %v5477_v61 = vpop.eup %5476 }
0x2c74   :  { %v4515_v39 = vmul.f32 %v5477_v61, %v4499_v49 }
0x2c76   :  { %v4521_v40 = vmul.f32 %v4520_v13, %v4515_v39 }
0x2c77   :  { %v5479_v1 = vpop.eup %5478 }
0x2c78   :  { %v4516_v45 = vmul.f32 %v5479_v1, %v4500_v25  ;;  %v4527_v3 = vadd.f32 %v4526_v51, %v4521_v40 }
0x2c7a   :  { %v4522_v60 = vmul.f32 %v4520_v13, %v4516_v45  ;;  %v4529_v38 = vpack.c.bf16 %v4527_v3, %v4527_v3 }
0x2c7c   :  { %v4528_v58 = vadd.f32 %v4526_v51, %v4522_v60  ;;  %v4537_v5 = vunpack.c.l.b16 %v4529_v38 }
0x2c7e   :  { %v4530_v55 = vpack.c.bf16 %v4528_v58, %v4528_v58 }
0x2c80   :  { %v4538_v24 = vunpack.c.l.b16 %v4530_v55 }
0x2c82   :  { %v4539_v0 = vrot.slane %v4538_v24, 7 }
0x2c84   :  { %v4540_v30 = vsel %vm951_vm4, %v4539_v0, %v4537_v5 }
0x2c85   :  { %v4541_v57 = vpack.c.b16 %v4540_v30, %v4540_v30 }
0x2c87   :  { %5295 = vmatmul.mubr.msk.bf16.vlgmr.msra.gmra.mxu0 %vm199_vm0, %v4541_v57 }
0x2c88   :  { %5302 = vmatprep.mubr.msk.bf16.mxu0 %vm5601_vm1, %v5600_v17  ;;  %5299 = vmatpush3.bf16.msra.mxu0 %v4804_v16 }
0x2c89   :  { %5300 = vmatprep.subr.bf16.mxu0 %v5600_v17 }
0x2c8c   :  { %5301 = vmatpush3.bf16.msra.mxu0 %v4803_v4 }
0x2d47   :  { %v4587_v9 = vpop.f32.mrf.mxu0 }
0x2d48   :  { %v4588_v12 = vadd.f32 %v4587_v9, %v4534_v59 }
0x2d49   :  { %v5296_v18 = vpop.f32.mrf.mxu0 }
0x2d4a   :  { %5480 = vtanh.f32 %v4588_v12 }
0x2d4b   :  { %v4590_v44 = vpop.f32.mrf.mxu0 }
0x2d4d   :  { %v5297_v27 = vpop.f32.mrf.mxu0 }
0x2d57   :  { %v5481_v34 = vpop.eup %5480 }
0x2d58   :  { %v4594_v22 = vpack.c.bf16 %v5481_v34, %v5481_v34 }
0x2d5a   :  { %5303 = vmatmul.mubr.msk.bf16.vlgmr.msra.gmra.mxu0 %vm199_vm0, %v4594_v22 }
0x2e1a   :  { %v4644_v28 = vpop.f32.mrf.mxu0 }
0x2e1b   :  { %v4645_v6 = vadd.f32 %v4644_v28, %v4598_v41 }
0x2e1c   :  { %v5304_v11 = vpop.f32.mrf.mxu0 }
0x2e1d   :  { %v4650_v17 = vmul.f32 0.4, %v4645_v6 }
0x2e1e   :  { %v4647_v54 = vpop.f32.mrf.mxu0 }
0x2e1f   :  { %v4651_v46 = vadd.f32 %v4650_v17, %v6308_v7 }
0x2e20   :  { %v5305_v10 = vpop.f32.mrf.mxu0 }
0x2e21   :  { %4653 = vst.msk [vmem:[#allocation10] sm:$0x3] %vm4652_vm5, %v4651_v46 }
0x2e22   :  { %5573 = shalt.err (!%p5570_p10)
}
0x2e23   :  { %4663 = dma.vmem_to_hbm [thread:$0]  %s4661_s14, 32, %s6391_s4, [#allocation4]  }
0x2e24   :  { %5588 = dma.done.wait [#allocation4], 32  }
0x2e25   :  { %5589 = vsyncadd [#allocation4], 4294967264 }
0x2e26   :  { %4667 = vsyncpa [#allocation3], 1 }
0x2e27   :  { %4668 = vsyncpa [#allocation6], 1 }
0x2e28   :  { %4669 = vsyncpa [#allocation9], 1 }
0x2e29   :  { %4670 = vsyncpa [#allocation4], 1 }

</bundles_post_ra>
